<compile_context>
chip_gen: v6e
topology: v6e:2x2x1
jax: 0.10.0
libtpu: 0.0.40
codegen_flags: <defaults>
</compile_context>

<pallas_src>
import functools
import math

import jax
import jax.numpy as jnp
from jax.experimental import pallas as pl
from jax.experimental.pallas import tpu as pltpu

_LANE = 128
_SUBLANE = 8
_HIDDEN = 750
_MAX_TB = 256        # max batch-tile rows per grid step


def _round_up(x, m):
    return ((x + m - 1) // m) * m


def _cvae_kernel(obsact_ref, eps_ref,
                 e1w_ref, e1b_ref,
                 e2w_ref, e2b_ref,
                 e3w_ref, e3b_ref,
                 d1w_ref, d1b_ref,
                 d2w_ref, d2b_ref,
                 d3w_ref, d3b_ref,
                 recon_ref, mustd_ref,
                 obsz_ref,
                 *, act_bound, obs_p, lat_p):
    f32 = jnp.float32
    bf16 = jnp.bfloat16

    obsact = obsact_ref[...]                       # (TB, obs_p + act_p) f32
    obsact_bf = obsact.astype(bf16)

    # ---------------- encoder ----------------
    # h1 = relu(cat(obs, act) @ W1 + b1): single K=256 matmul (lane-aligned cat)
    h1 = jnp.dot(obsact_bf, e1w_ref[...], preferred_element_type=f32) + e1b_ref[...]
    h1 = jnp.maximum(h1, 0.0)
    h2 = jnp.dot(h1.astype(bf16), e2w_ref[...], preferred_element_type=f32) + e2b_ref[...]
    h2 = jnp.maximum(h2, 0.0)
    # fused heads: lanes [0, lat_p) = mu, lanes [lat_p, 2*lat_p) = log_std
    h3 = jnp.dot(h2.astype(bf16), e3w_ref[...], preferred_element_type=f32) + e3b_ref[...]
    mu = h3[:, :lat_p]
    log_std = jnp.clip(h3[:, lat_p:], -4.0, 15.0)

    # ---------------- reparametrize ----------------
    z = mu + eps_ref[...] * jnp.exp(log_std)

    # ---------------- decoder ----------------
    # Lane-aligned concat cat(obs, z) via VMEM scratch (boundary at lane obs_p).
    obsz_ref[:, :obs_p] = obsact[:, :obs_p]
    obsz_ref[:, obs_p:] = z
    h4 = jnp.dot(obsz_ref[...].astype(bf16), d1w_ref[...],
                 preferred_element_type=f32) + d1b_ref[...]
    h4 = jnp.maximum(h4, 0.0)
    h5 = jnp.dot(h4.astype(bf16), d2w_ref[...], preferred_element_type=f32) + d2b_ref[...]
    h5 = jnp.maximum(h5, 0.0)
    recon = jnp.tanh(jnp.dot(h5.astype(bf16), d3w_ref[...],
                             preferred_element_type=f32) + d3b_ref[...]) * act_bound

    recon_ref[...] = recon.astype(recon_ref.dtype)
    mustd_ref[:, :lat_p] = mu
    mustd_ref[:, lat_p:] = log_std


def _cvae_forward(params, obs, action, eps, *, obs_dim, act_dim, latent_dim, act_bound):
    """Padded, fused forward.  Returns (recon_action, mu, log_std) at true shapes."""
    batch = obs.shape[0]
    obs_p = _round_up(obs_dim, _LANE)
    act_p = _round_up(act_dim, _LANE)
    lat_p = _round_up(latent_dim, _LANE)

    # Batch tiling: one block for small batches, TB=_MAX_TB blocks for large ones.
    if batch <= _MAX_TB:
        tb = _round_up(max(batch, _SUBLANE), _SUBLANE)
        b_pad = tb
    else:
        tb = _MAX_TB
        b_pad = _round_up(batch, tb)
    n_blocks = b_pad // tb
    pad_rows = b_pad - batch

    # Lane-aligned cat(obs, act): obs in lanes [0, obs_p), act in [obs_p, obs_p+act_p).
    obsact = jnp.concatenate([
        jnp.pad(obs.astype(jnp.float32), ((0, pad_rows), (0, obs_p - obs_dim))),
        jnp.pad(action.astype(jnp.float32), ((0, pad_rows), (0, act_p - act_dim))),
    ], axis=1)
    eps_p = jnp.pad(eps.astype(jnp.float32), ((0, pad_rows), (0, lat_p - latent_dim)))

    kernel = functools.partial(_cvae_kernel, act_bound=act_bound,
                               obs_p=obs_p, lat_p=lat_p)
    # Weights/biases: whole-array VMEM residents (single-buffered, loaded once).
    whole = pl.BlockSpec(memory_space=pltpu.MemorySpace.VMEM)

    recon_p, mustd_p = pl.pallas_call(
        kernel,
        grid=(n_blocks,),
        out_shape=(
            jax.ShapeDtypeStruct((b_pad, act_p), jnp.float32),
            jax.ShapeDtypeStruct((b_pad, 2 * lat_p), jnp.float32),
        ),
        in_specs=[
            pl.BlockSpec((tb, obs_p + act_p), lambda i: (i, 0)),
            pl.BlockSpec((tb, lat_p), lambda i: (i, 0)),
        ] + [whole] * len(params),
        out_specs=(
            pl.BlockSpec((tb, act_p), lambda i: (i, 0)),
            pl.BlockSpec((tb, 2 * lat_p), lambda i: (i, 0)),
        ),
        scratch_shapes=[pltpu.VMEM((tb, obs_p + lat_p), jnp.float32)],
        compiler_params=pltpu.CompilerParams(dimension_semantics=("parallel",)),
    )(obsact, eps_p, *params)

    return (recon_p[:batch, :act_dim],
            mustd_p[:batch, :latent_dim],
            mustd_p[:batch, lat_p:lat_p + latent_dim])


class CVAE:
    """JAX/Pallas equivalent of the PyTorch CVAE forward pass."""

    def __init__(self, obs_dim, act_dim, latent_dim, act_bound, key):
        self.obs_dim = obs_dim
        self.act_dim = act_dim
        self.latent_dim = latent_dim
        self.act_bound = float(act_bound)

        hp = _round_up(_HIDDEN, _LANE)          # 750 -> 768
        obs_p = _round_up(obs_dim, _LANE)
        act_p = _round_up(act_dim, _LANE)
        lat_p = _round_up(latent_dim, _LANE)

        def linear(k, fan_in, fan_out):
            # nn.Linear default init: U(-1/sqrt(fan_in), 1/sqrt(fan_in)),
            # stored pre-transposed as [in, out] so y = x @ W + b.
            kw, kb = jax.random.split(k)
            bound = 1.0 / math.sqrt(fan_in)
            w = jax.random.uniform(kw, (fan_in, fan_out), jnp.float32, -bound, bound)
            b = jax.random.uniform(kb, (fan_out,), jnp.float32, -bound, bound)
            return w, b

        ks = jax.random.split(key, 7)
        e1_w, e1_b = linear(ks[0], obs_dim + act_dim, _HIDDEN)
        e2_w, e2_b = linear(ks[1], _HIDDEN, _HIDDEN)
        e3m_w, e3m_b = linear(ks[2], _HIDDEN, latent_dim)
        e3s_w, e3s_b = linear(ks[3], _HIDDEN, latent_dim)
        d1_w, d1_b = linear(ks[4], obs_dim + latent_dim, _HIDDEN)
        d2_w, d2_b = linear(ks[5], _HIDDEN, _HIDDEN)
        d3_w, d3_b = linear(ks[6], _HIDDEN, act_dim)

        # Un-padded f32 copies (used only by the pure-JAX reference in __main__).
        self.raw = {
            "e1": (e1_w, e1_b), "e2": (e2_w, e2_b),
            "e3_mu": (e3m_w, e3m_b), "e3_log_std": (e3s_w, e3s_b),
            "d1": (d1_w, d1_b), "d2": (d2_w, d2_b), "d3": (d3_w, d3_b),
        }

        bf16 = jnp.bfloat16

        def pad_w(w, rows, cols):
            return jnp.pad(w, ((0, rows - w.shape[0]), (0, cols - w.shape[1])))

        def pad_b(b, cols):
            return jnp.pad(b, (0, cols - b.shape[0]))[None, :].astype(jnp.float32)

        # e1: fused lane-aligned concat weight [obs_p + act_p, hp].
        e1w = jnp.concatenate([pad_w(e1_w[:obs_dim], obs_p, hp),
                               pad_w(e1_w[obs_dim:], act_p, hp)], axis=0).astype(bf16)
        # e3: fused mu||log_std heads [hp, 2*lat_p].
        e3w = jnp.concatenate([pad_w(e3m_w, hp, lat_p),
                               pad_w(e3s_w, hp, lat_p)], axis=1).astype(bf16)
        e3b = jnp.concatenate([jnp.pad(e3m_b, (0, lat_p - latent_dim)),
                               jnp.pad(e3s_b, (0, lat_p - latent_dim))])[None, :]
        e3b = e3b.astype(jnp.float32)
        # d1: fused lane-aligned concat weight [obs_p + lat_p, hp].
        d1w = jnp.concatenate([pad_w(d1_w[:obs_dim], obs_p, hp),
                               pad_w(d1_w[obs_dim:], lat_p, hp)], axis=0).astype(bf16)

        # Weights bf16, biases f32; zero padding keeps the math exact.
        self.params = (
            e1w, pad_b(e1_b, hp),
            pad_w(e2_w, hp, hp).astype(bf16), pad_b(e2_b, hp),
            e3w, e3b,
            d1w, pad_b(d1_b, hp),
            pad_w(d2_w, hp, hp).astype(bf16), pad_b(d2_b, hp),
            pad_w(d3_w, hp, act_p).astype(bf16), pad_b(d3_b, act_p),
        )

        self._forward = jax.jit(functools.partial(
            _cvae_forward, obs_dim=obs_dim, act_dim=act_dim,
            latent_dim=latent_dim, act_bound=self.act_bound))

    def forward(self, obs, action, eps):
        """Deterministic forward given reparametrization noise eps [B, latent_dim]."""
        return self._forward(self.params, obs, action, eps)

    def __call__(self, obs, action, key):
        eps = jax.random.normal(key, (obs.shape[0], self.latent_dim), jnp.float32)
        return self.forward(obs, action, eps)

    # TODO(synk): decode_multiple_without_squash and loss_function are not part
    # of the forward pass and are not implemented as Pallas kernels here.


def _reference_forward(cvae, obs, action, eps):
    """Pure-JAX f32 reference (HIGHEST matmul precision) of the PyTorch forward."""
    hp = jax.lax.Precision.HIGHEST
    e1_w, e1_b = cvae.raw["e1"]
    e2_w, e2_b = cvae.raw["e2"]
    e3m_w, e3m_b = cvae.raw["e3_mu"]
    e3s_w, e3s_b = cvae.raw["e3_log_std"]
    d1_w, d1_b = cvae.raw["d1"]
    d2_w, d2_b = cvae.raw["d2"]
    d3_w, d3_b = cvae.raw["d3"]

    h1 = jax.nn.relu(jnp.dot(jnp.concatenate([obs, action], axis=1), e1_w, precision=hp) + e1_b)
    h2 = jax.nn.relu(jnp.dot(h1, e2_w, precision=hp) + e2_b)
    mu = jnp.dot(h2, e3m_w, precision=hp) + e3m_b
    log_std = jnp.clip(jnp.dot(h2, e3s_w, precision=hp) + e3s_b, -4.0, 15.0)
    z = mu + eps * jnp.exp(log_std)
    h4 = jax.nn.relu(jnp.dot(jnp.concatenate([obs, z], axis=1), d1_w, precision=hp) + d1_b)
    h5 = jax.nn.relu(jnp.dot(h4, d2_w, precision=hp) + d2_b)
    recon = jnp.tanh(jnp.dot(h5, d3_w, precision=hp) + d3_b) * cvae.act_bound
    return recon, mu, log_std


if __name__ == "__main__":
    key = jax.random.PRNGKey(0)
    key, pkey, okey, akey, ekey = jax.random.split(key, 5)

    batch = 8
    obs_dim = 17
    act_dim = 6
    latent_dim = 2 * act_dim  # BCQ convention
    act_bound = 1.0

    cvae = CVAE(obs_dim, act_dim, latent_dim, act_bound, pkey)

    obs = jax.random.normal(okey, (batch, obs_dim), jnp.float32)
    action = jnp.tanh(jax.random.normal(akey, (batch, act_dim), jnp.float32)) * act_bound
    eps = jax.random.normal(ekey, (batch, latent_dim), jnp.float32)

    recon, mu, log_std = cvae.forward(obs, action, eps)
    recon, mu, log_std = jax.block_until_ready((recon, mu, log_std))

    assert recon.shape == (batch, act_dim)
    assert mu.shape == (batch, latent_dim)
    assert log_std.shape == (batch, latent_dim)

    # bf16 weights / bf16 MXU inputs vs f32 HIGHEST reference -> slightly
    # looser tolerance than pure-f32.
    ref_recon, ref_mu, ref_log_std = _reference_forward(cvae, obs, action, eps)
    assert jnp.allclose(mu, ref_mu, atol=2e-2, rtol=2e-2), "mu mismatch"
    assert jnp.allclose(log_std, ref_log_std, atol=2e-2, rtol=2e-2), "log_std mismatch"
    assert jnp.allclose(recon, ref_recon, atol=2e-2, rtol=2e-2), "recon mismatch"

    print("KERNEL_OK")
</pallas_src>

<mosaic_0001>
module attributes {stable_mosaic.version = 11 : i64} {
  func.func @_cvae_kernel(%arg0: i32, %arg1: memref<8x256xf32, #tpu.memory_space<vmem>>, %arg2: memref<8x128xf32, #tpu.memory_space<vmem>>, %arg3: memref<256x768xbf16, #tpu.memory_space<vmem>>, %arg4: memref<1x768xf32, #tpu.memory_space<vmem>>, %arg5: memref<768x768xbf16, #tpu.memory_space<vmem>>, %arg6: memref<1x768xf32, #tpu.memory_space<vmem>>, %arg7: memref<768x256xbf16, #tpu.memory_space<vmem>>, %arg8: memref<1x256xf32, #tpu.memory_space<vmem>>, %arg9: memref<256x768xbf16, #tpu.memory_space<vmem>>, %arg10: memref<1x768xf32, #tpu.memory_space<vmem>>, %arg11: memref<768x768xbf16, #tpu.memory_space<vmem>>, %arg12: memref<1x768xf32, #tpu.memory_space<vmem>>, %arg13: memref<768x128xbf16, #tpu.memory_space<vmem>>, %arg14: memref<1x128xf32, #tpu.memory_space<vmem>>, %arg15: memref<8x128xf32, #tpu.memory_space<vmem>>, %arg16: memref<8x256xf32, #tpu.memory_space<vmem>>, %arg17: memref<8x256xf32, #tpu.memory_space<vmem>>) attributes {dimension_semantics = [#tpu.dimension_semantics<parallel>], iteration_bounds = array<i64: 1>, scalar_prefetch = 0 : i64, scratch_operands = 1 : i64, tpu.core_type = #tpu.core_type<tc>, window_params = [{transform_indices = @transform_0, window_bounds = array<i64: 8, 256>}, {transform_indices = @transform_1, window_bounds = array<i64: 8, 128>}, {pipeline_mode = #tpu.pipeline_mode<synchronous>, transform_indices = @transform_2, window_bounds = array<i64: 256, 768>}, {pipeline_mode = #tpu.pipeline_mode<synchronous>, transform_indices = @transform_3, window_bounds = array<i64: 1, 768>}, {pipeline_mode = #tpu.pipeline_mode<synchronous>, transform_indices = @transform_4, window_bounds = array<i64: 768, 768>}, {pipeline_mode = #tpu.pipeline_mode<synchronous>, transform_indices = @transform_5, window_bounds = array<i64: 1, 768>}, {pipeline_mode = #tpu.pipeline_mode<synchronous>, transform_indices = @transform_6, window_bounds = array<i64: 768, 256>}, {pipeline_mode = #tpu.pipeline_mode<synchronous>, transform_indices = @transform_7, window_bounds = array<i64: 1, 256>}, {pipeline_mode = #tpu.pipeline_mode<synchronous>, transform_indices = @transform_8, window_bounds = array<i64: 256, 768>}, {pipeline_mode = #tpu.pipeline_mode<synchronous>, transform_indices = @transform_9, window_bounds = array<i64: 1, 768>}, {pipeline_mode = #tpu.pipeline_mode<synchronous>, transform_indices = @transform_10, window_bounds = array<i64: 768, 768>}, {pipeline_mode = #tpu.pipeline_mode<synchronous>, transform_indices = @transform_11, window_bounds = array<i64: 1, 768>}, {pipeline_mode = #tpu.pipeline_mode<synchronous>, transform_indices = @transform_12, window_bounds = array<i64: 768, 128>}, {pipeline_mode = #tpu.pipeline_mode<synchronous>, transform_indices = @transform_13, window_bounds = array<i64: 1, 128>}, {transform_indices = @transform_14, window_bounds = array<i64: 8, 128>}, {transform_indices = @transform_15, window_bounds = array<i64: 8, 256>}]} {
    %c0 = arith.constant 0 : index
    %c0_0 = arith.constant 0 : index
    %0 = vector.load %arg1[%c0, %c0_0] : memref<8x256xf32, #tpu.memory_space<vmem>>, vector<8x256xf32>
    %1 = arith.truncf %0 : vector<8x256xf32> to vector<8x256xbf16>
    %c0_1 = arith.constant 0 : index
    %c0_2 = arith.constant 0 : index
    %2 = vector.load %arg3[%c0_1, %c0_2] : memref<256x768xbf16, #tpu.memory_space<vmem>>, vector<256x768xbf16>
    %cst = arith.constant dense<0.000000e+00> : vector<8x768xf32>
    %3 = tpu.matmul %1, %2, %cst {dimension_numbers = #tpu.dot_dimension_numbers<[1], [0], [0], [1], [0, 0, 1, 1], [], []>} : vector<8x256xbf16>, vector<256x768xbf16>, vector<8x768xf32> -> vector<8x768xf32>
    %c0_3 = arith.constant 0 : index
    %c0_4 = arith.constant 0 : index
    %4 = vector.load %arg4[%c0_3, %c0_4] : memref<1x768xf32, #tpu.memory_space<vmem>>, vector<1x768xf32>
    %5 = vector.broadcast %4 : vector<1x768xf32> to vector<8x768xf32>
    %6 = arith.addf %3, %5 : vector<8x768xf32>
    %cst_5 = arith.constant 0.000000e+00 : f32
    %7 = vector.broadcast %cst_5 : f32 to vector<8x768xf32>
    %8 = arith.maximumf %6, %7 : vector<8x768xf32>
    %9 = arith.truncf %8 : vector<8x768xf32> to vector<8x768xbf16>
    %c0_6 = arith.constant 0 : index
    %c0_7 = arith.constant 0 : index
    %10 = vector.load %arg5[%c0_6, %c0_7] : memref<768x768xbf16, #tpu.memory_space<vmem>>, vector<768x768xbf16>
    %cst_8 = arith.constant dense<0.000000e+00> : vector<8x768xf32>
    %11 = tpu.matmul %9, %10, %cst_8 {dimension_numbers = #tpu.dot_dimension_numbers<[1], [0], [0], [1], [0, 0, 1, 1], [], []>} : vector<8x768xbf16>, vector<768x768xbf16>, vector<8x768xf32> -> vector<8x768xf32>
    %c0_9 = arith.constant 0 : index
    %c0_10 = arith.constant 0 : index
    %12 = vector.load %arg6[%c0_9, %c0_10] : memref<1x768xf32, #tpu.memory_space<vmem>>, vector<1x768xf32>
    %13 = vector.broadcast %12 : vector<1x768xf32> to vector<8x768xf32>
    %14 = arith.addf %11, %13 : vector<8x768xf32>
    %cst_11 = arith.constant 0.000000e+00 : f32
    %15 = vector.broadcast %cst_11 : f32 to vector<8x768xf32>
    %16 = arith.maximumf %14, %15 : vector<8x768xf32>
    %17 = arith.truncf %16 : vector<8x768xf32> to vector<8x768xbf16>
    %c0_12 = arith.constant 0 : index
    %c0_13 = arith.constant 0 : index
    %18 = vector.load %arg7[%c0_12, %c0_13] : memref<768x256xbf16, #tpu.memory_space<vmem>>, vector<768x256xbf16>
    %cst_14 = arith.constant dense<0.000000e+00> : vector<8x256xf32>
    %19 = tpu.matmul %17, %18, %cst_14 {dimension_numbers = #tpu.dot_dimension_numbers<[1], [0], [0], [1], [0, 0, 1, 1], [], []>} : vector<8x768xbf16>, vector<768x256xbf16>, vector<8x256xf32> -> vector<8x256xf32>
    %c0_15 = arith.constant 0 : index
    %c0_16 = arith.constant 0 : index
    %20 = vector.load %arg8[%c0_15, %c0_16] : memref<1x256xf32, #tpu.memory_space<vmem>>, vector<1x256xf32>
    %21 = vector.broadcast %20 : vector<1x256xf32> to vector<8x256xf32>
    %22 = arith.addf %19, %21 : vector<8x256xf32>
    %23 = vector.extract_strided_slice %22 {offsets = [0, 0], sizes = [8, 128], strides = [1, 1]} : vector<8x256xf32> to vector<8x128xf32>
    %24 = vector.extract_strided_slice %22 {offsets = [0, 128], sizes = [8, 128], strides = [1, 1]} : vector<8x256xf32> to vector<8x128xf32>
    %cst_17 = arith.constant -4.000000e+00 : f32
    %cst_18 = arith.constant 1.500000e+01 : f32
    %25 = vector.broadcast %cst_17 : f32 to vector<8x128xf32>
    %26 = arith.maximumf %25, %24 : vector<8x128xf32>
    %27 = vector.broadcast %cst_18 : f32 to vector<8x128xf32>
    %28 = arith.minimumf %27, %26 : vector<8x128xf32>
    %c0_19 = arith.constant 0 : index
    %c0_20 = arith.constant 0 : index
    %29 = vector.load %arg2[%c0_19, %c0_20] : memref<8x128xf32, #tpu.memory_space<vmem>>, vector<8x128xf32>
    %30 = math.exp %28 : vector<8x128xf32>
    %31 = arith.mulf %29, %30 : vector<8x128xf32>
    %32 = arith.addf %23, %31 : vector<8x128xf32>
    %33 = vector.extract_strided_slice %0 {offsets = [0, 0], sizes = [8, 128], strides = [1, 1]} : vector<8x256xf32> to vector<8x128xf32>
    %c0_21 = arith.constant 0 : index
    %c0_22 = arith.constant 0 : index
    %34 = vector.load %arg17[%c0_21, %c0_22] : memref<8x256xf32, #tpu.memory_space<vmem>>, vector<8x128xf32>
    tpu.vector_store %arg17[%c0_21, %c0_22], %33 {strides = array<i32>} : memref<8x256xf32, #tpu.memory_space<vmem>>, vector<8x128xf32>,
    %c0_23 = arith.constant 0 : index
    %c128 = arith.constant 128 : index
    %35 = vector.load %arg17[%c0_23, %c128] : memref<8x256xf32, #tpu.memory_space<vmem>>, vector<8x128xf32>
    tpu.vector_store %arg17[%c0_23, %c128], %32 {strides = array<i32>} : memref<8x256xf32, #tpu.memory_space<vmem>>, vector<8x128xf32>,
    %c0_24 = arith.constant 0 : index
    %c0_25 = arith.constant 0 : index
    %36 = vector.load %arg17[%c0_24, %c0_25] : memref<8x256xf32, #tpu.memory_space<vmem>>, vector<8x256xf32>
    %37 = arith.truncf %36 : vector<8x256xf32> to vector<8x256xbf16>
    %c0_26 = arith.constant 0 : index
    %c0_27 = arith.constant 0 : index
    %38 = vector.load %arg9[%c0_26, %c0_27] : memref<256x768xbf16, #tpu.memory_space<vmem>>, vector<256x768xbf16>
    %cst_28 = arith.constant dense<0.000000e+00> : vector<8x768xf32>
    %39 = tpu.matmul %37, %38, %cst_28 {dimension_numbers = #tpu.dot_dimension_numbers<[1], [0], [0], [1], [0, 0, 1, 1], [], []>} : vector<8x256xbf16>, vector<256x768xbf16>, vector<8x768xf32> -> vector<8x768xf32>
    %c0_29 = arith.constant 0 : index
    %c0_30 = arith.constant 0 : index
    %40 = vector.load %arg10[%c0_29, %c0_30] : memref<1x768xf32, #tpu.memory_space<vmem>>, vector<1x768xf32>
    %41 = vector.broadcast %40 : vector<1x768xf32> to vector<8x768xf32>
    %42 = arith.addf %39, %41 : vector<8x768xf32>
    %cst_31 = arith.constant 0.000000e+00 : f32
    %43 = vector.broadcast %cst_31 : f32 to vector<8x768xf32>
    %44 = arith.maximumf %42, %43 : vector<8x768xf32>
    %45 = arith.truncf %44 : vector<8x768xf32> to vector<8x768xbf16>
    %c0_32 = arith.constant 0 : index
    %c0_33 = arith.constant 0 : index
    %46 = vector.load %arg11[%c0_32, %c0_33] : memref<768x768xbf16, #tpu.memory_space<vmem>>, vector<768x768xbf16>
    %cst_34 = arith.constant dense<0.000000e+00> : vector<8x768xf32>
    %47 = tpu.matmul %45, %46, %cst_34 {dimension_numbers = #tpu.dot_dimension_numbers<[1], [0], [0], [1], [0, 0, 1, 1], [], []>} : vector<8x768xbf16>, vector<768x768xbf16>, vector<8x768xf32> -> vector<8x768xf32>
    %c0_35 = arith.constant 0 : index
    %c0_36 = arith.constant 0 : index
    %48 = vector.load %arg12[%c0_35, %c0_36] : memref<1x768xf32, #tpu.memory_space<vmem>>, vector<1x768xf32>
    %49 = vector.broadcast %48 : vector<1x768xf32> to vector<8x768xf32>
    %50 = arith.addf %47, %49 : vector<8x768xf32>
    %cst_37 = arith.constant 0.000000e+00 : f32
    %51 = vector.broadcast %cst_37 : f32 to vector<8x768xf32>
    %52 = arith.maximumf %50, %51 : vector<8x768xf32>
    %53 = arith.truncf %52 : vector<8x768xf32> to vector<8x768xbf16>
    %c0_38 = arith.constant 0 : index
    %c0_39 = arith.constant 0 : index
    %54 = vector.load %arg13[%c0_38, %c0_39] : memref<768x128xbf16, #tpu.memory_space<vmem>>, vector<768x128xbf16>
    %cst_40 = arith.constant dense<0.000000e+00> : vector<8x128xf32>
    %55 = tpu.matmul %53, %54, %cst_40 {dimension_numbers = #tpu.dot_dimension_numbers<[1], [0], [0], [1], [0, 0, 1, 1], [], []>} : vector<8x768xbf16>, vector<768x128xbf16>, vector<8x128xf32> -> vector<8x128xf32>
    %c0_41 = arith.constant 0 : index
    %c0_42 = arith.constant 0 : index
    %56 = vector.load %arg14[%c0_41, %c0_42] : memref<1x128xf32, #tpu.memory_space<vmem>>, vector<1x128xf32>
    %57 = vector.broadcast %56 : vector<1x128xf32> to vector<8x128xf32>
    %58 = arith.addf %55, %57 : vector<8x128xf32>
    %59 = math.tanh %58 : vector<8x128xf32>
    %cst_43 = arith.constant 1.000000e+00 : f32
    %60 = vector.broadcast %cst_43 : f32 to vector<8x128xf32>
    %61 = arith.mulf %59, %60 : vector<8x128xf32>
    %c0_44 = arith.constant 0 : index
    %c0_45 = arith.constant 0 : index
    %62 = vector.load %arg15[%c0_44, %c0_45] : memref<8x128xf32, #tpu.memory_space<vmem>>, vector<8x128xf32>
    tpu.vector_store %arg15[%c0_44, %c0_45], %61 {strides = array<i32>} : memref<8x128xf32, #tpu.memory_space<vmem>>, vector<8x128xf32>,
    %c0_46 = arith.constant 0 : index
    %c0_47 = arith.constant 0 : index
    %63 = vector.load %arg16[%c0_46, %c0_47] : memref<8x256xf32, #tpu.memory_space<vmem>>, vector<8x128xf32>
    tpu.vector_store %arg16[%c0_46, %c0_47], %23 {strides = array<i32>} : memref<8x256xf32, #tpu.memory_space<vmem>>, vector<8x128xf32>,
    %c0_48 = arith.constant 0 : index
    %c128_49 = arith.constant 128 : index
    %64 = vector.load %arg16[%c0_48, %c128_49] : memref<8x256xf32, #tpu.memory_space<vmem>>, vector<8x128xf32>
    tpu.vector_store %arg16[%c0_48, %c128_49], %28 {strides = array<i32>} : memref<8x256xf32, #tpu.memory_space<vmem>>, vector<8x128xf32>,
    return
  }
  func.func @transform_0(%arg0: i32) -> (i32, i32) {
    %c0_i32 = arith.constant 0 : i32
    %c0_i32_0 = arith.constant 0 : i32
    return %arg0, %c0_i32 : i32, i32
  }
  func.func @transform_1(%arg0: i32) -> (i32, i32) {
    %c0_i32 = arith.constant 0 : i32
    %c0_i32_0 = arith.constant 0 : i32
    return %arg0, %c0_i32 : i32, i32
  }
  func.func @transform_2(%arg0: i32) -> (i32, i32) {
    %c0_i32 = arith.constant 0 : i32
    %c0_i32_0 = arith.constant 0 : i32
    %c0_i32_1 = arith.constant 0 : i32
    return %c0_i32, %c0_i32_0 : i32, i32
  }
  func.func @transform_3(%arg0: i32) -> (i32, i32) {
    %c0_i32 = arith.constant 0 : i32
    %c0_i32_0 = arith.constant 0 : i32
    %c0_i32_1 = arith.constant 0 : i32
    return %c0_i32, %c0_i32_0 : i32, i32
  }
  func.func @transform_4(%arg0: i32) -> (i32, i32) {
    %c0_i32 = arith.constant 0 : i32
    %c0_i32_0 = arith.constant 0 : i32
    %c0_i32_1 = arith.constant 0 : i32
    return %c0_i32, %c0_i32_0 : i32, i32
  }
  func.func @transform_5(%arg0: i32) -> (i32, i32) {
    %c0_i32 = arith.constant 0 : i32
    %c0_i32_0 = arith.constant 0 : i32
    %c0_i32_1 = arith.constant 0 : i32
    return %c0_i32, %c0_i32_0 : i32, i32
  }
  func.func @transform_6(%arg0: i32) -> (i32, i32) {
    %c0_i32 = arith.constant 0 : i32
    %c0_i32_0 = arith.constant 0 : i32
    %c0_i32_1 = arith.constant 0 : i32
    return %c0_i32, %c0_i32_0 : i32, i32
  }
  func.func @transform_7(%arg0: i32) -> (i32, i32) {
    %c0_i32 = arith.constant 0 : i32
    %c0_i32_0 = arith.constant 0 : i32
    %c0_i32_1 = arith.constant 0 : i32
    return %c0_i32, %c0_i32_0 : i32, i32
  }
  func.func @transform_8(%arg0: i32) -> (i32, i32) {
    %c0_i32 = arith.constant 0 : i32
    %c0_i32_0 = arith.constant 0 : i32
    %c0_i32_1 = arith.constant 0 : i32
    return %c0_i32, %c0_i32_0 : i32, i32
  }
  func.func @transform_9(%arg0: i32) -> (i32, i32) {
    %c0_i32 = arith.constant 0 : i32
    %c0_i32_0 = arith.constant 0 : i32
    %c0_i32_1 = arith.constant 0 : i32
    return %c0_i32, %c0_i32_0 : i32, i32
  }
  func.func @transform_10(%arg0: i32) -> (i32, i32) {
    %c0_i32 = arith.constant 0 : i32
    %c0_i32_0 = arith.constant 0 : i32
    %c0_i32_1 = arith.constant 0 : i32
    return %c0_i32, %c0_i32_0 : i32, i32
  }
  func.func @transform_11(%arg0: i32) -> (i32, i32) {
    %c0_i32 = arith.constant 0 : i32
    %c0_i32_0 = arith.constant 0 : i32
    %c0_i32_1 = arith.constant 0 : i32
    return %c0_i32, %c0_i32_0 : i32, i32
  }
  func.func @transform_12(%arg0: i32) -> (i32, i32) {
    %c0_i32 = arith.constant 0 : i32
    %c0_i32_0 = arith.constant 0 : i32
    %c0_i32_1 = arith.constant 0 : i32
    return %c0_i32, %c0_i32_0 : i32, i32
  }
  func.func @transform_13(%arg0: i32) -> (i32, i32) {
    %c0_i32 = arith.constant 0 : i32
    %c0_i32_0 = arith.constant 0 : i32
    %c0_i32_1 = arith.constant 0 : i32
    return %c0_i32, %c0_i32_0 : i32, i32
  }
  func.func @transform_14(%arg0: i32) -> (i32, i32) {
    %c0_i32 = arith.constant 0 : i32
    %c0_i32_0 = arith.constant 0 : i32
    return %arg0, %c0_i32 : i32, i32
  }
  func.func @transform_15(%arg0: i32) -> (i32, i32) {
    %c0_i32 = arith.constant 0 : i32
    %c0_i32_0 = arith.constant 0 : i32
    return %arg0, %c0_i32 : i32, i32
  }
}

</mosaic_0001>

<bundles_post_ra>
// kernel: _cvae_forward.1
= control target key start
LH: loop header
LB: loop body
LE: loop exit
PB: predicated region body
PF: predicated region fallthrough
CT: control target
= control target key end

     0   :  { %21 = vsyncpa [#allocation4], 0  ;;  %s10210_s0 = inlined_call_operand.vmem [shape: f32[8,256], index: 0, kind: input, shape index: {}]   ;;  %s10211_s1 = inlined_call_operand.vmem [shape: f32[8,128], index: 1, kind: input, shape index: {}]   ;;  %s10212_s2 = inlined_call_operand.hbm [shape: bf16[256,768], index: 2, kind: input, shape index: {}]   ;;  %s10213_s3 = inlined_call_operand.hbm [shape: f32[1,768], index: 3, kind: input, shape index: {}]   ;;  %s10214_s4 = inlined_call_operand.hbm [shape: bf16[768,768], index: 4, kind: input, shape index: {}]   ;;  %s10215_s5 = inlined_call_operand.hbm [shape: f32[1,768], index: 5, kind: input, shape index: {}]   ;;  %s10216_s6 = inlined_call_operand.hbm [shape: bf16[768,256], index: 6, kind: input, shape index: {}]   ;;  %s10217_s7 = inlined_call_operand.hbm [shape: f32[1,256], index: 7, kind: input, shape index: {}]   ;;  %s10218_s8 = inlined_call_operand.hbm [shape: bf16[256,768], index: 8, kind: input, shape index: {}]   ;;  %s10219_s9 = inlined_call_operand.hbm [shape: f32[1,768], index: 9, kind: input, shape index: {}]   ;;  %s10220_s10 = inlined_call_operand.hbm [shape: bf16[768,768], index: 10, kind: input, shape index: {}]   ;;  %s10221_s11 = inlined_call_operand.hbm [shape: f32[1,768], index: 11, kind: input, shape index: {}]   ;;  %s10222_s12 = inlined_call_operand.hbm [shape: bf16[768,128], index: 12, kind: input, shape index: {}]   ;;  %s10223_s13 = inlined_call_operand.hbm [shape: f32[1,128], index: 13, kind: input, shape index: {}]   ;;  %s10224_s14 = inlined_call_operand.hbm [shape: f32[8,128], index: 14, kind: output, shape index: {0}]   ;;  %s10225_s15 = inlined_call_operand.vmem [shape: f32[8,256], index: 15, kind: output, shape index: {1}]  }
   0x1   :  { %22 = vsyncpa [#allocation7], 0 }
   0x2   :  { %23 = vsyncpa [#allocation10], 0 }
   0x3   :  { %24 = vsyncpa [#allocation13], 0 }
   0x4   :  { %25 = vsyncpa [#allocation16], 0 }
   0x5   :  { %26 = vsyncpa [#allocation19], 0 }
   0x6   :  { %27 = vsyncpa [#allocation22], 0 }
   0x7   :  { %28 = vsyncpa [#allocation5], 0  ;;  %s9860_s18 = smov [#allocation6]   ;;  %s9861_s20 = smov [#allocation9]  }
   0x8   :  { %s51_s19 = sshll.u32 %s9860_s18, 4  ;;  %s73_s21 = sshll.u32 %s9861_s20, 4  ;;  %s52_s19 = int_to_ptr.vmem [resolvable:$true] %s51_s19  ;;  %s74_s21 = int_to_ptr.vmem [resolvable:$true] %s73_s21 }
   0x9   :  { %s9592_s22 = scalar_lea.vmem %s52_s19, 96  ;;  %p9597_p1 = scmp.lt.s32.totalorder %s52_s19, %s52_s19 }
   0xa   :  { %p9593_p0 = scmp.ne.s32.totalorder %s52_s19, %s9592_s22  ;;  %p9598_p2 = scmp.lt.s32.totalorder %s9592_s22, %s9592_s22 }
   0xc   :  { %p9599_p3 = por %p9598_p2, %p9597_p1 }
   0xe   :  { %p9600_p4 = pnand %p9599_p3, %p9593_p0 }
  0x10   :  { %9603 = shalt.err (!%p9600_p4)
}
  0x11   :  { %54 = dma.hbm_to_vmem [thread:$0]  %s10213_s3, 96, %s52_s19, [#allocation7]  }
  0x12   :  { %s9612_s25 = scalar_lea.vmem %s74_s21, 96  ;;  %p9617_p6 = scmp.lt.s32.totalorder %s74_s21, %s74_s21 }
  0x13   :  { %p9613_p5 = scmp.ne.s32.totalorder %s74_s21, %s9612_s25  ;;  %p9618_p7 = scmp.lt.s32.totalorder %s9612_s25, %s9612_s25 }
  0x15   :  { %p9619_p8 = por %p9618_p7, %p9617_p6 }
  0x17   :  { %p9620_p9 = pnand %p9619_p8, %p9613_p5 }
  0x19   :  { %9623 = shalt.err (!%p9620_p9)
}
  0x1a   :  { %76 = dma.hbm_to_vmem [thread:$0]  %s10215_s5, 96, %s74_s21, [#allocation10]  }
  0x1b   :  { %s9862_s28 = smov [#allocation12]   ;;  %s9863_s30 = smov [#allocation15]  }
  0x1c   :  { %s95_s29 = sshll.u32 %s9862_s28, 4  ;;  %s117_s16 = sshll.u32 %s9863_s30, 4  ;;  %s96_s29 = int_to_ptr.vmem [resolvable:$true] %s95_s29  ;;  %s118_s16 = int_to_ptr.vmem [resolvable:$true] %s117_s16 }
  0x1d   :  { %s9632_s17 = scalar_lea.vmem %s96_s29, 32  ;;  %p9637_p11 = scmp.lt.s32.totalorder %s96_s29, %s96_s29 }
  0x1e   :  { %p9633_p10 = scmp.ne.s32.totalorder %s96_s29, %s9632_s17  ;;  %p9638_p12 = scmp.lt.s32.totalorder %s9632_s17, %s9632_s17 }
  0x20   :  { %p9639_p13 = por %p9638_p12, %p9637_p11 }
  0x22   :  { %p9640_p0 = pnand %p9639_p13, %p9633_p10 }
  0x24   :  { %9643 = shalt.err (!%p9640_p0)
}
  0x25   :  { %98 = dma.hbm_to_vmem [thread:$0]  %s10217_s7, 32, %s96_s29, [#allocation13]  }
  0x26   :  { %s9652_s19 = scalar_lea.vmem %s118_s16, 96  ;;  %p9657_p2 = scmp.lt.s32.totalorder %s118_s16, %s118_s16 }
  0x27   :  { %p9653_p1 = scmp.ne.s32.totalorder %s118_s16, %s9652_s19  ;;  %p9658_p3 = scmp.lt.s32.totalorder %s9652_s19, %s9652_s19 }
  0x29   :  { %p9659_p4 = por %p9658_p3, %p9657_p2 }
  0x2b   :  { %p9660_p5 = pnand %p9659_p4, %p9653_p1 }
  0x2d   :  { %9663 = shalt.err (!%p9660_p5)
}
  0x2e   :  { %120 = dma.hbm_to_vmem [thread:$0]  %s10219_s9, 96, %s118_s16, [#allocation16]  }
  0x2f   :  { %s9864_s21 = smov [#allocation18]   ;;  %s9865_s23 = smov [#allocation3]  }
  0x30   :  { %s139_s22 = sshll.u32 %s9864_s21, 4  ;;  %s38_s24 = sshll.u32 %s9865_s23, 4  ;;  %s140_s22 = int_to_ptr.vmem [resolvable:$true] %s139_s22  ;;  %s39_s24 = int_to_ptr.vmem [resolvable:$true] %s38_s24 }
  0x31   :  { %s9672_s25 = scalar_lea.vmem %s140_s22, 96  ;;  %p9677_p7 = scmp.lt.s32.totalorder %s140_s22, %s140_s22 }
  0x32   :  { %p9673_p6 = scmp.ne.s32.totalorder %s140_s22, %s9672_s25  ;;  %p9678_p8 = scmp.lt.s32.totalorder %s9672_s25, %s9672_s25 }
  0x34   :  { %p9679_p9 = por %p9678_p8, %p9677_p7 }
  0x36   :  { %p9680_p10 = pnand %p9679_p9, %p9673_p6 }
  0x38   :  { %9683 = shalt.err (!%p9680_p10)
}
  0x39   :  { %142 = dma.hbm_to_vmem [thread:$0]  %s10221_s11, 96, %s140_s22, [#allocation19]  }
  0x3a   :  { %s9692_s27 = scalar_lea.vmem %s39_s24, 12288  ;;  %p9697_p12 = scmp.lt.s32.totalorder %s39_s24, %s39_s24 }
  0x3b   :  { %p9693_p11 = scmp.ne.s32.totalorder %s39_s24, %s9692_s27  ;;  %p9698_p13 = scmp.lt.s32.totalorder %s9692_s27, %s9692_s27 }
  0x3d   :  { %p9699_p0 = por %p9698_p13, %p9697_p12 }
  0x3f   :  { %p9700_p1 = pnand %p9699_p0, %p9693_p11 }
  0x41   :  { %9703 = shalt.err (!%p9700_p1)
}
  0x42   :  { %s9866_s9 = smov 384   ;;  %s9867_s28 = smov 24  }
  0x43   :  { %44 = dma.hbm_to_vmem [thread:$0]  %s10212_s2, 12288, %s39_s24, [#allocation4], %s9866_s9, %s9866_s9, %s9867_s28  }
  0x44   :  { %s9868_s16 = smov [#allocation8]   ;;  %s9869_s3 = smov [#allocation11]  }
  0x45   :  { %s60_s17 = sshll.u32 %s9868_s16, 4  ;;  %s82_s11 = sshll.u32 %s9869_s3, 4  ;;  %s61_s17 = int_to_ptr.vmem [resolvable:$true] %s60_s17  ;;  %s83_s11 = int_to_ptr.vmem [resolvable:$true] %s82_s11 }
  0x46   :  { %s9712_s18 = scalar_lea.vmem %s61_s17, 36864  ;;  %p9717_p3 = scmp.lt.s32.totalorder %s61_s17, %s61_s17 }
  0x47   :  { %p9713_p2 = scmp.ne.s32.totalorder %s61_s17, %s9712_s18  ;;  %p9718_p4 = scmp.lt.s32.totalorder %s9712_s18, %s9712_s18 }
  0x49   :  { %p9719_p5 = por %p9718_p4, %p9717_p3 }
  0x4b   :  { %p9720_p6 = pnand %p9719_p5, %p9713_p2 }
  0x4d   :  { %9723 = shalt.err (!%p9720_p6)
}
  0x4e   :  { %66 = dma.hbm_to_vmem [thread:$0]  %s10214_s4, 36864, %s61_s17, [#allocation7], %s9866_s9, %s9866_s9, %s9867_s28  }
  0x4f   :  { %s9732_s2 = scalar_lea.vmem %s83_s11, 12288  ;;  %p9737_p8 = scmp.lt.s32.totalorder %s83_s11, %s83_s11 }
  0x50   :  { %p9733_p7 = scmp.ne.s32.totalorder %s83_s11, %s9732_s2  ;;  %p9738_p9 = scmp.lt.s32.totalorder %s9732_s2, %s9732_s2 }
  0x52   :  { %p9739_p10 = por %p9738_p9, %p9737_p8 }
  0x54   :  { %p9740_p11 = pnand %p9739_p10, %p9733_p7 }
  0x56   :  { %9743 = shalt.err (!%p9740_p11)
}
  0x57   :  { %s9870_s20 = smov 128   ;;  %s9871_s21 = smov 8  }
  0x58   :  { %88 = dma.hbm_to_vmem [thread:$0]  %s10216_s6, 12288, %s83_s11, [#allocation10], %s9870_s20, %s9870_s20, %s9871_s21  }
  0x59   :  { %s9872_s24 = smov [#allocation14]   ;;  %s9873_s7 = smov [#allocation17]  }
  0x5a   :  { %s104_s25 = sshll.u32 %s9872_s24, 4  ;;  %s126_s26 = sshll.u32 %s9873_s7, 4  ;;  %s105_s25 = int_to_ptr.vmem [resolvable:$true] %s104_s25  ;;  %s127_s26 = int_to_ptr.vmem [resolvable:$true] %s126_s26 }
  0x5b   :  { %s9752_s4 = scalar_lea.vmem %s105_s25, 12288  ;;  %p9757_p13 = scmp.lt.s32.totalorder %s105_s25, %s105_s25 }
  0x5c   :  { %p9753_p12 = scmp.ne.s32.totalorder %s105_s25, %s9752_s4  ;;  %p9758_p0 = scmp.lt.s32.totalorder %s9752_s4, %s9752_s4 }
  0x5e   :  { %p9759_p1 = por %p9758_p0, %p9757_p13 }
  0x60   :  { %p9760_p2 = pnand %p9759_p1, %p9753_p12 }
  0x62   :  { %9763 = shalt.err (!%p9760_p2)
}
  0x63   :  { %110 = dma.hbm_to_vmem [thread:$0]  %s10218_s8, 12288, %s105_s25, [#allocation13], %s9866_s9, %s9866_s9, %s9867_s28  }
  0x64   :  { %s9772_s6 = scalar_lea.vmem %s127_s26, 36864  ;;  %p9777_p4 = scmp.lt.s32.totalorder %s127_s26, %s127_s26 }
  0x65   :  { %p9773_p3 = scmp.ne.s32.totalorder %s127_s26, %s9772_s6  ;;  %p9778_p5 = scmp.lt.s32.totalorder %s9772_s6, %s9772_s6 }
  0x67   :  { %p9779_p6 = por %p9778_p5, %p9777_p4 }
  0x69   :  { %p9780_p7 = pnand %p9779_p6, %p9773_p3 }
  0x6b   :  { %9783 = shalt.err (!%p9780_p7)
}
  0x6c   :  { %132 = dma.hbm_to_vmem [thread:$0]  %s10220_s10, 36864, %s127_s26, [#allocation16], %s9866_s9, %s9866_s9, %s9867_s28  }
  0x6d   :  { %s9874_s17 = smov [#allocation20]  }
  0x6e   :  { %s148_s3 = sshll.u32 %s9874_s17, 4  ;;  %s149_s3 = int_to_ptr.vmem [resolvable:$true] %s148_s3 }
  0x6f   :  { %s9792_s11 = scalar_lea.vmem %s149_s3, 6144  ;;  %p9797_p9 = scmp.lt.s32.totalorder %s149_s3, %s149_s3 }
  0x70   :  { %p9793_p8 = scmp.ne.s32.totalorder %s149_s3, %s9792_s11  ;;  %p9798_p10 = scmp.lt.s32.totalorder %s9792_s11, %s9792_s11 }
  0x72   :  { %p9799_p11 = por %p9798_p10, %p9797_p9 }
  0x74   :  { %p9800_p12 = pnand %p9799_p11, %p9793_p8 }
  0x76   :  { %9803 = shalt.err (!%p9800_p12)
}
  0x77   :  { %s9875_s8 = smov 64   ;;  %s9876_s18 = smov 4  }
  0x78   :  { %154 = dma.hbm_to_vmem [thread:$0]  %s10222_s12, 6144, %s149_s3, [#allocation19], %s9875_s8, %s9875_s8, %s9876_s18  }
  0x79   :  { %s9877_s2 = smov [#allocation21]  }
  0x7a   :  { %s161_s20 = sshll.u32 %s9877_s2, 4  ;;  %s162_s20 = int_to_ptr.vmem [resolvable:$true] %s161_s20 }
  0x7b   :  { %s9812_s10 = scalar_lea.vmem %s162_s20, 16  ;;  %s9816_s9 = scalar_lea.vmem %s162_s20, 32 }
  0x7c   :  { %p9813_p13 = scmp.ne.s32.totalorder %s162_s20, %s9812_s10  ;;  %p9817_p0 = scmp.lt.s32.totalorder %s162_s20, %s162_s20 }
  0x7d   :  { %p9818_p1 = scmp.lt.s32.totalorder %s9816_s9, %s9812_s10 }
  0x7f   :  { %p9819_p2 = por %p9818_p1, %p9817_p0 }
  0x81   :  { %p9820_p3 = pnand %p9819_p2, %p9813_p13 }
  0x83   :  { %9823 = shalt.err (!%p9820_p3)
}
  0x84   :  { %164 = dma.hbm_to_vmem [thread:$0]  %s10223_s13, 16, %s162_s20, [#allocation22]  }
  0x85   :  { %9844 = dma.done.wait [#allocation4], 12288  }
  0x86   :  { %9845 = vsyncadd [#allocation4], 4294955008 }
  0x87   :  { %9846 = dma.done.wait [#allocation7], 36960  }
  0x88   :  { %9847 = vsyncadd [#allocation7], 4294930336 }
  0x89   :  { %9848 = dma.done.wait [#allocation10], 12384  }
  0x8a   :  { %9849 = vsyncadd [#allocation10], 4294954912 }
  0x8b   :  { %9850 = dma.done.wait [#allocation13], 12320  }
  0x8c   :  { %9851 = vsyncadd [#allocation13], 4294954976 }
  0x8d   :  { %9852 = dma.done.wait [#allocation16], 36960  }
  0x8e   :  { %9853 = vsyncadd [#allocation16], 4294930336 }
  0x8f   :  { %9854 = dma.done.wait [#allocation19], 6240  }
  0x90   :  { %9855 = vsyncadd [#allocation19], 4294961056 }
  0x91   :  { %9856 = dma.done.wait [#allocation22], 16  }
  0x92   :  { %9857 = vsyncadd [#allocation22], 4294967280  ;;  %v8236_v0 = vld [vmem:[#allocation3 + $0x154] ss:$24 sps:$4 sm:$0xff]   ;;  %v8240_v2 = vld [vmem:[#allocation3 + $0x150] ss:$24 sps:$4 sm:$0xff]  }
  0x93   :  { %v8238_v1 = vld [vmem:[#allocation3 + $0x15c] ss:$24 sps:$4 sm:$0xff]   ;;  %814 = vmatprep.subr.bf16.mxu0 %v8236_v0  ;;  %v8241_v3 = vld [vmem:[#allocation3 + $0x158] ss:$24 sps:$4 sm:$0xff]   ;;  %v8244_v5 = vld [vmem:[#allocation3 + $0x12c] ss:$24 sps:$4 sm:$0xff]  }
  0x94   :  { %855 = vmatprep.subr.bf16.mxu1 %v8238_v1  ;;  %v8242_v4 = vld [vmem:[#allocation3 + $0x124] ss:$24 sps:$4 sm:$0xff]   ;;  %815 = vmatpush1.bf16.msra.mxu0 %v8240_v2  ;;  %v8246_v6 = vld [vmem:[#allocation3 + $0x120] ss:$24 sps:$4 sm:$0xff]   ;;  %v8248_v8 = vld [vmem:[#allocation3 + $0xf4] ss:$24 sps:$4 sm:$0xff]  }
  0x95   :  { %856 = vmatpush1.bf16.msra.mxu1 %v8241_v3  ;;  %816 = vmatprep.subr.bf16.mxu0 %v8242_v4  ;;  %v8247_v7 = vld [vmem:[#allocation3 + $0x128] ss:$24 sps:$4 sm:$0xff]   ;;  %v8250_v9 = vld [vmem:[#allocation3 + $0xfc] ss:$24 sps:$4 sm:$0xff]   ;;  %v8253_v11 = vld [vmem:[#allocation3 + $0xf8] ss:$24 sps:$4 sm:$0xff]  }
  0x96   :  { %857 = vmatprep.subr.bf16.mxu1 %v8244_v5  ;;  %v8252_v10 = vld [vmem:[#allocation3 + $0xf0] ss:$24 sps:$4 sm:$0xff]   ;;  %v8254_v12 = vld [vmem:[#allocation3 + $0xc4] ss:$24 sps:$4 sm:$0xff]   ;;  %v8258_v14 = vld [vmem:[#allocation3 + $0xc0] ss:$24 sps:$4 sm:$0xff]  }
  0x97   :  { %v8256_v13 = vld [vmem:[#allocation3 + $0xcc] ss:$24 sps:$4 sm:$0xff]   ;;  %v8259_v15 = vld [vmem:[#allocation3 + $0xc8] ss:$24 sps:$4 sm:$0xff]   ;;  %v8262_v17 = vld [vmem:[#allocation3 + $0x9c] ss:$24 sps:$4 sm:$0xff]  }
  0x98   :  { %817 = vmatpush1.bf16.msra.mxu0 %v8246_v6  ;;  %v8260_v16 = vld [vmem:[#allocation3 + $0x94] ss:$24 sps:$4 sm:$0xff]   ;;  %v8264_v18 = vld [vmem:[#allocation3 + $0x90] ss:$24 sps:$4 sm:$0xff]   ;;  %v8266_v20 = vld [vmem:[#allocation3 + $0x64] ss:$24 sps:$4 sm:$0xff]  }
  0x99   :  { %858 = vmatpush1.bf16.msra.mxu1 %v8247_v7  ;;  %818 = vmatprep.subr.bf16.mxu0 %v8248_v8  ;;  %v8265_v19 = vld [vmem:[#allocation3 + $0x98] ss:$24 sps:$4 sm:$0xff]   ;;  %v8268_v21 = vld [vmem:[#allocation3 + $0x6c] ss:$24 sps:$4 sm:$0xff]   ;;  %v8271_v23 = vld [vmem:[#allocation3 + $0x68] ss:$24 sps:$4 sm:$0xff]  }
  0x9a   :  { %859 = vmatprep.subr.bf16.mxu1 %v8250_v9  ;;  %v8270_v22 = vld [vmem:[#allocation3 + $0x60] ss:$24 sps:$4 sm:$0xff]   ;;  %v8272_v24 = vld [vmem:[#allocation3 + $0x34] ss:$24 sps:$4 sm:$0xff]   ;;  %v8276_v26 = vld [vmem:[#allocation3 + $0x30] ss:$24 sps:$4 sm:$0xff]  }
  0x9b   :  { %v8274_v25 = vld [vmem:[#allocation3 + $0x3c] ss:$24 sps:$4 sm:$0xff]   ;;  %v8277_v27 = vld [vmem:[#allocation3 + $0x38] ss:$24 sps:$4 sm:$0xff]   ;;  %v8280_v29 = vld [vmem:[#allocation3 + $0xc] ss:$24 sps:$4 sm:$0xff]  }
  0x9c   :  { %819 = vmatpush1.bf16.msra.mxu0 %v8252_v10  ;;  %v8278_v28 = vld [vmem:[#allocation3 + $0x4] ss:$24 sps:$4 sm:$0xff]   ;;  %v8282_v30 = vld [vmem:[#allocation3] ss:$24 sps:$4 sm:$0xff]   ;;  %v8284_v32 = vld [vmem:[#allocation3 + $0x2d4] ss:$24 sps:$4 sm:$0xff]  }
  0x9d   :  { %860 = vmatpush1.bf16.msra.mxu1 %v8253_v11  ;;  %820 = vmatprep.subr.bf16.mxu0 %v8254_v12  ;;  %v8283_v31 = vld [vmem:[#allocation3 + $0x8] ss:$24 sps:$4 sm:$0xff]   ;;  %v8286_v33 = vld [vmem:[#allocation3 + $0x2dc] ss:$24 sps:$4 sm:$0xff]   ;;  %v8289_v35 = vld [vmem:[#allocation3 + $0x2d8] ss:$24 sps:$4 sm:$0xff]  }
  0x9e   :  { %861 = vmatprep.subr.bf16.mxu1 %v8256_v13  ;;  %v8288_v34 = vld [vmem:[#allocation3 + $0x2d0] ss:$24 sps:$4 sm:$0xff]   ;;  %v8290_v36 = vld [vmem:[#allocation3 + $0x2a4] ss:$24 sps:$4 sm:$0xff]   ;;  %v8294_v38 = vld [vmem:[#allocation3 + $0x2a0] ss:$24 sps:$4 sm:$0xff]  }
  0x9f   :  { %v8292_v37 = vld [vmem:[#allocation3 + $0x2ac] ss:$24 sps:$4 sm:$0xff]   ;;  %v8295_v39 = vld [vmem:[#allocation3 + $0x2a8] ss:$24 sps:$4 sm:$0xff]   ;;  %v8298_v41 = vld [vmem:[#allocation3 + $0x27c] ss:$24 sps:$4 sm:$0xff]  }
  0xa0   :  { %821 = vmatpush1.bf16.msra.mxu0 %v8258_v14  ;;  %v8296_v40 = vld [vmem:[#allocation3 + $0x274] ss:$24 sps:$4 sm:$0xff]   ;;  %v8300_v42 = vld [vmem:[#allocation3 + $0x270] ss:$24 sps:$4 sm:$0xff]   ;;  %v8302_v44 = vld [vmem:[#allocation3 + $0x244] ss:$24 sps:$4 sm:$0xff]  }
  0xa1   :  { %862 = vmatpush1.bf16.msra.mxu1 %v8259_v15  ;;  %822 = vmatprep.subr.bf16.mxu0 %v8260_v16  ;;  %v8301_v43 = vld [vmem:[#allocation3 + $0x278] ss:$24 sps:$4 sm:$0xff]   ;;  %v8304_v45 = vld [vmem:[#allocation3 + $0x24c] ss:$24 sps:$4 sm:$0xff]   ;;  %v8307_v49 = vld [vmem:[#allocation3 + $0x248] ss:$24 sps:$4 sm:$0xff]  }
  0xa2   :  { %863 = vmatprep.subr.bf16.mxu1 %v8262_v17  ;;  %v203_v46 = vld [vmem:[%s10210_s0 + $0x8] sm:$0xff]  ;;  %v8306_v48 = vld [vmem:[#allocation3 + $0x240] ss:$24 sps:$4 sm:$0xff]   ;;  %v8310_v51 = vld [vmem:[#allocation3 + $0x21c] ss:$24 sps:$4 sm:$0xff]  }
  0xa3   :  { %v205_v47 = vpack.c.bf16 %v203_v46, %v203_v46  ;;  %v8308_v50 = vld [vmem:[#allocation3 + $0x214] ss:$24 sps:$4 sm:$0xff]   ;;  %v8312_v52 = vld [vmem:[#allocation3 + $0x210] ss:$24 sps:$4 sm:$0xff]   ;;  %v8314_v54 = vld [vmem:[#allocation3 + $0x1e4] ss:$24 sps:$4 sm:$0xff]  }
  0xa4   :  { %823 = vmatpush1.bf16.msra.mxu0 %v8264_v18  ;;  %v8313_v53 = vld [vmem:[#allocation3 + $0x218] ss:$24 sps:$4 sm:$0xff]   ;;  %v8316_v55 = vld [vmem:[#allocation3 + $0x1ec] ss:$24 sps:$4 sm:$0xff]   ;;  %v8319_v57 = vld [vmem:[#allocation3 + $0x1e8] ss:$24 sps:$4 sm:$0xff]  }
  0xa5   :  { %864 = vmatpush1.bf16.msra.mxu1 %v8265_v19  ;;  %824 = vmatprep.subr.bf16.mxu0 %v8266_v20  ;;  %v8318_v56 = vld [vmem:[#allocation3 + $0x1e0] ss:$24 sps:$4 sm:$0xff]   ;;  %v8320_v58 = vld [vmem:[#allocation3 + $0x1b4] ss:$24 sps:$4 sm:$0xff]   ;;  %v8324_v60 = vld [vmem:[#allocation3 + $0x1b0] ss:$24 sps:$4 sm:$0xff]  }
  0xa6   :  { %865 = vmatprep.subr.bf16.mxu1 %v8268_v21  ;;  %846 = vmatprep.mubr.bf16.mxu0 %v205_v47  ;;  %v8322_v59 = vld [vmem:[#allocation3 + $0x1bc] ss:$24 sps:$4 sm:$0xff]   ;;  %v8325_v61 = vld [vmem:[#allocation3 + $0x1b8] ss:$24 sps:$4 sm:$0xff]   ;;  %v8328_v63 = vld [vmem:[#allocation3 + $0x18c] ss:$24 sps:$4 sm:$0xff]  }
  0xa7   :  { %887 = vmatprep.mubr.bf16.mxu1 %v205_v47  ;;  %v8326_v62 = vld [vmem:[#allocation3 + $0x184] ss:$24 sps:$4 sm:$0xff]   ;;  %v8330_v0 = vld [vmem:[#allocation3 + $0x180] ss:$24 sps:$4 sm:$0xff]   ;;  %v8337_v6 = vld [vmem:[#allocation3 + $0x134] ss:$24 sps:$4 sm:$0xff]  }
  0xa8   :  { %825 = vmatpush1.bf16.msra.mxu0 %v8270_v22  ;;  %v8331_v1 = vld [vmem:[#allocation3 + $0x188] ss:$24 sps:$4 sm:$0xff]   ;;  %v8334_v3 = vld [vmem:[#allocation3 + $0x164] ss:$24 sps:$4 sm:$0xff]   ;;  %v8380_v8 = vld [vmem:[#allocation8 + $0x150] ss:$24 sps:$4 sm:$0xff]  }
  0xa9   :  { %866 = vmatpush1.bf16.msra.mxu1 %v8271_v23  ;;  %826 = vmatprep.subr.bf16.mxu0 %v8272_v24  ;;  %v202_v2 = vld [vmem:[%s10210_s0] sm:$0xff]  ;;  %v8382_v7 = vld [vmem:[#allocation8 + $0x154] ss:$24 sps:$4 sm:$0xff]   ;;  %v8392_v16 = vld [vmem:[#allocation8 + $0xf0] ss:$24 sps:$4 sm:$0xff]  }
  0xaa   :  { %867 = vmatprep.subr.bf16.mxu1 %v8274_v25  ;;  %v10013_v4 = vpack.c.bf16 %v202_v2, %v202_v2  ;;  %v8332_v5 = vld [vmem:[#allocation3 + $0x160] ss:$24 sps:$4 sm:$0xff]   ;;  %v8335_v9 = vld [vmem:[#allocation3 + $0x130] ss:$24 sps:$4 sm:$0xff]   ;;  %v8340_v11 = vld [vmem:[#allocation3 + $0x104] ss:$24 sps:$4 sm:$0xff]  }
  0xab   :  { %v8388_v10 = vld [vmem:[#allocation8 + $0x124] ss:$24 sps:$4 sm:$0xff]   ;;  %v8386_v12 = vld [vmem:[#allocation8 + $0x120] ss:$24 sps:$4 sm:$0xff]   ;;  %v8394_v13 = vld [vmem:[#allocation8 + $0xf4] ss:$24 sps:$4 sm:$0xff]  }
  0xac   :  { %827 = vmatpush1.bf16.msra.mxu0 %v8276_v26  ;;  %v8338_v14 = vld [vmem:[#allocation3 + $0x100] ss:$24 sps:$4 sm:$0xff]   ;;  %v8343_v15 = vld [vmem:[#allocation3 + $0xd4] ss:$24 sps:$4 sm:$0xff]   ;;  %v8341_v18 = vld [vmem:[#allocation3 + $0xd0] ss:$24 sps:$4 sm:$0xff]  }
  0xad   :  { %868 = vmatpush1.bf16.msra.mxu1 %v8277_v27  ;;  %828 = vmatprep.subr.bf16.mxu0 %v8278_v28  ;;  %v8400_v17 = vld [vmem:[#allocation8 + $0xc4] ss:$24 sps:$4 sm:$0xff]   ;;  %v8398_v20 = vld [vmem:[#allocation8 + $0xc0] ss:$24 sps:$4 sm:$0xff]   ;;  %v8406_v21 = vld [vmem:[#allocation8 + $0x94] ss:$24 sps:$4 sm:$0xff]  }
  0xae   :  { %869 = vmatprep.subr.bf16.mxu1 %v8280_v29  ;;  %v8346_v19 = vld [vmem:[#allocation3 + $0xa4] ss:$24 sps:$4 sm:$0xff]   ;;  %v8344_v22 = vld [vmem:[#allocation3 + $0xa0] ss:$24 sps:$4 sm:$0xff]   ;;  %v8349_v23 = vld [vmem:[#allocation3 + $0x74] ss:$24 sps:$4 sm:$0xff]  }
  0xaf   :  { %v8404_v24 = vld [vmem:[#allocation8 + $0x90] ss:$24 sps:$4 sm:$0xff]   ;;  %v8412_v25 = vld [vmem:[#allocation8 + $0x64] ss:$24 sps:$4 sm:$0xff]   ;;  %v8410_v28 = vld [vmem:[#allocation8 + $0x60] ss:$24 sps:$4 sm:$0xff]  }
  0xb0   :  { %829 = vmatpush1.bf16.msra.mxu0 %v8282_v30  ;;  %v8347_v26 = vld [vmem:[#allocation3 + $0x70] ss:$24 sps:$4 sm:$0xff]   ;;  %v8352_v27 = vld [vmem:[#allocation3 + $0x44] ss:$24 sps:$4 sm:$0xff]   ;;  %v8350_v30 = vld [vmem:[#allocation3 + $0x40] ss:$24 sps:$4 sm:$0xff]  }
  0xb1   :  { %870 = vmatpush1.bf16.msra.mxu1 %v8283_v31  ;;  %830 = vmatprep.subr.bf16.mxu0 %v8284_v32  ;;  %v8418_v29 = vld [vmem:[#allocation8 + $0x34] ss:$24 sps:$4 sm:$0xff]   ;;  %v8416_v32 = vld [vmem:[#allocation8 + $0x30] ss:$24 sps:$4 sm:$0xff]   ;;  %v8391_v2 = vld [vmem:[#allocation8 + $0x424] ss:$24 sps:$4 sm:$0xff]  }
  0xb2   :  { %871 = vmatprep.subr.bf16.mxu1 %v8286_v33  ;;  %v8355_v31 = vld [vmem:[#allocation3 + $0x14] ss:$24 sps:$4 sm:$0xff]  }
  0xb3   :  { %v8424_v33 = vld [vmem:[#allocation8 + $0x4] ss:$24 sps:$4 sm:$0xff]   ;;  %v8442_v46 = vld [vmem:[#allocation8 + $0x274] ss:$24 sps:$4 sm:$0xff]  }
  0xb4   :  { %831 = vmatpush2.bf16.msra.mxu0 %v8288_v34  ;;  %v8353_v34 = vld [vmem:[#allocation3 + $0x10] ss:$24 sps:$4 sm:$0xff]  }
  0xb5   :  { %872 = vmatpush2.bf16.msra.mxu1 %v8289_v35  ;;  %832 = vmatprep.subr.bf16.mxu0 %v8290_v36  ;;  %v8358_v35 = vld [vmem:[#allocation3 + $0x2e4] ss:$24 sps:$4 sm:$0xff]  }
  0xb6   :  { %873 = vmatprep.subr.bf16.mxu1 %v8292_v37  ;;  %v8422_v36 = vld [vmem:[#allocation8] ss:$24 sps:$4 sm:$0xff]   ;;  %v8430_v37 = vld [vmem:[#allocation8 + $0x2d4] ss:$24 sps:$4 sm:$0xff]  }
  0xb8   :  { %833 = vmatpush2.bf16.msra.mxu0 %v8294_v38  ;;  %v8356_v38 = vld [vmem:[#allocation3 + $0x2e0] ss:$24 sps:$4 sm:$0xff]  }
  0xb9   :  { %874 = vmatpush2.bf16.msra.mxu1 %v8295_v39  ;;  %834 = vmatprep.subr.bf16.mxu0 %v8296_v40  ;;  %v8361_v39 = vld [vmem:[#allocation3 + $0x2b4] ss:$24 sps:$4 sm:$0xff]  }
  0xba   :  { %875 = vmatprep.subr.bf16.mxu1 %v8298_v41  ;;  %v8428_v40 = vld [vmem:[#allocation8 + $0x2d0] ss:$24 sps:$4 sm:$0xff]   ;;  %v8436_v41 = vld [vmem:[#allocation8 + $0x2a4] ss:$24 sps:$4 sm:$0xff]  }
  0xbc   :  { %835 = vmatpush2.bf16.msra.mxu0 %v8300_v42  ;;  %v8359_v42 = vld [vmem:[#allocation3 + $0x2b0] ss:$24 sps:$4 sm:$0xff]  }
  0xbd   :  { %876 = vmatpush2.bf16.msra.mxu1 %v8301_v43  ;;  %836 = vmatprep.subr.bf16.mxu0 %v8302_v44  ;;  %v8364_v43 = vld [vmem:[#allocation3 + $0x284] ss:$24 sps:$4 sm:$0xff]  }
  0xbe   :  { %877 = vmatprep.subr.bf16.mxu1 %v8304_v45  ;;  %v8434_v44 = vld [vmem:[#allocation8 + $0x2a0] ss:$24 sps:$4 sm:$0xff]  }
  0xbf   :  { %v8362_v45 = vld [vmem:[#allocation3 + $0x280] ss:$24 sps:$4 sm:$0xff]  }
  0xc0   :  { %837 = vmatpush2.bf16.msra.mxu0 %v8306_v48  ;;  %v8440_v48 = vld [vmem:[#allocation8 + $0x270] ss:$24 sps:$4 sm:$0xff]  }
  0xc1   :  { %878 = vmatpush2.bf16.msra.mxu1 %v8307_v49  ;;  %838 = vmatprep.subr.bf16.mxu0 %v8308_v50  ;;  %v8448_v49 = vld [vmem:[#allocation8 + $0x244] ss:$24 sps:$4 sm:$0xff]  }
  0xc2   :  { %879 = vmatprep.subr.bf16.mxu1 %v8310_v51  ;;  %v8365_v50 = vld [vmem:[#allocation3 + $0x250] ss:$24 sps:$4 sm:$0xff]   ;;  %v8370_v51 = vld [vmem:[#allocation3 + $0x224] ss:$24 sps:$4 sm:$0xff]  }
  0xc4   :  { %839 = vmatpush2.bf16.msra.mxu0 %v8312_v52  ;;  %v8446_v52 = vld [vmem:[#allocation8 + $0x240] ss:$24 sps:$4 sm:$0xff]  }
  0xc5   :  { %880 = vmatpush2.bf16.msra.mxu1 %v8313_v53  ;;  %840 = vmatprep.subr.bf16.mxu0 %v8314_v54  ;;  %v8454_v53 = vld [vmem:[#allocation8 + $0x214] ss:$24 sps:$4 sm:$0xff]  }
  0xc6   :  { %881 = vmatprep.subr.bf16.mxu1 %v8316_v55  ;;  %v8368_v54 = vld [vmem:[#allocation3 + $0x220] ss:$24 sps:$4 sm:$0xff]   ;;  %v8373_v55 = vld [vmem:[#allocation3 + $0x1f4] ss:$24 sps:$4 sm:$0xff]  }
  0xc8   :  { %841 = vmatpush2.bf16.msra.mxu0 %v8318_v56  ;;  %v8452_v56 = vld [vmem:[#allocation8 + $0x210] ss:$24 sps:$4 sm:$0xff]  }
  0xc9   :  { %882 = vmatpush2.bf16.msra.mxu1 %v8319_v57  ;;  %842 = vmatprep.subr.bf16.mxu0 %v8320_v58  ;;  %v8460_v57 = vld [vmem:[#allocation8 + $0x1e4] ss:$24 sps:$4 sm:$0xff]  }
  0xca   :  { %883 = vmatprep.subr.bf16.mxu1 %v8322_v59  ;;  %v8371_v58 = vld [vmem:[#allocation3 + $0x1f0] ss:$24 sps:$4 sm:$0xff]   ;;  %v8376_v59 = vld [vmem:[#allocation3 + $0x1c4] ss:$24 sps:$4 sm:$0xff]  }
  0xcc   :  { %843 = vmatpush2.bf16.msra.mxu0 %v8324_v60  ;;  %v8458_v60 = vld [vmem:[#allocation8 + $0x1e0] ss:$24 sps:$4 sm:$0xff]  }
  0xcd   :  { %884 = vmatpush2.bf16.msra.mxu1 %v8325_v61  ;;  %844 = vmatprep.subr.bf16.mxu0 %v8326_v62  ;;  %v8374_v61 = vld [vmem:[#allocation3 + $0x1c0] ss:$24 sps:$4 sm:$0xff]   ;;  %v8379_v62 = vld [vmem:[#allocation3 + $0x194] ss:$24 sps:$4 sm:$0xff]  }
  0xce   :  { %885 = vmatprep.subr.bf16.mxu1 %v8328_v63  ;;  %v8377_v63 = vld [vmem:[#allocation3 + $0x190] ss:$24 sps:$4 sm:$0xff]  }
  0xd0   :  { %845 = vmatpush2.bf16.msra.mxu0 %v8330_v0  ;;  %v8385_v0 = vld [vmem:[#allocation8 + $0x454] ss:$24 sps:$4 sm:$0xff]  }
  0xd1   :  { %886 = vmatpush2.bf16.msra.mxu1 %v8331_v1  ;;  %896 = vmatprep.subr.bf16.mxu0 %v8334_v3  ;;  %v8383_v1 = vld [vmem:[#allocation8 + $0x450] ss:$24 sps:$4 sm:$0xff]   ;;  %v8389_v3 = vld [vmem:[#allocation8 + $0x420] ss:$24 sps:$4 sm:$0xff]  }
  0xd2   :  { %2709 = vmatprep.subr.bf16.mxu1 %v8382_v7  ;;  %v8464_v7 = vld [vmem:[#allocation8 + $0x1b0] ss:$24 sps:$4 sm:$0xff]  }
  0xd3   :  { %847 = vmatmul.mubr.bf16.vlgmr.msra.gmra.mxu0 %v10013_v4 }
  0xd4   :  { %888 = vmatmul.mubr.bf16.vlgmr.msra.gmra.mxu1 %v10013_v4  ;;  %897 = vmatpush1.bf16.msra.mxu0 %v8332_v5  ;;  %v8466_v5 = vld [vmem:[#allocation8 + $0x1b4] ss:$24 sps:$4 sm:$0xff]  }
  0xd5   :  { %928 = vmatprep.mubr.bf16.mxu0 %v205_v47  ;;  %898 = vmatprep.subr.bf16.mxu0 %v8337_v6  ;;  %v8367_v47 = vld [vmem:[#allocation3 + $0x254] ss:$24 sps:$4 sm:$0xff]  }
  0xd6   :  { %2710 = vmatpush1.bf16.msra.mxu1 %v8380_v8  ;;  %v8397_v6 = vld [vmem:[#allocation8 + $0x3f4] ss:$24 sps:$4 sm:$0xff]   ;;  %v8395_v8 = vld [vmem:[#allocation8 + $0x3f0] ss:$24 sps:$4 sm:$0xff]  }
  0xd7   :  { %2711 = vmatprep.subr.bf16.mxu1 %v8388_v10  ;;  %v8403_v10 = vld [vmem:[#allocation8 + $0x3c4] ss:$24 sps:$4 sm:$0xff]  }
  0xd8   :  { %899 = vmatpush1.bf16.msra.mxu0 %v8335_v9  ;;  %v8472_v9 = vld [vmem:[#allocation8 + $0x184] ss:$24 sps:$4 sm:$0xff]  }
  0xd9   :  { %900 = vmatprep.subr.bf16.mxu0 %v8340_v11  ;;  %v8470_v11 = vld [vmem:[#allocation8 + $0x180] ss:$24 sps:$4 sm:$0xff]  }
  0xda   :  { %2712 = vmatpush1.bf16.msra.mxu1 %v8386_v12  ;;  %v8478_v12 = vld [vmem:[#allocation8 + $0x754] ss:$24 sps:$4 sm:$0xff]  }
  0xdb   :  { %2713 = vmatprep.subr.bf16.mxu1 %v8394_v13  ;;  %v8401_v13 = vld [vmem:[#allocation8 + $0x3c0] ss:$24 sps:$4 sm:$0xff]  }
  0xdc   :  { %901 = vmatpush1.bf16.msra.mxu0 %v8338_v14  ;;  %v8409_v14 = vld [vmem:[#allocation8 + $0x394] ss:$24 sps:$4 sm:$0xff]  }
  0xdd   :  { %902 = vmatprep.subr.bf16.mxu0 %v8343_v15  ;;  %v8407_v15 = vld [vmem:[#allocation8 + $0x390] ss:$24 sps:$4 sm:$0xff]  }
  0xde   :  { %2714 = vmatpush1.bf16.msra.mxu1 %v8392_v16  ;;  %v8415_v16 = vld [vmem:[#allocation8 + $0x364] ss:$24 sps:$4 sm:$0xff]  }
  0xdf   :  { %2715 = vmatprep.subr.bf16.mxu1 %v8400_v17  ;;  %v8413_v17 = vld [vmem:[#allocation8 + $0x360] ss:$24 sps:$4 sm:$0xff]  }
  0xe0   :  { %903 = vmatpush1.bf16.msra.mxu0 %v8341_v18  ;;  %v8421_v18 = vld [vmem:[#allocation8 + $0x334] ss:$24 sps:$4 sm:$0xff]  }
  0xe1   :  { %904 = vmatprep.subr.bf16.mxu0 %v8346_v19  ;;  %v8419_v19 = vld [vmem:[#allocation8 + $0x330] ss:$24 sps:$4 sm:$0xff]  }
  0xe2   :  { %2716 = vmatpush1.bf16.msra.mxu1 %v8398_v20  ;;  %v8427_v20 = vld [vmem:[#allocation8 + $0x304] ss:$24 sps:$4 sm:$0xff]  }
  0xe3   :  { %2717 = vmatprep.subr.bf16.mxu1 %v8406_v21  ;;  %v8425_v21 = vld [vmem:[#allocation8 + $0x300] ss:$24 sps:$4 sm:$0xff]  }
  0xe4   :  { %905 = vmatpush1.bf16.msra.mxu0 %v8344_v22  ;;  %v8433_v22 = vld [vmem:[#allocation8 + $0x5d4] ss:$24 sps:$4 sm:$0xff]  }
  0xe5   :  { %906 = vmatprep.subr.bf16.mxu0 %v8349_v23  ;;  %v8431_v23 = vld [vmem:[#allocation8 + $0x5d0] ss:$24 sps:$4 sm:$0xff]  }
  0xe6   :  { %2718 = vmatpush1.bf16.msra.mxu1 %v8404_v24  ;;  %v8439_v24 = vld [vmem:[#allocation8 + $0x5a4] ss:$24 sps:$4 sm:$0xff]  }
  0xe7   :  { %2719 = vmatprep.subr.bf16.mxu1 %v8412_v25  ;;  %v8437_v25 = vld [vmem:[#allocation8 + $0x5a0] ss:$24 sps:$4 sm:$0xff]  }
  0xe8   :  { %907 = vmatpush1.bf16.msra.mxu0 %v8347_v26  ;;  %v8445_v26 = vld [vmem:[#allocation8 + $0x574] ss:$24 sps:$4 sm:$0xff]  }
  0xe9   :  { %908 = vmatprep.subr.bf16.mxu0 %v8352_v27  ;;  %v8443_v27 = vld [vmem:[#allocation8 + $0x570] ss:$24 sps:$4 sm:$0xff]  }
  0xea   :  { %2720 = vmatpush1.bf16.msra.mxu1 %v8410_v28  ;;  %v8451_v28 = vld [vmem:[#allocation8 + $0x544] ss:$24 sps:$4 sm:$0xff]  }
  0xeb   :  { %2721 = vmatprep.subr.bf16.mxu1 %v8418_v29  ;;  %v8449_v29 = vld [vmem:[#allocation8 + $0x540] ss:$24 sps:$4 sm:$0xff]  }
  0xec   :  { %909 = vmatpush1.bf16.msra.mxu0 %v8350_v30  ;;  %v8457_v30 = vld [vmem:[#allocation8 + $0x514] ss:$24 sps:$4 sm:$0xff]  }
  0xed   :  { %910 = vmatprep.subr.bf16.mxu0 %v8355_v31  ;;  %v8455_v31 = vld [vmem:[#allocation8 + $0x510] ss:$24 sps:$4 sm:$0xff]  }
  0xee   :  { %2722 = vmatpush1.bf16.msra.mxu1 %v8416_v32  ;;  %v8463_v32 = vld [vmem:[#allocation8 + $0x4e4] ss:$24 sps:$4 sm:$0xff]  }
  0xef   :  { %2723 = vmatprep.subr.bf16.mxu1 %v8424_v33  ;;  %v8461_v33 = vld [vmem:[#allocation8 + $0x4e0] ss:$24 sps:$4 sm:$0xff]  }
  0xf0   :  { %911 = vmatpush1.bf16.msra.mxu0 %v8353_v34  ;;  %v8469_v34 = vld [vmem:[#allocation8 + $0x4b4] ss:$24 sps:$4 sm:$0xff]  }
  0xf1   :  { %912 = vmatprep.subr.bf16.mxu0 %v8358_v35  ;;  %v8467_v35 = vld [vmem:[#allocation8 + $0x4b0] ss:$24 sps:$4 sm:$0xff]  }
  0xf2   :  { %2724 = vmatpush1.bf16.msra.mxu1 %v8422_v36  ;;  %v8475_v36 = vld [vmem:[#allocation8 + $0x484] ss:$24 sps:$4 sm:$0xff]  }
  0xf3   :  { %2725 = vmatprep.subr.bf16.mxu1 %v8430_v37  ;;  %v8473_v37 = vld [vmem:[#allocation8 + $0x480] ss:$24 sps:$4 sm:$0xff]  }
  0xf4   :  { %913 = vmatpush2.bf16.msra.mxu0 %v8356_v38  ;;  %v8481_v38 = vld [vmem:[#allocation8 + $0x15c] ss:$24 sps:$4 sm:$0xff]  }
  0xf5   :  { %914 = vmatprep.subr.bf16.mxu0 %v8361_v39  ;;  %v304_v39 = vlaneseq }
  0xf6   :  { %2726 = vmatpush2.bf16.msra.mxu1 %v8428_v40 }
  0xf7   :  { %2727 = vmatprep.subr.bf16.mxu1 %v8436_v41  ;;  %v10018_v40 = vshrl.u32 %v304_v39, 7  ;;  %v10020_v41 = vld [vmem:[#allocation6] sm:$0x3f]  ;;  %v8524_v39 = vld [vmem:[#allocation8 + $0x8d0] ss:$24 sps:$4 sm:$0xff]  }
  0xf8   :  { %915 = vmatpush2.bf16.msra.mxu0 %v8359_v42 }
  0xf9   :  { %916 = vmatprep.subr.bf16.mxu0 %v8364_v43  ;;  %v10023_v42 = vsub.s32 0, %v10018_v40  ;;  %v10026_v43 = vsub.s32 2, %v10018_v40 }
  0xfa   :  { %2728 = vmatpush2.bf16.msra.mxu1 %v8434_v44  ;;  %v10029_v44 = vsub.s32 1, %v10018_v40 }
  0xfb   :  { %2729 = vmatprep.subr.bf16.mxu1 %v8442_v46  ;;  %v307_v46 = vrot.slane %v10020_v41, %v10023_v42 }
  0xfc   :  { %917 = vmatpush2.bf16.msra.mxu0 %v8362_v45  ;;  %v10032_v45 = vsub.s32 3, %v10018_v40 }
  0xfd   :  { %918 = vmatprep.subr.bf16.mxu0 %v8367_v47  ;;  %v315_v47 = vrot.slane %v10020_v41, %v10026_v43 }
  0xfe   :  { %2730 = vmatpush2.bf16.msra.mxu1 %v8440_v48  ;;  %v311_v48 = vrot.slane %v10020_v41, %v10029_v44 }
  0xff   :  { %2731 = vmatprep.subr.bf16.mxu1 %v8448_v49  ;;  %v319_v49 = vrot.slane %v10020_v41, %v10032_v45 }
 0x100   :  { %919 = vmatpush2.bf16.msra.mxu0 %v8365_v50 }
 0x101   :  { %920 = vmatprep.subr.bf16.mxu0 %v8370_v51 }
 0x102   :  { %2732 = vmatpush2.bf16.msra.mxu1 %v8446_v52 }
 0x103   :  { %2733 = vmatprep.subr.bf16.mxu1 %v8454_v53 }
 0x104   :  { %921 = vmatpush2.bf16.msra.mxu0 %v8368_v54 }
 0x105   :  { %922 = vmatprep.subr.bf16.mxu0 %v8373_v55 }
 0x106   :  { %2734 = vmatpush2.bf16.msra.mxu1 %v8452_v56 }
 0x107   :  { %2735 = vmatprep.subr.bf16.mxu1 %v8460_v57 }
 0x108   :  { %923 = vmatpush2.bf16.msra.mxu0 %v8371_v58 }
 0x109   :  { %924 = vmatprep.subr.bf16.mxu0 %v8376_v59 }
 0x10a   :  { %2736 = vmatpush2.bf16.msra.mxu1 %v8458_v60 }
 0x10b   :  { %2737 = vmatprep.subr.bf16.mxu1 %v8466_v5  ;;  %v8484_v5 = vld [vmem:[#allocation8 + $0x724] ss:$24 sps:$4 sm:$0xff]  }
 0x10c   :  { %925 = vmatpush2.bf16.msra.mxu0 %v8374_v61 }
 0x10d   :  { %926 = vmatprep.subr.bf16.mxu0 %v8379_v62 }
 0x10e   :  { %2738 = vmatpush2.bf16.msra.mxu1 %v8464_v7 }
 0x10f   :  { %2739 = vmatprep.subr.bf16.mxu1 %v8472_v9 }
 0x110   :  { %927 = vmatpush2.bf16.msra.mxu0 %v8377_v63 }
 0x111   :  { %2750 = vmatprep.subr.bf16.mxu0 %v8385_v0  ;;  %v8476_v0 = vld [vmem:[#allocation8 + $0x750] ss:$24 sps:$4 sm:$0xff]  }
 0x112   :  { %2740 = vmatpush2.bf16.msra.mxu1 %v8470_v11  ;;  %v8482_v11 = vld [vmem:[#allocation8 + $0x720] ss:$24 sps:$4 sm:$0xff]  }
 0x113   :  { %929 = vmatmul.mubr.bf16.vlgmr.msra.gmra.mxu0 %v10013_v4  ;;  %2791 = vmatprep.subr.bf16.mxu1 %v8478_v12  ;;  %v8485_v12 = vld [vmem:[#allocation8 + $0x128] ss:$24 sps:$4 sm:$0xff]  }
 0x114   :  { %2751 = vmatpush1.bf16.msra.mxu0 %v8383_v1  ;;  %v8479_v1 = vld [vmem:[#allocation8 + $0x158] ss:$24 sps:$4 sm:$0xff]  }
 0x115   :  { %2752 = vmatprep.subr.bf16.mxu0 %v8391_v2 }
 0x118   :  { %2753 = vmatpush1.bf16.msra.mxu0 %v8389_v3 }
 0x119   :  { %2754 = vmatprep.subr.bf16.mxu0 %v8397_v6 }
 0x11c   :  { %2755 = vmatpush1.bf16.msra.mxu0 %v8395_v8 }
 0x11d   :  { %2756 = vmatprep.subr.bf16.mxu0 %v8403_v10  ;;  %v8487_v10 = vld [vmem:[#allocation8 + $0x12c] ss:$24 sps:$4 sm:$0xff]  }
 0x120   :  { %2757 = vmatpush1.bf16.msra.mxu0 %v8401_v13  ;;  %v8490_v13 = vld [vmem:[#allocation8 + $0x6f4] ss:$24 sps:$4 sm:$0xff]  }
 0x121   :  { %2758 = vmatprep.subr.bf16.mxu0 %v8409_v14  ;;  %v8493_v14 = vld [vmem:[#allocation8 + $0xfc] ss:$24 sps:$4 sm:$0xff]  }
 0x124   :  { %2759 = vmatpush1.bf16.msra.mxu0 %v8407_v15  ;;  %v8488_v15 = vld [vmem:[#allocation8 + $0x6f0] ss:$24 sps:$4 sm:$0xff]  }
 0x125   :  { %2760 = vmatprep.subr.bf16.mxu0 %v8415_v16  ;;  %v8491_v16 = vld [vmem:[#allocation8 + $0xf8] ss:$24 sps:$4 sm:$0xff]  }
 0x128   :  { %2761 = vmatpush1.bf16.msra.mxu0 %v8413_v17  ;;  %v8496_v17 = vld [vmem:[#allocation8 + $0x6c4] ss:$24 sps:$4 sm:$0xff]  }
 0x129   :  { %2762 = vmatprep.subr.bf16.mxu0 %v8421_v18  ;;  %v8499_v18 = vld [vmem:[#allocation8 + $0xcc] ss:$24 sps:$4 sm:$0xff]  }
 0x12c   :  { %2763 = vmatpush1.bf16.msra.mxu0 %v8419_v19  ;;  %v8494_v19 = vld [vmem:[#allocation8 + $0x6c0] ss:$24 sps:$4 sm:$0xff]  }
 0x12d   :  { %2764 = vmatprep.subr.bf16.mxu0 %v8427_v20  ;;  %v8497_v20 = vld [vmem:[#allocation8 + $0xc8] ss:$24 sps:$4 sm:$0xff]  }
 0x130   :  { %2765 = vmatpush1.bf16.msra.mxu0 %v8425_v21  ;;  %v8502_v21 = vld [vmem:[#allocation8 + $0x694] ss:$24 sps:$4 sm:$0xff]  }
 0x131   :  { %2766 = vmatprep.subr.bf16.mxu0 %v8433_v22  ;;  %v8505_v22 = vld [vmem:[#allocation8 + $0x9c] ss:$24 sps:$4 sm:$0xff]  }
 0x134   :  { %2767 = vmatpush2.bf16.msra.mxu0 %v8431_v23  ;;  %v8500_v23 = vld [vmem:[#allocation8 + $0x690] ss:$24 sps:$4 sm:$0xff]  }
 0x135   :  { %2768 = vmatprep.subr.bf16.mxu0 %v8439_v24  ;;  %v8503_v24 = vld [vmem:[#allocation8 + $0x98] ss:$24 sps:$4 sm:$0xff]  }
 0x138   :  { %2769 = vmatpush2.bf16.msra.mxu0 %v8437_v25  ;;  %v8508_v25 = vld [vmem:[#allocation8 + $0x664] ss:$24 sps:$4 sm:$0xff]  }
 0x139   :  { %2770 = vmatprep.subr.bf16.mxu0 %v8445_v26  ;;  %v8511_v26 = vld [vmem:[#allocation8 + $0x6c] ss:$24 sps:$4 sm:$0xff]  }
 0x13c   :  { %2771 = vmatpush2.bf16.msra.mxu0 %v8443_v27  ;;  %v8506_v27 = vld [vmem:[#allocation8 + $0x660] ss:$24 sps:$4 sm:$0xff]  }
 0x13d   :  { %2772 = vmatprep.subr.bf16.mxu0 %v8451_v28  ;;  %v8509_v28 = vld [vmem:[#allocation8 + $0x68] ss:$24 sps:$4 sm:$0xff]  }
 0x140   :  { %2773 = vmatpush2.bf16.msra.mxu0 %v8449_v29  ;;  %v8514_v29 = vld [vmem:[#allocation8 + $0x634] ss:$24 sps:$4 sm:$0xff]  }
 0x141   :  { %2774 = vmatprep.subr.bf16.mxu0 %v8457_v30  ;;  %v8517_v30 = vld [vmem:[#allocation8 + $0x3c] ss:$24 sps:$4 sm:$0xff]  }
 0x144   :  { %2775 = vmatpush2.bf16.msra.mxu0 %v8455_v31  ;;  %v8512_v31 = vld [vmem:[#allocation8 + $0x630] ss:$24 sps:$4 sm:$0xff]  }
 0x145   :  { %2776 = vmatprep.subr.bf16.mxu0 %v8463_v32  ;;  %v8515_v32 = vld [vmem:[#allocation8 + $0x38] ss:$24 sps:$4 sm:$0xff]  }
 0x148   :  { %2777 = vmatpush2.bf16.msra.mxu0 %v8461_v33  ;;  %v8520_v33 = vld [vmem:[#allocation8 + $0x604] ss:$24 sps:$4 sm:$0xff]  }
 0x149   :  { %2778 = vmatprep.subr.bf16.mxu0 %v8469_v34  ;;  %v8523_v34 = vld [vmem:[#allocation8 + $0xc] ss:$24 sps:$4 sm:$0xff]  }
 0x14c   :  { %2779 = vmatpush2.bf16.msra.mxu0 %v8467_v35  ;;  %v8518_v35 = vld [vmem:[#allocation8 + $0x600] ss:$24 sps:$4 sm:$0xff]  }
 0x14d   :  { %2780 = vmatprep.subr.bf16.mxu0 %v8475_v36  ;;  %v8521_v36 = vld [vmem:[#allocation8 + $0x8] ss:$24 sps:$4 sm:$0xff]  }
 0x150   :  { %2781 = vmatpush2.bf16.msra.mxu0 %v8473_v37  ;;  %v8526_v37 = vld [vmem:[#allocation8 + $0x8d4] ss:$24 sps:$4 sm:$0xff]  }
 0x151   :  { %2832 = vmatprep.subr.bf16.mxu0 %v8481_v38  ;;  %v8529_v38 = vld [vmem:[#allocation8 + $0x2dc] ss:$24 sps:$4 sm:$0xff]  }
 0x193   :  { %v848_v50 = vpop.f32.mrf.mxu0 }
 0x194   :  { %v889_v51 = vpop.f32.mrf.mxu1  ;;  %v849_v52 = vadd.f32 %v848_v50, %v307_v46  ;;  %v8527_v46 = vld [vmem:[#allocation8 + $0x2d8] ss:$24 sps:$4 sm:$0xff]   ;;  %v8533_v50 = vld [vmem:[#allocation8 + $0x2a8] ss:$24 sps:$4 sm:$0xff]  }
 0x195   :  { %v890_v53 = vadd.f32 %v889_v51, %v315_v47  ;;  %v850_v54 = vpop.f32.mrf.mxu0  ;;  %v8532_v47 = vld [vmem:[#allocation8 + $0x8a4] ss:$24 sps:$4 sm:$0xff]   ;;  %v8538_v51 = vld [vmem:[#allocation8 + $0x874] ss:$24 sps:$4 sm:$0xff]  }
 0x196   :  { %v891_v55 = vpop.f32.mrf.mxu1  ;;  %v851_v57 = vadd.f32 %v850_v54, %v311_v48  ;;  %v937_v59 = vmax.f32 %v849_v52, 0.0  ;;  %v8535_v48 = vld [vmem:[#allocation8 + $0x2ac] ss:$24 sps:$4 sm:$0xff]   ;;  %v8541_v52 = vld [vmem:[#allocation8 + $0x27c] ss:$24 sps:$4 sm:$0xff]  }
 0x197   :  { %v939_v56 = vmax.f32 %v890_v53, 0.0  ;;  %v892_v58 = vadd.f32 %v891_v55, %v319_v49  ;;  %v852_v60 = vpop.f32.mrf.mxu0  ;;  %v8530_v49 = vld [vmem:[#allocation8 + $0x8a0] ss:$24 sps:$4 sm:$0xff]   ;;  %v8536_v53 = vld [vmem:[#allocation8 + $0x870] ss:$24 sps:$4 sm:$0xff]  }
 0x198   :  { %v893_v61 = vpop.f32.mrf.mxu1  ;;  %v938_v62 = vmax.f32 %v851_v57, 0.0  ;;  %v10048_v9 = vpack.c.bf16 %v937_v59, %v937_v59  ;;  %v8539_v54 = vld [vmem:[#allocation8 + $0x278] ss:$24 sps:$4 sm:$0xff]   ;;  %v8544_v55 = vld [vmem:[#allocation8 + $0x844] ss:$24 sps:$4 sm:$0xff]  }
 0x199   :  { %v940_v63 = vmax.f32 %v892_v58, 0.0  ;;  %v10042_v2 = vpack.c.bf16 %v939_v56, %v939_v56  ;;  %v853_v3 = vpop.f32.mrf.mxu0  ;;  %v8547_v56 = vld [vmem:[#allocation8 + $0x24c] ss:$24 sps:$4 sm:$0xff]   ;;  %v8542_v57 = vld [vmem:[#allocation8 + $0x840] ss:$24 sps:$4 sm:$0xff]  }
 0x19a   :  { %v894_v6 = vpop.f32.mrf.mxu1  ;;  %v10044_v7 = vpack.c.bf16 %v938_v62, %v938_v62  ;;  %v8545_v58 = vld [vmem:[#allocation8 + $0x248] ss:$24 sps:$4 sm:$0xff]   ;;  %v8550_v59 = vld [vmem:[#allocation8 + $0x814] ss:$24 sps:$4 sm:$0xff]   ;;  %v8551_v62 = vld [vmem:[#allocation8 + $0x218] ss:$24 sps:$4 sm:$0xff]  }
 0x19b   :  { %v10046_v8 = vpack.c.bf16 %v940_v63, %v940_v63  ;;  %v8553_v60 = vld [vmem:[#allocation8 + $0x21c] ss:$24 sps:$4 sm:$0xff]   ;;  %v8548_v61 = vld [vmem:[#allocation8 + $0x810] ss:$24 sps:$4 sm:$0xff]   ;;  %v10059_v6 = vsub.s32 5, %v10018_v40 }
 0x19c   :  { %2741 = vmatprep.mubr.bf16.mxu1 %v10044_v7  ;;  %v8556_v63 = vld [vmem:[#allocation8 + $0x7e4] ss:$24 sps:$4 sm:$0xff]   ;;  %v8557_v3 = vld [vmem:[#allocation8 + $0x1e8] ss:$24 sps:$4 sm:$0xff]  }
 0x19d   :  { %2782 = vmatprep.mubr.bf16.mxu0 %v10046_v8  ;;  %2742 = vmatmul.mubr.bf16.vlgmr.msra.gmra.mxu1 %v10048_v9 }
 0x19e   :  { %2783 = vmatmul.mubr.bf16.vlgmr.msra.gmra.mxu0 %v10042_v2  ;;  %2792 = vmatpush1.bf16.msra.mxu1 %v8476_v0  ;;  %v8559_v0 = vld [vmem:[#allocation8 + $0x1ec] ss:$24 sps:$4 sm:$0xff]  }
 0x19f   :  { %2833 = vmatpush1.bf16.msra.mxu0 %v8479_v1  ;;  %2864 = vmatprep.mubr.bf16.mxu0 %v10044_v7  ;;  %v8554_v1 = vld [vmem:[#allocation8 + $0x7e0] ss:$24 sps:$4 sm:$0xff]  }
 0x1a0   :  { %2793 = vmatprep.subr.bf16.mxu1 %v8484_v5  ;;  %2834 = vmatprep.subr.bf16.mxu0 %v8487_v10  ;;  %v10056_v5 = vsub.s32 4, %v10018_v40  ;;  %v8562_v10 = vld [vmem:[#allocation8 + $0x7b4] ss:$24 sps:$4 sm:$0xff]  }
 0x1a1   :  { %v8571_v40 = vld [vmem:[#allocation8 + $0x18c] ss:$24 sps:$4 sm:$0xff]  }
 0x1a2   :  { %2794 = vmatpush1.bf16.msra.mxu1 %v8482_v11  ;;  %v8565_v11 = vld [vmem:[#allocation8 + $0x1bc] ss:$24 sps:$4 sm:$0xff]  }
 0x1a3   :  { %2835 = vmatpush1.bf16.msra.mxu0 %v8485_v12  ;;  %2795 = vmatprep.subr.bf16.mxu1 %v8490_v13  ;;  %v323_v12 = vrot.slane %v10020_v41, %v10056_v5  ;;  %v8560_v13 = vld [vmem:[#allocation8 + $0x7b0] ss:$24 sps:$4 sm:$0xff]  }
 0x1a4   :  { %2836 = vmatprep.subr.bf16.mxu0 %v8493_v14  ;;  %v8563_v14 = vld [vmem:[#allocation8 + $0x1b8] ss:$24 sps:$4 sm:$0xff]  }
 0x1a6   :  { %2796 = vmatpush1.bf16.msra.mxu1 %v8488_v15  ;;  %v327_v15 = vrot.slane %v10020_v41, %v10059_v6  ;;  %v8572_v41 = vld [vmem:[#allocation8 + $0x458] ss:$24 sps:$4 sm:$0xff]  }
 0x1a7   :  { %2837 = vmatpush1.bf16.msra.mxu0 %v8491_v16  ;;  %2797 = vmatprep.subr.bf16.mxu1 %v8496_v17  ;;  %v8568_v17 = vld [vmem:[#allocation8 + $0x784] ss:$24 sps:$4 sm:$0xff]  }
 0x1a8   :  { %2838 = vmatprep.subr.bf16.mxu0 %v8499_v18 }
 0x1aa   :  { %2798 = vmatpush1.bf16.msra.mxu1 %v8494_v19  ;;  %v8566_v19 = vld [vmem:[#allocation8 + $0x780] ss:$24 sps:$4 sm:$0xff]  }
 0x1ab   :  { %2839 = vmatpush1.bf16.msra.mxu0 %v8497_v20  ;;  %2799 = vmatprep.subr.bf16.mxu1 %v8502_v21  ;;  %v8569_v20 = vld [vmem:[#allocation8 + $0x188] ss:$24 sps:$4 sm:$0xff]  }
 0x1ac   :  { %2840 = vmatprep.subr.bf16.mxu0 %v8505_v22 }
 0x1ae   :  { %2800 = vmatpush1.bf16.msra.mxu1 %v8500_v23 }
 0x1af   :  { %2841 = vmatpush1.bf16.msra.mxu0 %v8503_v24  ;;  %2801 = vmatprep.subr.bf16.mxu1 %v8508_v25  ;;  %v8574_v25 = vld [vmem:[#allocation8 + $0x45c] ss:$24 sps:$4 sm:$0xff]  }
 0x1b0   :  { %2842 = vmatprep.subr.bf16.mxu0 %v8511_v26  ;;  %v8577_v26 = vld [vmem:[#allocation8 + $0x75c] ss:$24 sps:$4 sm:$0xff]  }
 0x1b2   :  { %2802 = vmatpush1.bf16.msra.mxu1 %v8506_v27 }
 0x1b3   :  { %2843 = vmatpush1.bf16.msra.mxu0 %v8509_v28  ;;  %2803 = vmatprep.subr.bf16.mxu1 %v8514_v29  ;;  %v8575_v28 = vld [vmem:[#allocation8 + $0x758] ss:$24 sps:$4 sm:$0xff]  }
 0x1b4   :  { %2844 = vmatprep.subr.bf16.mxu0 %v8517_v30 }
 0x1b6   :  { %2804 = vmatpush1.bf16.msra.mxu1 %v8512_v31  ;;  %v8580_v31 = vld [vmem:[#allocation8 + $0x42c] ss:$24 sps:$4 sm:$0xff]  }
 0x1b7   :  { %2845 = vmatpush1.bf16.msra.mxu0 %v8515_v32  ;;  %2805 = vmatprep.subr.bf16.mxu1 %v8520_v33  ;;  %v8578_v33 = vld [vmem:[#allocation8 + $0x428] ss:$24 sps:$4 sm:$0xff]  }
 0x1b8   :  { %2846 = vmatprep.subr.bf16.mxu0 %v8523_v34  ;;  %v8581_v34 = vld [vmem:[#allocation8 + $0x728] ss:$24 sps:$4 sm:$0xff]  }
 0x1ba   :  { %2806 = vmatpush1.bf16.msra.mxu1 %v8518_v35  ;;  %v8583_v35 = vld [vmem:[#allocation8 + $0x72c] ss:$24 sps:$4 sm:$0xff]  }
 0x1bb   :  { %2847 = vmatpush1.bf16.msra.mxu0 %v8521_v36  ;;  %2807 = vmatprep.subr.bf16.mxu1 %v8526_v37  ;;  %v8586_v36 = vld [vmem:[#allocation8 + $0x3fc] ss:$24 sps:$4 sm:$0xff]  }
 0x1bc   :  { %2848 = vmatprep.subr.bf16.mxu0 %v8529_v38  ;;  %v8589_v37 = vld [vmem:[#allocation8 + $0x6fc] ss:$24 sps:$4 sm:$0xff]   ;;  %v8584_v38 = vld [vmem:[#allocation8 + $0x3f8] ss:$24 sps:$4 sm:$0xff]  }
 0x1be   :  { %2808 = vmatpush2.bf16.msra.mxu1 %v8524_v39  ;;  %v8587_v39 = vld [vmem:[#allocation8 + $0x6f8] ss:$24 sps:$4 sm:$0xff]  }
 0x1bf   :  { %2849 = vmatpush2.bf16.msra.mxu0 %v8527_v46  ;;  %2809 = vmatprep.subr.bf16.mxu1 %v8532_v47  ;;  %v8592_v46 = vld [vmem:[#allocation8 + $0x3cc] ss:$24 sps:$4 sm:$0xff]  }
 0x1c0   :  { %2850 = vmatprep.subr.bf16.mxu0 %v8535_v48  ;;  %v8595_v47 = vld [vmem:[#allocation8 + $0x6cc] ss:$24 sps:$4 sm:$0xff]   ;;  %v8590_v48 = vld [vmem:[#allocation8 + $0x3c8] ss:$24 sps:$4 sm:$0xff]  }
 0x1c2   :  { %2810 = vmatpush2.bf16.msra.mxu1 %v8530_v49  ;;  %v8593_v49 = vld [vmem:[#allocation8 + $0x6c8] ss:$24 sps:$4 sm:$0xff]  }
 0x1c3   :  { %2851 = vmatpush2.bf16.msra.mxu0 %v8533_v50  ;;  %2811 = vmatprep.subr.bf16.mxu1 %v8538_v51  ;;  %v8598_v50 = vld [vmem:[#allocation8 + $0x39c] ss:$24 sps:$4 sm:$0xff]  }
 0x1c4   :  { %2852 = vmatprep.subr.bf16.mxu0 %v8541_v52  ;;  %v8601_v51 = vld [vmem:[#allocation8 + $0x69c] ss:$24 sps:$4 sm:$0xff]   ;;  %v8596_v52 = vld [vmem:[#allocation8 + $0x398] ss:$24 sps:$4 sm:$0xff]  }
 0x1c6   :  { %2812 = vmatpush2.bf16.msra.mxu1 %v8536_v53  ;;  %v8599_v53 = vld [vmem:[#allocation8 + $0x698] ss:$24 sps:$4 sm:$0xff]  }
 0x1c7   :  { %2853 = vmatpush2.bf16.msra.mxu0 %v8539_v54  ;;  %2813 = vmatprep.subr.bf16.mxu1 %v8544_v55  ;;  %v8604_v54 = vld [vmem:[#allocation8 + $0x36c] ss:$24 sps:$4 sm:$0xff]  }
 0x1c8   :  { %2854 = vmatprep.subr.bf16.mxu0 %v8547_v56  ;;  %v8607_v55 = vld [vmem:[#allocation8 + $0x66c] ss:$24 sps:$4 sm:$0xff]   ;;  %v8602_v56 = vld [vmem:[#allocation8 + $0x368] ss:$24 sps:$4 sm:$0xff]  }
 0x1ca   :  { %2814 = vmatpush2.bf16.msra.mxu1 %v8542_v57  ;;  %v8605_v57 = vld [vmem:[#allocation8 + $0x668] ss:$24 sps:$4 sm:$0xff]  }
 0x1cb   :  { %2855 = vmatpush2.bf16.msra.mxu0 %v8545_v58  ;;  %2815 = vmatprep.subr.bf16.mxu1 %v8550_v59  ;;  %v8610_v58 = vld [vmem:[#allocation8 + $0x33c] ss:$24 sps:$4 sm:$0xff]  }
 0x1cc   :  { %2856 = vmatprep.subr.bf16.mxu0 %v8553_v60  ;;  %v8613_v59 = vld [vmem:[#allocation8 + $0x63c] ss:$24 sps:$4 sm:$0xff]   ;;  %v8608_v60 = vld [vmem:[#allocation8 + $0x338] ss:$24 sps:$4 sm:$0xff]  }
 0x1ce   :  { %2816 = vmatpush2.bf16.msra.mxu1 %v8548_v61  ;;  %v8611_v61 = vld [vmem:[#allocation8 + $0x638] ss:$24 sps:$4 sm:$0xff]  }
 0x1cf   :  { %2857 = vmatpush2.bf16.msra.mxu0 %v8551_v62  ;;  %2817 = vmatprep.subr.bf16.mxu1 %v8556_v63  ;;  %v8616_v62 = vld [vmem:[#allocation8 + $0x30c] ss:$24 sps:$4 sm:$0xff]  }
 0x1d0   :  { %2858 = vmatprep.subr.bf16.mxu0 %v8559_v0  ;;  %v8619_v63 = vld [vmem:[#allocation8 + $0x60c] ss:$24 sps:$4 sm:$0xff]   ;;  %v8614_v0 = vld [vmem:[#allocation8 + $0x308] ss:$24 sps:$4 sm:$0xff]  }
 0x1d2   :  { %2818 = vmatpush2.bf16.msra.mxu1 %v8554_v1  ;;  %v8617_v1 = vld [vmem:[#allocation8 + $0x608] ss:$24 sps:$4 sm:$0xff]  }
 0x1d3   :  { %2859 = vmatpush2.bf16.msra.mxu0 %v8557_v3  ;;  %v930_v16 = vpop.f32.mrf.mxu0  ;;  %2819 = vmatprep.subr.bf16.mxu1 %v8562_v10  ;;  %v8622_v3 = vld [vmem:[#allocation8 + $0x5dc] ss:$24 sps:$4 sm:$0xff]  }
 0x1d4   :  { %2860 = vmatprep.subr.bf16.mxu0 %v8565_v11  ;;  %v931_v18 = vadd.f32 %v930_v16, %v323_v12  ;;  %v8625_v10 = vld [vmem:[#allocation8 + $0x8dc] ss:$24 sps:$4 sm:$0xff]   ;;  %v8620_v11 = vld [vmem:[#allocation8 + $0x5d8] ss:$24 sps:$4 sm:$0xff]   ;;  %v8629_v16 = vld [vmem:[#allocation8 + $0x8a8] ss:$24 sps:$4 sm:$0xff]  }
 0x1d5   :  { %v932_v21 = vpop.f32.mrf.mxu0  ;;  %v8623_v12 = vld [vmem:[#allocation8 + $0x8d8] ss:$24 sps:$4 sm:$0xff]  }
 0x1d6   :  { %v933_v22 = vadd.f32 %v932_v21, %v327_v15  ;;  %2820 = vmatpush2.bf16.msra.mxu1 %v8560_v13  ;;  %v941_v23 = vmax.f32 %v931_v18, 0.0  ;;  %v8628_v13 = vld [vmem:[#allocation8 + $0x5ac] ss:$24 sps:$4 sm:$0xff]   ;;  %v8626_v15 = vld [vmem:[#allocation8 + $0x5a8] ss:$24 sps:$4 sm:$0xff]  }
 0x1d7   :  { %2861 = vmatpush2.bf16.msra.mxu0 %v8563_v14  ;;  %v934_v24 = vpop.f32.mrf.mxu0  ;;  %2821 = vmatprep.subr.bf16.mxu1 %v8568_v17  ;;  %v8631_v14 = vld [vmem:[#allocation8 + $0x8ac] ss:$24 sps:$4 sm:$0xff]   ;;  %v8634_v17 = vld [vmem:[#allocation8 + $0x57c] ss:$24 sps:$4 sm:$0xff]   ;;  %v8632_v18 = vld [vmem:[#allocation8 + $0x578] ss:$24 sps:$4 sm:$0xff]  }
 0x1d8   :  { %2862 = vmatprep.subr.bf16.mxu0 %v8571_v40  ;;  %v942_v27 = vmax.f32 %v933_v22, 0.0  ;;  %v10067_v32 = vpack.c.bf16 %v941_v23, %v941_v23  ;;  %v8637_v40 = vld [vmem:[#allocation8 + $0x87c] ss:$24 sps:$4 sm:$0xff]   ;;  %v8643_v21 = vld [vmem:[#allocation8 + $0x84c] ss:$24 sps:$4 sm:$0xff]  }
 0x1d9   :  { %v935_v29 = vpop.f32.mrf.mxu0  ;;  %v8638_v22 = vld [vmem:[#allocation8 + $0x548] ss:$24 sps:$4 sm:$0xff]   ;;  %v8646_v24 = vld [vmem:[#allocation8 + $0x51c] ss:$24 sps:$4 sm:$0xff]  }
 0x1da   :  { %v10065_v30 = vpack.c.bf16 %v942_v27, %v942_v27  ;;  %2822 = vmatpush2.bf16.msra.mxu1 %v8566_v19  ;;  %v8635_v19 = vld [vmem:[#allocation8 + $0x878] ss:$24 sps:$4 sm:$0xff]   ;;  %v8641_v23 = vld [vmem:[#allocation8 + $0x848] ss:$24 sps:$4 sm:$0xff]  }
 0x1db   :  { %2863 = vmatpush2.bf16.msra.mxu0 %v8569_v20  ;;  %2873 = vmatprep.subr.bf16.mxu1 %v8574_v25  ;;  %v8640_v20 = vld [vmem:[#allocation8 + $0x54c] ss:$24 sps:$4 sm:$0xff]   ;;  %v8649_v25 = vld [vmem:[#allocation8 + $0x81c] ss:$24 sps:$4 sm:$0xff]   ;;  %v8647_v27 = vld [vmem:[#allocation8 + $0x818] ss:$24 sps:$4 sm:$0xff]  }
 0x1dc   :  { %2914 = vmatprep.subr.bf16.mxu0 %v8577_v26  ;;  %2823 = vmatprep.mubr.bf16.mxu1 %v10065_v30  ;;  %v8644_v26 = vld [vmem:[#allocation8 + $0x518] ss:$24 sps:$4 sm:$0xff]   ;;  %v8650_v29 = vld [vmem:[#allocation8 + $0x4e8] ss:$24 sps:$4 sm:$0xff]  }
 0x1dd   :  { %2824 = vmatmul.mubr.bf16.vlgmr.msra.gmra.mxu1 %v10067_v32 }
 0x1de   :  { %2865 = vmatmul.mubr.bf16.vlgmr.msra.gmra.mxu0 %v10048_v9  ;;  %2874 = vmatpush1.bf16.msra.mxu1 %v8572_v41  ;;  %v8652_v41 = vld [vmem:[#allocation8 + $0x4ec] ss:$24 sps:$4 sm:$0xff]  }
 0x1df   :  { %2915 = vmatpush1.bf16.msra.mxu0 %v8575_v28  ;;  %2946 = vmatprep.mubr.bf16.mxu0 %v10065_v30  ;;  %v8655_v28 = vld [vmem:[#allocation8 + $0x7ec] ss:$24 sps:$4 sm:$0xff]  }
 0x1e0   :  { %2905 = vmatprep.mubr.bf16.mxu1 %v10046_v8  ;;  %2875 = vmatprep.subr.bf16.mxu1 %v8580_v31  ;;  %v8653_v31 = vld [vmem:[#allocation8 + $0x7e8] ss:$24 sps:$4 sm:$0xff]  }
 0x1e1   :  { %2916 = vmatprep.subr.bf16.mxu0 %v8583_v35  ;;  %v8656_v35 = vld [vmem:[#allocation8 + $0x4b8] ss:$24 sps:$4 sm:$0xff]  }
 0x1e2   :  { %2876 = vmatpush1.bf16.msra.mxu1 %v8578_v33  ;;  %v8658_v33 = vld [vmem:[#allocation8 + $0x4bc] ss:$24 sps:$4 sm:$0xff]  }
 0x1e3   :  { %2917 = vmatpush1.bf16.msra.mxu0 %v8581_v34  ;;  %2877 = vmatprep.subr.bf16.mxu1 %v8586_v36  ;;  %v8661_v34 = vld [vmem:[#allocation8 + $0x7bc] ss:$24 sps:$4 sm:$0xff]   ;;  %v8659_v36 = vld [vmem:[#allocation8 + $0x7b8] ss:$24 sps:$4 sm:$0xff]  }
 0x1e4   :  { %2918 = vmatprep.subr.bf16.mxu0 %v8589_v37  ;;  %v8664_v37 = vld [vmem:[#allocation8 + $0x48c] ss:$24 sps:$4 sm:$0xff]  }
 0x1e6   :  { %2878 = vmatpush1.bf16.msra.mxu1 %v8584_v38  ;;  %v8667_v38 = vld [vmem:[#allocation8 + $0x78c] ss:$24 sps:$4 sm:$0xff]  }
 0x1e7   :  { %2919 = vmatpush1.bf16.msra.mxu0 %v8587_v39  ;;  %2879 = vmatprep.subr.bf16.mxu1 %v8592_v46  ;;  %v8662_v39 = vld [vmem:[#allocation8 + $0x488] ss:$24 sps:$4 sm:$0xff]  }
 0x1e8   :  { %2920 = vmatprep.subr.bf16.mxu0 %v8595_v47  ;;  %v8665_v46 = vld [vmem:[#allocation8 + $0x788] ss:$24 sps:$4 sm:$0xff]   ;;  %v8670_v47 = vld [vmem:[#allocation8 + $0x164] ss:$24 sps:$4 sm:$0xff]  }
 0x1ea   :  { %2880 = vmatpush1.bf16.msra.mxu1 %v8590_v48  ;;  %v8673_v48 = vld [vmem:[#allocation8 + $0x464] ss:$24 sps:$4 sm:$0xff]  }
 0x1eb   :  { %2921 = vmatpush1.bf16.msra.mxu0 %v8593_v49  ;;  %2881 = vmatprep.subr.bf16.mxu1 %v8598_v50  ;;  %v8668_v49 = vld [vmem:[#allocation8 + $0x160] ss:$24 sps:$4 sm:$0xff]  }
 0x1ec   :  { %2922 = vmatprep.subr.bf16.mxu0 %v8601_v51  ;;  %v8671_v50 = vld [vmem:[#allocation8 + $0x460] ss:$24 sps:$4 sm:$0xff]   ;;  %v8676_v51 = vld [vmem:[#allocation8 + $0x134] ss:$24 sps:$4 sm:$0xff]  }
 0x1ee   :  { %2882 = vmatpush1.bf16.msra.mxu1 %v8596_v52  ;;  %v8679_v52 = vld [vmem:[#allocation8 + $0x434] ss:$24 sps:$4 sm:$0xff]  }
 0x1ef   :  { %2923 = vmatpush1.bf16.msra.mxu0 %v8599_v53  ;;  %2883 = vmatprep.subr.bf16.mxu1 %v8604_v54  ;;  %v8674_v53 = vld [vmem:[#allocation8 + $0x130] ss:$24 sps:$4 sm:$0xff]  }
 0x1f0   :  { %2924 = vmatprep.subr.bf16.mxu0 %v8607_v55  ;;  %v8677_v54 = vld [vmem:[#allocation8 + $0x430] ss:$24 sps:$4 sm:$0xff]   ;;  %v8682_v55 = vld [vmem:[#allocation8 + $0x104] ss:$24 sps:$4 sm:$0xff]  }
 0x1f2   :  { %2884 = vmatpush1.bf16.msra.mxu1 %v8602_v56  ;;  %v8680_v56 = vld [vmem:[#allocation8 + $0x100] ss:$24 sps:$4 sm:$0xff]  }
 0x1f3   :  { %2925 = vmatpush1.bf16.msra.mxu0 %v8605_v57  ;;  %2885 = vmatprep.subr.bf16.mxu1 %v8610_v58  ;;  %v8685_v57 = vld [vmem:[#allocation8 + $0x404] ss:$24 sps:$4 sm:$0xff]   ;;  %v8683_v58 = vld [vmem:[#allocation8 + $0x400] ss:$24 sps:$4 sm:$0xff]  }
 0x1f4   :  { %2926 = vmatprep.subr.bf16.mxu0 %v8613_v59  ;;  %v8688_v59 = vld [vmem:[#allocation8 + $0xd4] ss:$24 sps:$4 sm:$0xff]  }
 0x1f6   :  { %2886 = vmatpush1.bf16.msra.mxu1 %v8608_v60  ;;  %v8686_v60 = vld [vmem:[#allocation8 + $0xd0] ss:$24 sps:$4 sm:$0xff]  }
 0x1f7   :  { %2927 = vmatpush1.bf16.msra.mxu0 %v8611_v61  ;;  %2887 = vmatprep.subr.bf16.mxu1 %v8616_v62  ;;  %v8691_v61 = vld [vmem:[#allocation8 + $0x3d4] ss:$24 sps:$4 sm:$0xff]   ;;  %v8694_v62 = vld [vmem:[#allocation8 + $0xa4] ss:$24 sps:$4 sm:$0xff]  }
 0x1f8   :  { %2928 = vmatprep.subr.bf16.mxu0 %v8619_v63  ;;  %v8692_v63 = vld [vmem:[#allocation8 + $0xa0] ss:$24 sps:$4 sm:$0xff]  }
 0x1fa   :  { %2888 = vmatpush1.bf16.msra.mxu1 %v8614_v0  ;;  %v8695_v0 = vld [vmem:[#allocation8 + $0x3a0] ss:$24 sps:$4 sm:$0xff]  }
 0x1fb   :  { %2929 = vmatpush1.bf16.msra.mxu0 %v8617_v1  ;;  %2889 = vmatprep.subr.bf16.mxu1 %v8622_v3  ;;  %v8700_v1 = vld [vmem:[#allocation8 + $0x74] ss:$24 sps:$4 sm:$0xff]  }
 0x1fc   :  { %2930 = vmatprep.subr.bf16.mxu0 %v8625_v10  ;;  %v8703_v3 = vld [vmem:[#allocation8 + $0x374] ss:$24 sps:$4 sm:$0xff]   ;;  %v8698_v10 = vld [vmem:[#allocation8 + $0x70] ss:$24 sps:$4 sm:$0xff]  }
 0x1fe   :  { %2890 = vmatpush2.bf16.msra.mxu1 %v8620_v11  ;;  %v8701_v11 = vld [vmem:[#allocation8 + $0x370] ss:$24 sps:$4 sm:$0xff]  }
 0x1ff   :  { %2931 = vmatpush2.bf16.msra.mxu0 %v8623_v12  ;;  %2891 = vmatprep.subr.bf16.mxu1 %v8628_v13  ;;  %v8706_v12 = vld [vmem:[#allocation8 + $0x44] ss:$24 sps:$4 sm:$0xff]  }
 0x200   :  { %2932 = vmatprep.subr.bf16.mxu0 %v8631_v14  ;;  %v8709_v13 = vld [vmem:[#allocation8 + $0x344] ss:$24 sps:$4 sm:$0xff]   ;;  %v8704_v14 = vld [vmem:[#allocation8 + $0x40] ss:$24 sps:$4 sm:$0xff]  }
 0x202   :  { %2892 = vmatpush2.bf16.msra.mxu1 %v8626_v15  ;;  %v8707_v15 = vld [vmem:[#allocation8 + $0x340] ss:$24 sps:$4 sm:$0xff]  }
 0x203   :  { %2933 = vmatpush2.bf16.msra.mxu0 %v8629_v16  ;;  %2893 = vmatprep.subr.bf16.mxu1 %v8634_v17  ;;  %v8712_v16 = vld [vmem:[#allocation8 + $0x14] ss:$24 sps:$4 sm:$0xff]  }
 0x204   :  { %2934 = vmatprep.subr.bf16.mxu0 %v8637_v40  ;;  %v8715_v17 = vld [vmem:[#allocation8 + $0x314] ss:$24 sps:$4 sm:$0xff]   ;;  %v8710_v40 = vld [vmem:[#allocation8 + $0x10] ss:$24 sps:$4 sm:$0xff]  }
 0x206   :  { %2894 = vmatpush2.bf16.msra.mxu1 %v8632_v18  ;;  %v8713_v18 = vld [vmem:[#allocation8 + $0x310] ss:$24 sps:$4 sm:$0xff]  }
 0x207   :  { %2935 = vmatpush2.bf16.msra.mxu0 %v8635_v19  ;;  %2895 = vmatprep.subr.bf16.mxu1 %v8640_v20  ;;  %v8718_v19 = vld [vmem:[#allocation8 + $0x2e4] ss:$24 sps:$4 sm:$0xff]  }
 0x208   :  { %2936 = vmatprep.subr.bf16.mxu0 %v8643_v21  ;;  %v8721_v20 = vld [vmem:[#allocation8 + $0x5e4] ss:$24 sps:$4 sm:$0xff]   ;;  %v8716_v21 = vld [vmem:[#allocation8 + $0x2e0] ss:$24 sps:$4 sm:$0xff]  }
 0x20a   :  { %2896 = vmatpush2.bf16.msra.mxu1 %v8638_v22  ;;  %v8719_v22 = vld [vmem:[#allocation8 + $0x5e0] ss:$24 sps:$4 sm:$0xff]  }
 0x20b   :  { %2937 = vmatpush2.bf16.msra.mxu0 %v8641_v23  ;;  %2897 = vmatprep.subr.bf16.mxu1 %v8646_v24  ;;  %v8724_v23 = vld [vmem:[#allocation8 + $0x2b4] ss:$24 sps:$4 sm:$0xff]  }
 0x20c   :  { %2938 = vmatprep.subr.bf16.mxu0 %v8649_v25  ;;  %v8727_v24 = vld [vmem:[#allocation8 + $0x5b4] ss:$24 sps:$4 sm:$0xff]   ;;  %v8722_v25 = vld [vmem:[#allocation8 + $0x2b0] ss:$24 sps:$4 sm:$0xff]  }
 0x20e   :  { %2898 = vmatpush2.bf16.msra.mxu1 %v8644_v26  ;;  %v8725_v26 = vld [vmem:[#allocation8 + $0x5b0] ss:$24 sps:$4 sm:$0xff]  }
 0x20f   :  { %2939 = vmatpush2.bf16.msra.mxu0 %v8647_v27  ;;  %2899 = vmatprep.subr.bf16.mxu1 %v8652_v41  ;;  %v8730_v27 = vld [vmem:[#allocation8 + $0x284] ss:$24 sps:$4 sm:$0xff]  }
 0x210   :  { %2940 = vmatprep.subr.bf16.mxu0 %v8655_v28  ;;  %v8733_v41 = vld [vmem:[#allocation8 + $0x584] ss:$24 sps:$4 sm:$0xff]   ;;  %v8728_v28 = vld [vmem:[#allocation8 + $0x280] ss:$24 sps:$4 sm:$0xff]  }
 0x212   :  { %2900 = vmatpush2.bf16.msra.mxu1 %v8650_v29  ;;  %v8731_v29 = vld [vmem:[#allocation8 + $0x580] ss:$24 sps:$4 sm:$0xff]  }
 0x213   :  { %2941 = vmatpush2.bf16.msra.mxu0 %v8653_v31  ;;  %2901 = vmatprep.subr.bf16.mxu1 %v8658_v33  ;;  %v8736_v31 = vld [vmem:[#allocation8 + $0x254] ss:$24 sps:$4 sm:$0xff]  }
 0x214   :  { %2942 = vmatprep.subr.bf16.mxu0 %v8661_v34  ;;  %v8739_v33 = vld [vmem:[#allocation8 + $0x554] ss:$24 sps:$4 sm:$0xff]   ;;  %v8734_v34 = vld [vmem:[#allocation8 + $0x250] ss:$24 sps:$4 sm:$0xff]  }
 0x216   :  { %2902 = vmatpush2.bf16.msra.mxu1 %v8656_v35  ;;  %v8737_v35 = vld [vmem:[#allocation8 + $0x550] ss:$24 sps:$4 sm:$0xff]  }
 0x217   :  { %2943 = vmatpush2.bf16.msra.mxu0 %v8659_v36  ;;  %2903 = vmatprep.subr.bf16.mxu1 %v8664_v37  ;;  %v8742_v36 = vld [vmem:[#allocation8 + $0x224] ss:$24 sps:$4 sm:$0xff]  }
 0x218   :  { %2944 = vmatprep.subr.bf16.mxu0 %v8667_v38  ;;  %v8745_v37 = vld [vmem:[#allocation8 + $0x524] ss:$24 sps:$4 sm:$0xff]   ;;  %v8740_v38 = vld [vmem:[#allocation8 + $0x220] ss:$24 sps:$4 sm:$0xff]  }
 0x21a   :  { %2904 = vmatpush2.bf16.msra.mxu1 %v8662_v39  ;;  %v8743_v39 = vld [vmem:[#allocation8 + $0x520] ss:$24 sps:$4 sm:$0xff]  }
 0x21b   :  { %2945 = vmatpush2.bf16.msra.mxu0 %v8665_v46  ;;  %2955 = vmatprep.subr.bf16.mxu1 %v8670_v47  ;;  %v8748_v46 = vld [vmem:[#allocation8 + $0x1f4] ss:$24 sps:$4 sm:$0xff]  }
 0x21c   :  { %2996 = vmatprep.subr.bf16.mxu0 %v8673_v48  ;;  %v8751_v47 = vld [vmem:[#allocation8 + $0x4f4] ss:$24 sps:$4 sm:$0xff]   ;;  %v8746_v48 = vld [vmem:[#allocation8 + $0x1f0] ss:$24 sps:$4 sm:$0xff]  }
 0x21d   :  { %2906 = vmatmul.mubr.bf16.vlgmr.msra.gmra.mxu1 %v10042_v2 }
 0x21e   :  { %2947 = vmatmul.mubr.bf16.vlgmr.msra.gmra.mxu0 %v10067_v32  ;;  %2956 = vmatpush1.bf16.msra.mxu1 %v8668_v49  ;;  %v8749_v49 = vld [vmem:[#allocation8 + $0x4f0] ss:$24 sps:$4 sm:$0xff]  }
 0x21f   :  { %2987 = vmatprep.mubr.bf16.mxu1 %v10044_v7  ;;  %2997 = vmatpush1.bf16.msra.mxu0 %v8671_v50  ;;  %v8689_v7 = vld [vmem:[#allocation8 + $0x3d0] ss:$24 sps:$4 sm:$0xff]   ;;  %v8754_v50 = vld [vmem:[#allocation8 + $0x1c4] ss:$24 sps:$4 sm:$0xff]  }
 0x220   :  { %3028 = vmatprep.mubr.bf16.mxu0 %v10046_v8  ;;  %2957 = vmatprep.subr.bf16.mxu1 %v8676_v51  ;;  %v8697_v8 = vld [vmem:[#allocation8 + $0x3a4] ss:$24 sps:$4 sm:$0xff]  }
 0x221   :  { %2998 = vmatprep.subr.bf16.mxu0 %v8679_v52  ;;  %v8757_v51 = vld [vmem:[#allocation8 + $0x4c4] ss:$24 sps:$4 sm:$0xff]   ;;  %v8752_v52 = vld [vmem:[#allocation8 + $0x1c0] ss:$24 sps:$4 sm:$0xff]  }
 0x222   :  { %2958 = vmatpush1.bf16.msra.mxu1 %v8674_v53  ;;  %v8755_v53 = vld [vmem:[#allocation8 + $0x4c0] ss:$24 sps:$4 sm:$0xff]  }
 0x223   :  { %2999 = vmatpush1.bf16.msra.mxu0 %v8677_v54  ;;  %2959 = vmatprep.subr.bf16.mxu1 %v8682_v55  ;;  %v8760_v54 = vld [vmem:[#allocation8 + $0x194] ss:$24 sps:$4 sm:$0xff]  }
 0x224   :  { %3000 = vmatprep.subr.bf16.mxu0 %v8685_v57  ;;  %v8763_v55 = vld [vmem:[#allocation8 + $0x494] ss:$24 sps:$4 sm:$0xff]   ;;  %v8761_v57 = vld [vmem:[#allocation8 + $0x490] ss:$24 sps:$4 sm:$0xff]  }
 0x226   :  { %2960 = vmatpush1.bf16.msra.mxu1 %v8680_v56  ;;  %v8758_v56 = vld [vmem:[#allocation8 + $0x190] ss:$24 sps:$4 sm:$0xff]  }
 0x227   :  { %3001 = vmatpush1.bf16.msra.mxu0 %v8683_v58  ;;  %2961 = vmatprep.subr.bf16.mxu1 %v8688_v59  ;;  %v8766_v58 = vld [vmem:[#allocation8 + $0x764] ss:$24 sps:$4 sm:$0xff]  }
 0x228   :  { %3002 = vmatprep.subr.bf16.mxu0 %v8691_v61  ;;  %v8775_v59 = vld [vmem:[#allocation11 + $0x74] ss:$8 sps:$4 sm:$0xff]   ;;  %v8769_v61 = vld [vmem:[#allocation8 + $0x734] ss:$24 sps:$4 sm:$0xff]  }
 0x22a   :  { %2962 = vmatpush1.bf16.msra.mxu1 %v8686_v60  ;;  %v8764_v60 = vld [vmem:[#allocation8 + $0x760] ss:$24 sps:$4 sm:$0xff]  }
 0x22b   :  { %3003 = vmatpush1.bf16.msra.mxu0 %v8689_v7  ;;  %2963 = vmatprep.subr.bf16.mxu1 %v8694_v62  ;;  %v8767_v7 = vld [vmem:[#allocation8 + $0x730] ss:$24 sps:$4 sm:$0xff]   ;;  %v8773_v62 = vld [vmem:[#allocation11 + $0x70] ss:$8 sps:$4 sm:$0xff]  }
 0x22c   :  { %3004 = vmatprep.subr.bf16.mxu0 %v8697_v8 }
 0x22e   :  { %2964 = vmatpush1.bf16.msra.mxu1 %v8692_v63 }
 0x22f   :  { %3005 = vmatpush1.bf16.msra.mxu0 %v8695_v0  ;;  %2965 = vmatprep.subr.bf16.mxu1 %v8700_v1  ;;  %v8772_v0 = vld [vmem:[#allocation8 + $0x704] ss:$24 sps:$4 sm:$0xff]   ;;  %v8781_v1 = vld [vmem:[#allocation11 + $0x64] ss:$8 sps:$4 sm:$0xff]  }
 0x230   :  { %3006 = vmatprep.subr.bf16.mxu0 %v8703_v3 }
 0x232   :  { %2966 = vmatpush1.bf16.msra.mxu1 %v8698_v10 }
 0x233   :  { %3007 = vmatpush1.bf16.msra.mxu0 %v8701_v11  ;;  %2967 = vmatprep.subr.bf16.mxu1 %v8706_v12  ;;  %v8770_v11 = vld [vmem:[#allocation8 + $0x700] ss:$24 sps:$4 sm:$0xff]   ;;  %v8779_v12 = vld [vmem:[#allocation11 + $0x60] ss:$8 sps:$4 sm:$0xff]  }
 0x234   :  { %3008 = vmatprep.subr.bf16.mxu0 %v8709_v13  ;;  %v8778_v13 = vld [vmem:[#allocation8 + $0x6d4] ss:$24 sps:$4 sm:$0xff]  }
 0x236   :  { %2968 = vmatpush1.bf16.msra.mxu1 %v8704_v14  ;;  %v8787_v14 = vld [vmem:[#allocation11 + $0x54] ss:$8 sps:$4 sm:$0xff]  }
 0x237   :  { %3009 = vmatpush1.bf16.msra.mxu0 %v8707_v15  ;;  %2969 = vmatprep.subr.bf16.mxu1 %v8712_v16 }
 0x238   :  { %3010 = vmatprep.subr.bf16.mxu0 %v8715_v17  ;;  %v8776_v17 = vld [vmem:[#allocation8 + $0x6d0] ss:$24 sps:$4 sm:$0xff]  }
 0x23a   :  { %2970 = vmatpush1.bf16.msra.mxu1 %v8710_v40  ;;  %v8793_v40 = vld [vmem:[#allocation11 + $0x44] ss:$8 sps:$4 sm:$0xff]  }
 0x23b   :  { %3011 = vmatpush1.bf16.msra.mxu0 %v8713_v18  ;;  %2971 = vmatprep.subr.bf16.mxu1 %v8718_v19  ;;  %v8784_v18 = vld [vmem:[#allocation8 + $0x6a4] ss:$24 sps:$4 sm:$0xff]  }
 0x23c   :  { %3012 = vmatprep.subr.bf16.mxu0 %v8721_v20  ;;  %v8791_v19 = vld [vmem:[#allocation11 + $0x40] ss:$8 sps:$4 sm:$0xff]   ;;  %v8799_v20 = vld [vmem:[#allocation11 + $0x34] ss:$8 sps:$4 sm:$0xff]  }
 0x23e   :  { %2972 = vmatpush2.bf16.msra.mxu1 %v8716_v21  ;;  %v8782_v21 = vld [vmem:[#allocation8 + $0x6a0] ss:$24 sps:$4 sm:$0xff]  }
 0x23f   :  { %3013 = vmatpush2.bf16.msra.mxu0 %v8719_v22  ;;  %2973 = vmatprep.subr.bf16.mxu1 %v8724_v23  ;;  %v8790_v22 = vld [vmem:[#allocation8 + $0x674] ss:$24 sps:$4 sm:$0xff]  }
 0x240   :  { %3014 = vmatprep.subr.bf16.mxu0 %v8727_v24  ;;  %v8797_v23 = vld [vmem:[#allocation11 + $0x30] ss:$8 sps:$4 sm:$0xff]   ;;  %v8805_v24 = vld [vmem:[#allocation11 + $0x24] ss:$8 sps:$4 sm:$0xff]  }
 0x242   :  { %2974 = vmatpush2.bf16.msra.mxu1 %v8722_v25  ;;  %v8788_v25 = vld [vmem:[#allocation8 + $0x670] ss:$24 sps:$4 sm:$0xff]  }
 0x243   :  { %3015 = vmatpush2.bf16.msra.mxu0 %v8725_v26  ;;  %2975 = vmatprep.subr.bf16.mxu1 %v8730_v27  ;;  %v8796_v26 = vld [vmem:[#allocation8 + $0x644] ss:$24 sps:$4 sm:$0xff]  }
 0x244   :  { %3016 = vmatprep.subr.bf16.mxu0 %v8733_v41  ;;  %v8803_v27 = vld [vmem:[#allocation11 + $0x20] ss:$8 sps:$4 sm:$0xff]   ;;  %v8811_v41 = vld [vmem:[#allocation11 + $0x14] ss:$8 sps:$4 sm:$0xff]  }
 0x246   :  { %2976 = vmatpush2.bf16.msra.mxu1 %v8728_v28  ;;  %v8794_v28 = vld [vmem:[#allocation8 + $0x640] ss:$24 sps:$4 sm:$0xff]  }
 0x247   :  { %3017 = vmatpush2.bf16.msra.mxu0 %v8731_v29  ;;  %2977 = vmatprep.subr.bf16.mxu1 %v8736_v31  ;;  %v8802_v29 = vld [vmem:[#allocation8 + $0x614] ss:$24 sps:$4 sm:$0xff]  }
 0x248   :  { %3018 = vmatprep.subr.bf16.mxu0 %v8739_v33  ;;  %v8809_v31 = vld [vmem:[#allocation11 + $0x10] ss:$8 sps:$4 sm:$0xff]   ;;  %v8817_v33 = vld [vmem:[#allocation11 + $0x4] ss:$8 sps:$4 sm:$0xff]  }
 0x24a   :  { %2978 = vmatpush2.bf16.msra.mxu1 %v8734_v34  ;;  %v8800_v34 = vld [vmem:[#allocation8 + $0x610] ss:$24 sps:$4 sm:$0xff]  }
 0x24b   :  { %3019 = vmatpush2.bf16.msra.mxu0 %v8737_v35  ;;  %2979 = vmatprep.subr.bf16.mxu1 %v8742_v36  ;;  %v8808_v35 = vld [vmem:[#allocation8 + $0x8e4] ss:$24 sps:$4 sm:$0xff]  }
 0x24c   :  { %3020 = vmatprep.subr.bf16.mxu0 %v8745_v37  ;;  %v8815_v36 = vld [vmem:[#allocation11] ss:$8 sps:$4 sm:$0xff]   ;;  %v8823_v37 = vld [vmem:[#allocation11 + $0xf4] ss:$8 sps:$4 sm:$0xff]  }
 0x24e   :  { %2980 = vmatpush2.bf16.msra.mxu1 %v8740_v38  ;;  %v8806_v38 = vld [vmem:[#allocation8 + $0x8e0] ss:$24 sps:$4 sm:$0xff]  }
 0x24f   :  { %3021 = vmatpush2.bf16.msra.mxu0 %v8743_v39  ;;  %2981 = vmatprep.subr.bf16.mxu1 %v8748_v46  ;;  %v8814_v39 = vld [vmem:[#allocation8 + $0x8b4] ss:$24 sps:$4 sm:$0xff]  }
 0x250   :  { %3022 = vmatprep.subr.bf16.mxu0 %v8751_v47  ;;  %v8821_v46 = vld [vmem:[#allocation11 + $0xf0] ss:$8 sps:$4 sm:$0xff]   ;;  %v8829_v47 = vld [vmem:[#allocation11 + $0xe4] ss:$8 sps:$4 sm:$0xff]  }
 0x252   :  { %2982 = vmatpush2.bf16.msra.mxu1 %v8746_v48  ;;  %v8812_v48 = vld [vmem:[#allocation8 + $0x8b0] ss:$24 sps:$4 sm:$0xff]  }
 0x253   :  { %3023 = vmatpush2.bf16.msra.mxu0 %v8749_v49  ;;  %2983 = vmatprep.subr.bf16.mxu1 %v8754_v50  ;;  %v8820_v49 = vld [vmem:[#allocation8 + $0x884] ss:$24 sps:$4 sm:$0xff]  }
 0x254   :  { %3024 = vmatprep.subr.bf16.mxu0 %v8757_v51  ;;  %v8827_v50 = vld [vmem:[#allocation11 + $0xe0] ss:$8 sps:$4 sm:$0xff]   ;;  %v8835_v51 = vld [vmem:[#allocation11 + $0xd4] ss:$8 sps:$4 sm:$0xff]  }
 0x256   :  { %2984 = vmatpush2.bf16.msra.mxu1 %v8752_v52  ;;  %v8818_v52 = vld [vmem:[#allocation8 + $0x880] ss:$24 sps:$4 sm:$0xff]  }
 0x257   :  { %3025 = vmatpush2.bf16.msra.mxu0 %v8755_v53  ;;  %2985 = vmatprep.subr.bf16.mxu1 %v8760_v54  ;;  %v8826_v53 = vld [vmem:[#allocation8 + $0x854] ss:$24 sps:$4 sm:$0xff]  }
 0x258   :  { %3026 = vmatprep.subr.bf16.mxu0 %v8763_v55  ;;  %v8833_v54 = vld [vmem:[#allocation11 + $0xd0] ss:$8 sps:$4 sm:$0xff]   ;;  %v8841_v55 = vld [vmem:[#allocation11 + $0xc4] ss:$8 sps:$4 sm:$0xff]  }
 0x25a   :  { %2986 = vmatpush2.bf16.msra.mxu1 %v8758_v56  ;;  %v8824_v56 = vld [vmem:[#allocation8 + $0x850] ss:$24 sps:$4 sm:$0xff]  }
 0x25b   :  { %3027 = vmatpush2.bf16.msra.mxu0 %v8761_v57  ;;  %3037 = vmatprep.subr.bf16.mxu1 %v8766_v58  ;;  %v8832_v57 = vld [vmem:[#allocation8 + $0x824] ss:$24 sps:$4 sm:$0xff]  }
 0x25c   :  { %3678 = vmatprep.subr.bf16.mxu0 %v8775_v59  ;;  %v8839_v58 = vld [vmem:[#allocation11 + $0xc0] ss:$8 sps:$4 sm:$0xff]   ;;  %v8847_v59 = vld [vmem:[#allocation11 + $0xb4] ss:$8 sps:$4 sm:$0xff]  }
 0x25d   :  { %2988 = vmatmul.mubr.bf16.vlgmr.msra.gmra.mxu1 %v10048_v9  ;;  %v10079_v8 = vpop.f32.mrf.mxu1 }
 0x25e   :  { %v10081_v63 = vpop.f32.mrf.mxu0  ;;  %3029 = vmatmul.mubr.bf16.vlgmr.msra.gmra.mxu0 %v10042_v2  ;;  %3038 = vmatpush1.bf16.msra.mxu1 %v8764_v60  ;;  %v8830_v60 = vld [vmem:[#allocation8 + $0x820] ss:$24 sps:$4 sm:$0xff]  }
 0x25f   :  { %3069 = vmatprep.mubr.bf16.mxu1 %v10065_v30  ;;  %v10085_v3 = vpop.f32.mrf.mxu1  ;;  %3039 = vmatprep.subr.bf16.mxu1 %v8769_v61  ;;  %v8785_v30 = vld [vmem:[#allocation11 + $0x50] ss:$8 sps:$4 sm:$0xff]  }
 0x260   :  { %v10087_v10 = vpop.f32.mrf.mxu0  ;;  %3679 = vmatpush1.bf16.msra.mxu0 %v8773_v62  ;;  %v8838_v61 = vld [vmem:[#allocation8 + $0x7f4] ss:$24 sps:$4 sm:$0xff]  }
 0x261   :  { %v2747_v9 = vpop.f32.mrf.mxu1  ;;  %3680 = vmatprep.subr.bf16.mxu0 %v8781_v1  ;;  %v8853_v62 = vld [vmem:[#allocation11 + $0xa4] ss:$8 sps:$4 sm:$0xff]   ;;  %v8844_v1 = vld [vmem:[#allocation8 + $0x7c4] ss:$24 sps:$4 sm:$0xff]  }
 0x262   :  { %v2788_v15 = vpop.f32.mrf.mxu0  ;;  %3040 = vmatpush1.bf16.msra.mxu1 %v8767_v7  ;;  %v8845_v7 = vld [vmem:[#allocation11 + $0xb0] ss:$8 sps:$4 sm:$0xff]   ;;  %v8856_v9 = vld [vmem:[#allocation11 + $0x94] ss:$8 sps:$4 sm:$0xff]  }
 0x263   :  { %v2748_v16 = vpop.f32.mrf.mxu1  ;;  %3041 = vmatprep.subr.bf16.mxu1 %v8772_v0  ;;  %v8836_v0 = vld [vmem:[#allocation8 + $0x7f0] ss:$24 sps:$4 sm:$0xff]  }
 0x264   :  { %v2789_v2 = vpop.f32.mrf.mxu0  ;;  %3681 = vmatpush1.bf16.msra.mxu0 %v8779_v12  ;;  %v10089_v12 = vld [vmem:[#allocation9] sm:$0x3f] }
 0x265   :  { %3682 = vmatprep.subr.bf16.mxu0 %v8787_v14  ;;  %v8850_v14 = vld [vmem:[#allocation8 + $0x794] ss:$24 sps:$4 sm:$0xff]   ;;  %v1242_v15 = vrot.slane %v10089_v12, %v10023_v42 }
 0x266   :  { %3042 = vmatpush1.bf16.msra.mxu1 %v8770_v11  ;;  %v8851_v11 = vld [vmem:[#allocation11 + $0xa0] ss:$8 sps:$4 sm:$0xff]   ;;  %v8854_v16 = vld [vmem:[#allocation11 + $0x90] ss:$8 sps:$4 sm:$0xff]   ;;  %v8859_v2 = vld [vmem:[#allocation11 + $0x84] ss:$8 sps:$4 sm:$0xff]  }
 0x267   :  { %3043 = vmatprep.subr.bf16.mxu1 %v8778_v13  ;;  %v8842_v13 = vld [vmem:[#allocation8 + $0x7c0] ss:$24 sps:$4 sm:$0xff]  }
 0x268   :  { %3683 = vmatpush1.bf16.msra.mxu0 %v8785_v30  ;;  %v8848_v30 = vld [vmem:[#allocation8 + $0x790] ss:$24 sps:$4 sm:$0xff]  }
 0x269   :  { %3684 = vmatprep.subr.bf16.mxu0 %v8793_v40  ;;  %v8862_v40 = vld [vmem:[#allocation11 + $0x174] ss:$8 sps:$4 sm:$0xff]  }
 0x26a   :  { %3044 = vmatpush1.bf16.msra.mxu1 %v8776_v17  ;;  %v1246_v17 = vrot.slane %v10089_v12, %v10029_v44 }
 0x26b   :  { %3045 = vmatprep.subr.bf16.mxu1 %v8784_v18  ;;  %v2744_v18 = vadd.f32 %v10079_v8, %v1242_v15  ;;  %v8926_v15 = vld [vmem:[#allocation11 + $0x210] ss:$8 sps:$4 sm:$0xff]  }
 0x26c   :  { %3685 = vmatpush1.bf16.msra.mxu0 %v8791_v19  ;;  %v8857_v19 = vld [vmem:[#allocation11 + $0x80] ss:$8 sps:$4 sm:$0xff]  }
 0x26d   :  { %3686 = vmatprep.subr.bf16.mxu0 %v8799_v20  ;;  %v2746_v20 = vadd.f32 %v10085_v3, %v1246_v17  ;;  %v8892_v17 = vld [vmem:[#allocation11 + $0x1d4] ss:$8 sps:$4 sm:$0xff]  }
 0x26e   :  { %3046 = vmatpush1.bf16.msra.mxu1 %v8782_v21  ;;  %v8860_v21 = vld [vmem:[#allocation11 + $0x170] ss:$8 sps:$4 sm:$0xff]  }
 0x26f   :  { %3047 = vmatprep.subr.bf16.mxu1 %v8790_v22  ;;  %v8865_v22 = vld [vmem:[#allocation11 + $0x164] ss:$8 sps:$4 sm:$0xff]  }
 0x270   :  { %3687 = vmatpush1.bf16.msra.mxu0 %v8797_v23  ;;  %v2785_v23 = vadd.f32 %v10081_v63, %v2744_v18  ;;  %v8934_v18 = vld [vmem:[#allocation11 + $0x2f4] ss:$8 sps:$4 sm:$0xff]  }
 0x271   :  { %3688 = vmatprep.subr.bf16.mxu0 %v8805_v24 }
 0x272   :  { %3048 = vmatpush1.bf16.msra.mxu1 %v8788_v25 }
 0x273   :  { %3049 = vmatprep.subr.bf16.mxu1 %v8796_v26  ;;  %v2787_v26 = vadd.f32 %v10087_v10, %v2746_v20  ;;  %v8932_v20 = vld [vmem:[#allocation11 + $0x2f0] ss:$8 sps:$4 sm:$0xff]  }
 0x274   :  { %3689 = vmatpush1.bf16.msra.mxu0 %v8803_v27  ;;  %v8863_v27 = vld [vmem:[#allocation11 + $0x160] ss:$8 sps:$4 sm:$0xff]  }
 0x275   :  { %3690 = vmatprep.subr.bf16.mxu0 %v8811_v41 }
 0x276   :  { %3050 = vmatpush1.bf16.msra.mxu1 %v8794_v28  ;;  %v8868_v28 = vld [vmem:[#allocation11 + $0x154] ss:$8 sps:$4 sm:$0xff]  }
 0x277   :  { %3051 = vmatprep.subr.bf16.mxu1 %v8802_v29 }
 0x278   :  { %3691 = vmatpush1.bf16.msra.mxu0 %v8809_v31 }
 0x279   :  { %3692 = vmatprep.subr.bf16.mxu0 %v8817_v33 }
 0x27a   :  { %3052 = vmatpush1.bf16.msra.mxu1 %v8800_v34 }
 0x27b   :  { %3053 = vmatprep.subr.bf16.mxu1 %v8808_v35  ;;  %v8866_v35 = vld [vmem:[#allocation11 + $0x150] ss:$8 sps:$4 sm:$0xff]  }
 0x27c   :  { %3693 = vmatpush1.bf16.msra.mxu0 %v8815_v36 }
 0x27d   :  { %3694 = vmatprep.subr.bf16.mxu0 %v8823_v37  ;;  %v8871_v37 = vld [vmem:[#allocation11 + $0x144] ss:$8 sps:$4 sm:$0xff]  }
 0x27e   :  { %3054 = vmatpush2.bf16.msra.mxu1 %v8806_v38  ;;  %v8910_v38 = vld [vmem:[#allocation11 + $0x274] ss:$8 sps:$4 sm:$0xff]  }
 0x27f   :  { %3055 = vmatprep.subr.bf16.mxu1 %v8814_v39 }
 0x280   :  { %3695 = vmatpush2.bf16.msra.mxu0 %v8821_v46  ;;  %v8908_v46 = vld [vmem:[#allocation11 + $0x270] ss:$8 sps:$4 sm:$0xff]  }
 0x281   :  { %3696 = vmatprep.subr.bf16.mxu0 %v8829_v47  ;;  %v8869_v47 = vld [vmem:[#allocation11 + $0x140] ss:$8 sps:$4 sm:$0xff]  }
 0x282   :  { %3056 = vmatpush2.bf16.msra.mxu1 %v8812_v48  ;;  %v8913_v48 = vld [vmem:[#allocation11 + $0x264] ss:$8 sps:$4 sm:$0xff]  }
 0x283   :  { %3057 = vmatprep.subr.bf16.mxu1 %v8820_v49  ;;  %v8874_v49 = vld [vmem:[#allocation11 + $0x134] ss:$8 sps:$4 sm:$0xff]  }
 0x284   :  { %3697 = vmatpush2.bf16.msra.mxu0 %v8827_v50  ;;  %v8911_v50 = vld [vmem:[#allocation11 + $0x260] ss:$8 sps:$4 sm:$0xff]  }
 0x285   :  { %3698 = vmatprep.subr.bf16.mxu0 %v8835_v51  ;;  %v8872_v51 = vld [vmem:[#allocation11 + $0x130] ss:$8 sps:$4 sm:$0xff]  }
 0x286   :  { %3058 = vmatpush2.bf16.msra.mxu1 %v8818_v52  ;;  %v8916_v52 = vld [vmem:[#allocation11 + $0x254] ss:$8 sps:$4 sm:$0xff]  }
 0x287   :  { %3059 = vmatprep.subr.bf16.mxu1 %v8826_v53  ;;  %v8877_v53 = vld [vmem:[#allocation11 + $0x124] ss:$8 sps:$4 sm:$0xff]  }
 0x288   :  { %3699 = vmatpush2.bf16.msra.mxu0 %v8833_v54  ;;  %v8914_v54 = vld [vmem:[#allocation11 + $0x250] ss:$8 sps:$4 sm:$0xff]  }
 0x289   :  { %3700 = vmatprep.subr.bf16.mxu0 %v8841_v55  ;;  %v8875_v55 = vld [vmem:[#allocation11 + $0x120] ss:$8 sps:$4 sm:$0xff]  }
 0x28a   :  { %3060 = vmatpush2.bf16.msra.mxu1 %v8824_v56  ;;  %v8919_v56 = vld [vmem:[#allocation11 + $0x244] ss:$8 sps:$4 sm:$0xff]  }
 0x28b   :  { %3061 = vmatprep.subr.bf16.mxu1 %v8832_v57  ;;  %v8880_v57 = vld [vmem:[#allocation11 + $0x114] ss:$8 sps:$4 sm:$0xff]  }
 0x28c   :  { %3701 = vmatpush2.bf16.msra.mxu0 %v8839_v58  ;;  %v8917_v58 = vld [vmem:[#allocation11 + $0x240] ss:$8 sps:$4 sm:$0xff]  }
 0x28d   :  { %3702 = vmatprep.subr.bf16.mxu0 %v8847_v59  ;;  %v8878_v59 = vld [vmem:[#allocation11 + $0x110] ss:$8 sps:$4 sm:$0xff]  }
 0x28e   :  { %3062 = vmatpush2.bf16.msra.mxu1 %v8830_v60  ;;  %v8922_v60 = vld [vmem:[#allocation11 + $0x234] ss:$8 sps:$4 sm:$0xff]  }
 0x28f   :  { %3063 = vmatprep.subr.bf16.mxu1 %v8838_v61  ;;  %v8883_v61 = vld [vmem:[#allocation11 + $0x104] ss:$8 sps:$4 sm:$0xff]  }
 0x290   :  { %3703 = vmatpush2.bf16.msra.mxu0 %v8845_v7  ;;  %v8920_v7 = vld [vmem:[#allocation11 + $0x230] ss:$8 sps:$4 sm:$0xff]  }
 0x291   :  { %3704 = vmatprep.subr.bf16.mxu0 %v8853_v62  ;;  %v8881_v62 = vld [vmem:[#allocation11 + $0x100] ss:$8 sps:$4 sm:$0xff]  }
 0x292   :  { %3064 = vmatpush2.bf16.msra.mxu1 %v8836_v0  ;;  %v8925_v0 = vld [vmem:[#allocation11 + $0x224] ss:$8 sps:$4 sm:$0xff]  }
 0x293   :  { %3065 = vmatprep.subr.bf16.mxu1 %v8844_v1  ;;  %v8886_v1 = vld [vmem:[#allocation11 + $0x1f4] ss:$8 sps:$4 sm:$0xff]  }
 0x294   :  { %3705 = vmatpush2.bf16.msra.mxu0 %v8851_v11  ;;  %v8923_v11 = vld [vmem:[#allocation11 + $0x220] ss:$8 sps:$4 sm:$0xff]  }
 0x295   :  { %3706 = vmatprep.subr.bf16.mxu0 %v8856_v9  ;;  %v8884_v9 = vld [vmem:[#allocation11 + $0x1f0] ss:$8 sps:$4 sm:$0xff]  }
 0x296   :  { %3066 = vmatpush2.bf16.msra.mxu1 %v8842_v13  ;;  %v8928_v13 = vld [vmem:[#allocation11 + $0x214] ss:$8 sps:$4 sm:$0xff]  }
 0x297   :  { %3067 = vmatprep.subr.bf16.mxu1 %v8850_v14  ;;  %v8889_v14 = vld [vmem:[#allocation11 + $0x1e4] ss:$8 sps:$4 sm:$0xff]  }
 0x298   :  { %3707 = vmatpush2.bf16.msra.mxu0 %v8854_v16  ;;  %v8887_v16 = vld [vmem:[#allocation11 + $0x1e0] ss:$8 sps:$4 sm:$0xff]  }
 0x299   :  { %3708 = vmatprep.subr.bf16.mxu0 %v8859_v2  ;;  %v8931_v2 = vld [vmem:[#allocation11 + $0x204] ss:$8 sps:$4 sm:$0xff]  }
 0x29a   :  { %3068 = vmatpush2.bf16.msra.mxu1 %v8848_v30  ;;  %v8929_v30 = vld [vmem:[#allocation11 + $0x200] ss:$8 sps:$4 sm:$0xff]  }
 0x29b   :  { %3719 = vmatprep.subr.bf16.mxu1 %v8862_v40  ;;  %v8890_v40 = vld [vmem:[#allocation11 + $0x1d0] ss:$8 sps:$4 sm:$0xff]  }
 0x29c   :  { %3709 = vmatpush2.bf16.msra.mxu0 %v8857_v19  ;;  %v8895_v19 = vld [vmem:[#allocation11 + $0x1c4] ss:$8 sps:$4 sm:$0xff]  }
 0x29d   :  { %3070 = vmatmul.mubr.bf16.vlgmr.msra.gmra.mxu1 %v10067_v32  ;;  %v2825_v25 = vpop.f32.mrf.mxu1  ;;  %3760 = vmatprep.subr.bf16.mxu0 %v8910_v38  ;;  %v8947_v38 = vld [vmem:[#allocation11 + $0x2a0] ss:$8 sps:$4 sm:$0xff]  }
 0x29e   :  { %v10098_v24 = vpop.f32.mrf.mxu0  ;;  %v2826_v8 = vadd.f32 %v2825_v25, %v2785_v23  ;;  %3720 = vmatpush1.bf16.msra.mxu1 %v8860_v21  ;;  %v8893_v21 = vld [vmem:[#allocation11 + $0x1c0] ss:$8 sps:$4 sm:$0xff]   ;;  %v8898_v23 = vld [vmem:[#allocation11 + $0x1b4] ss:$8 sps:$4 sm:$0xff]  }
 0x29f   :  { %v2827_v3 = vpop.f32.mrf.mxu1  ;;  %3721 = vmatprep.subr.bf16.mxu1 %v8865_v22  ;;  %v8937_v22 = vld [vmem:[#allocation11 + $0x2e4] ss:$8 sps:$4 sm:$0xff]   ;;  %v8935_v25 = vld [vmem:[#allocation11 + $0x2e0] ss:$8 sps:$4 sm:$0xff]  }
 0x2a0   :  { %v10102_v41 = vpop.f32.mrf.mxu0  ;;  %v2828_v29 = vadd.f32 %v2827_v3, %v2787_v26  ;;  %v3078_v31 = vmax.f32 %v2826_v8, 0.0  ;;  %v8896_v26 = vld [vmem:[#allocation11 + $0x1b0] ss:$8 sps:$4 sm:$0xff]   ;;  %v8940_v8 = vld [vmem:[#allocation11 + $0x2d4] ss:$8 sps:$4 sm:$0xff]  }
 0x2a1   :  { %v2829_v63 = vpop.f32.mrf.mxu1  ;;  %v8938_v3 = vld [vmem:[#allocation11 + $0x2d0] ss:$8 sps:$4 sm:$0xff]  }
 0x2a2   :  { %v2870_v33 = vpop.f32.mrf.mxu0  ;;  %v3079_v34 = vmax.f32 %v2828_v29, 0.0  ;;  %3722 = vmatpush1.bf16.msra.mxu1 %v8863_v27  ;;  %v3084_v39 = vpack.c.bf16 %v3078_v31, %v3078_v31  ;;  %v8901_v27 = vld [vmem:[#allocation11 + $0x1a4] ss:$8 sps:$4 sm:$0xff]   ;;  %v8904_v31 = vld [vmem:[#allocation11 + $0x194] ss:$8 sps:$4 sm:$0xff]  }
 0x2a3   :  { %v2830_v32 = vpop.f32.mrf.mxu1  ;;  %3723 = vmatprep.subr.bf16.mxu1 %v8868_v28  ;;  %v8899_v28 = vld [vmem:[#allocation11 + $0x1a0] ss:$8 sps:$4 sm:$0xff]   ;;  %v8943_v29 = vld [vmem:[#allocation11 + $0x2c4] ss:$8 sps:$4 sm:$0xff]   ;;  %v8902_v63 = vld [vmem:[#allocation11 + $0x190] ss:$8 sps:$4 sm:$0xff]  }
 0x2a4   :  { %v2871_v36 = vpop.f32.mrf.mxu0  ;;  %v3085_v10 = vpack.c.bf16 %v3079_v34, %v3079_v34  ;;  %v8941_v33 = vld [vmem:[#allocation11 + $0x2c0] ss:$8 sps:$4 sm:$0xff]   ;;  %v8946_v34 = vld [vmem:[#allocation11 + $0x2b4] ss:$8 sps:$4 sm:$0xff]  }
 0x2a5   :  { %v8944_v36 = vld [vmem:[#allocation11 + $0x2b0] ss:$8 sps:$4 sm:$0xff]   ;;  %v8905_v32 = vld [vmem:[#allocation11 + $0x180] ss:$8 sps:$4 sm:$0xff]  }
 0x2a6   :  { %3710 = vmatprep.mubr.bf16.mxu0 %v3085_v10  ;;  %3724 = vmatpush1.bf16.msra.mxu1 %v8866_v35  ;;  %v8907_v35 = vld [vmem:[#allocation11 + $0x184] ss:$8 sps:$4 sm:$0xff]   ;;  %v1250_v10 = vrot.slane %v10089_v12, %v10026_v43 }
 0x2a7   :  { %3711 = vmatmul.mubr.bf16.vlgmr.msra.gmra.mxu0 %v3084_v39  ;;  %3725 = vmatprep.subr.bf16.mxu1 %v8871_v37  ;;  %v8949_v37 = vld [vmem:[#allocation11 + $0x2a4] ss:$8 sps:$4 sm:$0xff]   ;;  %v1254_v39 = vrot.slane %v10089_v12, %v10032_v45 }
 0x2a8   :  { %3761 = vmatpush1.bf16.msra.mxu0 %v8908_v46  ;;  %v2867_v46 = vadd.f32 %v10098_v24, %v1250_v10 }
 0x2a9   :  { %3762 = vmatprep.subr.bf16.mxu0 %v8913_v48 }
 0x2aa   :  { %3726 = vmatpush1.bf16.msra.mxu1 %v8869_v47 }
 0x2ab   :  { %3727 = vmatprep.subr.bf16.mxu1 %v8874_v49  ;;  %v2869_v49 = vadd.f32 %v10102_v41, %v1254_v39 }
 0x2ac   :  { %3763 = vmatpush1.bf16.msra.mxu0 %v8911_v50 }
 0x2ad   :  { %3764 = vmatprep.subr.bf16.mxu0 %v8916_v52 }
 0x2ae   :  { %3728 = vmatpush1.bf16.msra.mxu1 %v8872_v51  ;;  %v8952_v51 = vld [vmem:[#allocation11 + $0x294] ss:$8 sps:$4 sm:$0xff]  }
 0x2af   :  { %3729 = vmatprep.subr.bf16.mxu1 %v8877_v53 }
 0x2b0   :  { %3765 = vmatpush1.bf16.msra.mxu0 %v8914_v54  ;;  %v8950_v54 = vld [vmem:[#allocation11 + $0x290] ss:$8 sps:$4 sm:$0xff]  }
 0x2b1   :  { %3766 = vmatprep.subr.bf16.mxu0 %v8919_v56 }
 0x2b2   :  { %3730 = vmatpush1.bf16.msra.mxu1 %v8875_v55 }
 0x2b3   :  { %3731 = vmatprep.subr.bf16.mxu1 %v8880_v57 }
 0x2b4   :  { %3767 = vmatpush1.bf16.msra.mxu0 %v8917_v58 }
 0x2b5   :  { %3768 = vmatprep.subr.bf16.mxu0 %v8922_v60  ;;  %v8955_v60 = vld [vmem:[#allocation11 + $0x284] ss:$8 sps:$4 sm:$0xff]  }
 0x2b6   :  { %3732 = vmatpush1.bf16.msra.mxu1 %v8878_v59 }
 0x2b7   :  { %3733 = vmatprep.subr.bf16.mxu1 %v8883_v61 }
 0x2b8   :  { %3769 = vmatpush1.bf16.msra.mxu0 %v8920_v7 }
 0x2b9   :  { %3770 = vmatprep.subr.bf16.mxu0 %v8925_v0 }
 0x2ba   :  { %3734 = vmatpush1.bf16.msra.mxu1 %v8881_v62  ;;  %v8953_v62 = vld [vmem:[#allocation11 + $0x280] ss:$8 sps:$4 sm:$0xff]  }
 0x2bb   :  { %3735 = vmatprep.subr.bf16.mxu1 %v8886_v1 }
 0x2bc   :  { %3771 = vmatpush1.bf16.msra.mxu0 %v8923_v11 }
 0x2bd   :  { %3772 = vmatprep.subr.bf16.mxu0 %v8928_v13 }
 0x2be   :  { %3736 = vmatpush2.bf16.msra.mxu1 %v8884_v9 }
 0x2bf   :  { %3737 = vmatprep.subr.bf16.mxu1 %v8889_v14 }
 0x2c0   :  { %3773 = vmatpush1.bf16.msra.mxu0 %v8926_v15 }
 0x2c1   :  { %3774 = vmatprep.subr.bf16.mxu0 %v8931_v2 }
 0x2c2   :  { %3738 = vmatpush2.bf16.msra.mxu1 %v8887_v16 }
 0x2c3   :  { %3739 = vmatprep.subr.bf16.mxu1 %v8892_v17 }
 0x2c4   :  { %3775 = vmatpush1.bf16.msra.mxu0 %v8929_v30  ;;  %v8956_v30 = vld [vmem:[#allocation14 + $0x150] ss:$24 sps:$4 sm:$0xff]  }
 0x2c5   :  { %3776 = vmatprep.subr.bf16.mxu0 %v8934_v18  ;;  %v8961_v18 = vld [vmem:[#allocation14 + $0x15c] ss:$24 sps:$4 sm:$0xff]  }
 0x2c6   :  { %3740 = vmatpush2.bf16.msra.mxu1 %v8890_v40  ;;  %v8958_v40 = vld [vmem:[#allocation14 + $0x154] ss:$24 sps:$4 sm:$0xff]  }
 0x2c7   :  { %3741 = vmatprep.subr.bf16.mxu1 %v8895_v19  ;;  %v8964_v19 = vld [vmem:[#allocation14 + $0x124] ss:$24 sps:$4 sm:$0xff]  }
 0x2c8   :  { %3777 = vmatpush2.bf16.msra.mxu0 %v8932_v20  ;;  %v8962_v20 = vld [vmem:[#allocation14 + $0x120] ss:$24 sps:$4 sm:$0xff]  }
 0x2c9   :  { %3778 = vmatprep.subr.bf16.mxu0 %v8937_v22  ;;  %v8968_v22 = vld [vmem:[#allocation14 + $0xf0] ss:$24 sps:$4 sm:$0xff]  }
 0x2ca   :  { %3742 = vmatpush2.bf16.msra.mxu1 %v8893_v21  ;;  %v8970_v21 = vld [vmem:[#allocation14 + $0xf4] ss:$24 sps:$4 sm:$0xff]  }
 0x2cb   :  { %3743 = vmatprep.subr.bf16.mxu1 %v8898_v23  ;;  %v8976_v23 = vld [vmem:[#allocation14 + $0xc4] ss:$24 sps:$4 sm:$0xff]  }
 0x2cc   :  { %3779 = vmatpush2.bf16.msra.mxu0 %v8935_v25  ;;  %v8974_v25 = vld [vmem:[#allocation14 + $0xc0] ss:$24 sps:$4 sm:$0xff]  }
 0x2cd   :  { %3780 = vmatprep.subr.bf16.mxu0 %v8940_v8  ;;  %v8980_v8 = vld [vmem:[#allocation14 + $0x90] ss:$24 sps:$4 sm:$0xff]  }
 0x2ce   :  { %3744 = vmatpush2.bf16.msra.mxu1 %v8896_v26  ;;  %v8982_v26 = vld [vmem:[#allocation14 + $0x94] ss:$24 sps:$4 sm:$0xff]  }
 0x2cf   :  { %3745 = vmatprep.subr.bf16.mxu1 %v8901_v27  ;;  %v8988_v27 = vld [vmem:[#allocation14 + $0x64] ss:$24 sps:$4 sm:$0xff]  }
 0x2d0   :  { %3781 = vmatpush2.bf16.msra.mxu0 %v8938_v3  ;;  %v8986_v3 = vld [vmem:[#allocation14 + $0x60] ss:$24 sps:$4 sm:$0xff]  }
 0x2d1   :  { %3782 = vmatprep.subr.bf16.mxu0 %v8943_v29  ;;  %v8992_v29 = vld [vmem:[#allocation14 + $0x30] ss:$24 sps:$4 sm:$0xff]  }
 0x2d2   :  { %3746 = vmatpush2.bf16.msra.mxu1 %v8899_v28  ;;  %v8994_v28 = vld [vmem:[#allocation14 + $0x34] ss:$24 sps:$4 sm:$0xff]  }
 0x2d3   :  { %3747 = vmatprep.subr.bf16.mxu1 %v8904_v31  ;;  %v9000_v31 = vld [vmem:[#allocation14 + $0x4] ss:$24 sps:$4 sm:$0xff]  }
 0x2d4   :  { %3783 = vmatpush2.bf16.msra.mxu0 %v8941_v33  ;;  %v8998_v33 = vld [vmem:[#allocation14] ss:$24 sps:$4 sm:$0xff]  }
 0x2d5   :  { %3784 = vmatprep.subr.bf16.mxu0 %v8946_v34  ;;  %v9004_v34 = vld [vmem:[#allocation14 + $0x2d0] ss:$24 sps:$4 sm:$0xff]  }
 0x2d6   :  { %3748 = vmatpush2.bf16.msra.mxu1 %v8902_v63  ;;  %v9006_v63 = vld [vmem:[#allocation14 + $0x2d4] ss:$24 sps:$4 sm:$0xff]  }
 0x2d7   :  { %3749 = vmatprep.subr.bf16.mxu1 %v8907_v35  ;;  %v1258_v35 = vrot.slane %v10089_v12, %v10056_v5 }
 0x2d8   :  { %3785 = vmatpush2.bf16.msra.mxu0 %v8944_v36  ;;  %v1262_v36 = vrot.slane %v10089_v12, %v10059_v6  ;;  %v8965_v12 = vld [vmem:[#allocation14 + $0x128] ss:$24 sps:$4 sm:$0xff]  }
 0x2d9   :  { %3786 = vmatprep.subr.bf16.mxu0 %v8949_v37 }
 0x2da   :  { %3750 = vmatpush2.bf16.msra.mxu1 %v8905_v32 }
 0x2db   :  { %4422 = vmatprep.subr.bf16.mxu1 %v8958_v40  ;;  %v9007_v40 = vld [vmem:[#allocation14 + $0x2d8] ss:$24 sps:$4 sm:$0xff]  }
 0x2dc   :  { %3787 = vmatpush2.bf16.msra.mxu0 %v8947_v38 }
 0x2dd   :  { %v2907_v47 = vpop.f32.mrf.mxu1  ;;  %3788 = vmatprep.subr.bf16.mxu0 %v8952_v51 }
 0x2de   :  { %v2948_v48 = vpop.f32.mrf.mxu0  ;;  %v2908_v50 = vadd.f32 %v2907_v47, %v2867_v46 }
 0x2df   :  { %v2909_v52 = vpop.f32.mrf.mxu1 }
 0x2e0   :  { %v2950_v53 = vpop.f32.mrf.mxu0  ;;  %v2949_v55 = vadd.f32 %v2948_v48, %v2908_v50  ;;  %v2910_v56 = vadd.f32 %v2909_v52, %v2869_v49  ;;  %3789 = vmatpush2.bf16.msra.mxu0 %v8950_v54  ;;  %v8959_v54 = vld [vmem:[#allocation14 + $0x158] ss:$24 sps:$4 sm:$0xff]  }
 0x2e1   :  { %v2911_v57 = vpop.f32.mrf.mxu1  ;;  %3790 = vmatprep.subr.bf16.mxu0 %v8955_v60 }
 0x2e2   :  { %v2952_v58 = vpop.f32.mrf.mxu0  ;;  %v2951_v59 = vadd.f32 %v2950_v53, %v2910_v56  ;;  %v3080_v61 = vmax.f32 %v2949_v55, 0.0  ;;  %v8967_v56 = vld [vmem:[#allocation14 + $0x12c] ss:$24 sps:$4 sm:$0xff]  }
 0x2e3   :  { %v2912_v24 = vpop.f32.mrf.mxu1 }
 0x2e4   :  { %v2953_v7 = vpop.f32.mrf.mxu0  ;;  %v3081_v0 = vmax.f32 %v2951_v59, 0.0  ;;  %3791 = vmatpush2.bf16.msra.mxu0 %v8953_v62  ;;  %v3086_v1 = vpack.c.bf16 %v3080_v61, %v3080_v61  ;;  %v8973_v59 = vld [vmem:[#allocation14 + $0xfc] ss:$24 sps:$4 sm:$0xff]   ;;  %v8971_v61 = vld [vmem:[#allocation14 + $0xf8] ss:$24 sps:$4 sm:$0xff]  }
 0x2e5   :  { %4463 = vmatprep.subr.bf16.mxu0 %v8961_v18  ;;  %v8979_v7 = vld [vmem:[#allocation14 + $0xcc] ss:$24 sps:$4 sm:$0xff]   ;;  %v8977_v62 = vld [vmem:[#allocation14 + $0xc8] ss:$24 sps:$4 sm:$0xff]  }
 0x2e6   :  { %v3087_v41 = vpack.c.bf16 %v3081_v0, %v3081_v0  ;;  %v8985_v0 = vld [vmem:[#allocation14 + $0x9c] ss:$24 sps:$4 sm:$0xff]  }
 0x2e8   :  { %3751 = vmatprep.mubr.bf16.mxu1 %v3087_v41  ;;  %v8983_v41 = vld [vmem:[#allocation14 + $0x98] ss:$24 sps:$4 sm:$0xff]  }
 0x2e9   :  { %3752 = vmatmul.mubr.bf16.vlgmr.msra.gmra.mxu1 %v3086_v1  ;;  %v8991_v1 = vld [vmem:[#allocation14 + $0x6c] ss:$24 sps:$4 sm:$0xff]  }
 0x2ea   :  { %4423 = vmatpush1.bf16.msra.mxu1 %v8956_v30  ;;  %v9009_v30 = vld [vmem:[#allocation14 + $0x2dc] ss:$24 sps:$4 sm:$0xff]  }
 0x2eb   :  { %4424 = vmatprep.subr.bf16.mxu1 %v8964_v19 }
 0x2ee   :  { %4425 = vmatpush1.bf16.msra.mxu1 %v8962_v20  ;;  %v9012_v20 = vld [vmem:[#allocation14 + $0x2a4] ss:$24 sps:$4 sm:$0xff]  }
 0x2ef   :  { %4426 = vmatprep.subr.bf16.mxu1 %v8970_v21 }
 0x2f2   :  { %4427 = vmatpush1.bf16.msra.mxu1 %v8968_v22 }
 0x2f3   :  { %4428 = vmatprep.subr.bf16.mxu1 %v8976_v23  ;;  %v9010_v23 = vld [vmem:[#allocation14 + $0x2a0] ss:$24 sps:$4 sm:$0xff]  }
 0x2f6   :  { %4429 = vmatpush1.bf16.msra.mxu1 %v8974_v25  ;;  %v9015_v25 = vld [vmem:[#allocation14 + $0x2ac] ss:$24 sps:$4 sm:$0xff]  }
 0x2f7   :  { %4430 = vmatprep.subr.bf16.mxu1 %v8982_v26 }
 0x2fa   :  { %4431 = vmatpush1.bf16.msra.mxu1 %v8980_v8  ;;  %v9013_v8 = vld [vmem:[#allocation14 + $0x2a8] ss:$24 sps:$4 sm:$0xff]  }
 0x2fb   :  { %4432 = vmatprep.subr.bf16.mxu1 %v8988_v27 }
 0x2fe   :  { %4433 = vmatpush1.bf16.msra.mxu1 %v8986_v3 }
 0x2ff   :  { %4434 = vmatprep.subr.bf16.mxu1 %v8994_v28  ;;  %v9018_v28 = vld [vmem:[#allocation14 + $0x274] ss:$24 sps:$4 sm:$0xff]  }
 0x302   :  { %4435 = vmatpush1.bf16.msra.mxu1 %v8992_v29  ;;  %v9016_v29 = vld [vmem:[#allocation14 + $0x270] ss:$24 sps:$4 sm:$0xff]  }
 0x303   :  { %4436 = vmatprep.subr.bf16.mxu1 %v9000_v31  ;;  %v9021_v31 = vld [vmem:[#allocation14 + $0x27c] ss:$24 sps:$4 sm:$0xff]  }
 0x306   :  { %4437 = vmatpush1.bf16.msra.mxu1 %v8998_v33 }
 0x307   :  { %4438 = vmatprep.subr.bf16.mxu1 %v9006_v63  ;;  %v9019_v63 = vld [vmem:[#allocation14 + $0x278] ss:$24 sps:$4 sm:$0xff]  }
 0x30a   :  { %4439 = vmatpush2.bf16.msra.mxu1 %v9004_v34  ;;  %v9024_v34 = vld [vmem:[#allocation14 + $0x244] ss:$24 sps:$4 sm:$0xff]  }
 0x30b   :  { %4440 = vmatprep.subr.bf16.mxu1 %v9012_v20  ;;  %v9114_v20 = vld [vmem:[#allocation17 + $0xf4] ss:$24 sps:$4 sm:$0xff]  }
 0x30e   :  { %4441 = vmatpush2.bf16.msra.mxu1 %v9010_v23  ;;  %v9112_v23 = vld [vmem:[#allocation17 + $0xf0] ss:$24 sps:$4 sm:$0xff]  }
 0x30f   :  { %4442 = vmatprep.subr.bf16.mxu1 %v9018_v28  ;;  %v9064_v28 = vld [vmem:[#allocation14 + $0xa0] ss:$24 sps:$4 sm:$0xff]  }
 0x312   :  { %4443 = vmatpush2.bf16.msra.mxu1 %v9016_v29  ;;  %v9069_v29 = vld [vmem:[#allocation14 + $0x74] ss:$24 sps:$4 sm:$0xff]  }
 0x313   :  { %4444 = vmatprep.subr.bf16.mxu1 %v9024_v34  ;;  %v9072_v34 = vld [vmem:[#allocation14 + $0x44] ss:$24 sps:$4 sm:$0xff]  }
 0x31d   :  { %v2989_v11 = vpop.f32.mrf.mxu1 }
 0x31e   :  { %v3030_v9 = vpop.f32.mrf.mxu0  ;;  %v2990_v32 = vadd.f32 %v2989_v11, %v1258_v35  ;;  %v8989_v11 = vld [vmem:[#allocation14 + $0x68] ss:$24 sps:$4 sm:$0xff]  }
 0x31f   :  { %v2991_v13 = vpop.f32.mrf.mxu1  ;;  %v9022_v35 = vld [vmem:[#allocation14 + $0x240] ss:$24 sps:$4 sm:$0xff]  }
 0x320   :  { %v3032_v14 = vpop.f32.mrf.mxu0  ;;  %v2992_v37 = vadd.f32 %v2991_v13, %v1262_v36  ;;  %v3031_v10 = vadd.f32 %v3030_v9, %v2990_v32  ;;  %v8997_v9 = vld [vmem:[#allocation14 + $0x3c] ss:$24 sps:$4 sm:$0xff]   ;;  %v8995_v13 = vld [vmem:[#allocation14 + $0x38] ss:$24 sps:$4 sm:$0xff]   ;;  %v9025_v36 = vld [vmem:[#allocation14 + $0x248] ss:$24 sps:$4 sm:$0xff]   ;;  %4445 = vmatpush2.bf16.msra.mxu1 %v9022_v35 }
 0x321   :  { %v2993_v15 = vpop.f32.mrf.mxu1  ;;  %v9027_v32 = vld [vmem:[#allocation14 + $0x24c] ss:$24 sps:$4 sm:$0xff]  }
 0x322   :  { %v3034_v16 = vpop.f32.mrf.mxu0  ;;  %v3033_v39 = vadd.f32 %v3032_v14, %v2992_v37  ;;  %v9003_v14 = vld [vmem:[#allocation14 + $0xc] ss:$24 sps:$4 sm:$0xff]   ;;  %v9001_v15 = vld [vmem:[#allocation14 + $0x8] ss:$24 sps:$4 sm:$0xff]  }
 0x323   :  { %v2994_v2 = vpop.f32.mrf.mxu1  ;;  %v3186_v16 = vld [vmem:[#allocation12] sm:$0x3]  ;;  %v9030_v37 = vld [vmem:[#allocation14 + $0x214] ss:$24 sps:$4 sm:$0xff]  }
 0x324   :  { %v3035_v17 = vpop.f32.mrf.mxu0  ;;  %v3191_v2 = vrot.slane %v3186_v16, %v10023_v42  ;;  %4446 = vmatprep.subr.bf16.mxu1 %v9030_v37  ;;  %v9130_v35 = vld [vmem:[#allocation17 + $0x60] ss:$24 sps:$4 sm:$0xff]   ;;  %v9075_v37 = vld [vmem:[#allocation14 + $0x14] ss:$24 sps:$4 sm:$0xff]  }
 0x325   :  { %v3195_v17 = vrot.slane %v3186_v16, %v10029_v44  ;;  %v9052_v16 = vld [vmem:[#allocation14 + $0x160] ss:$24 sps:$4 sm:$0xff]  }
 0x35d   :  { %v3071_v38 = vpop.f32.mrf.mxu1 }
 0x35e   :  { %v3072_v46 = vadd.f32 %v3071_v38, %v3031_v10  ;;  %v9028_v10 = vld [vmem:[#allocation14 + $0x210] ss:$24 sps:$4 sm:$0xff]   ;;  %v9033_v38 = vld [vmem:[#allocation14 + $0x21c] ss:$24 sps:$4 sm:$0xff]  }
 0x35f   :  { %v3073_v47 = vpop.f32.mrf.mxu1  ;;  %4447 = vmatpush2.bf16.msra.mxu1 %v9028_v10  ;;  %v9136_v10 = vld [vmem:[#allocation17 + $0x30] ss:$24 sps:$4 sm:$0xff]  }
 0x360   :  { %v3074_v48 = vadd.f32 %v3073_v47, %v3033_v39  ;;  %v3082_v49 = vmax.f32 %v3072_v46, 0.0  ;;  %v9031_v39 = vld [vmem:[#allocation14 + $0x218] ss:$24 sps:$4 sm:$0xff]   ;;  %v9036_v46 = vld [vmem:[#allocation14 + $0x1e4] ss:$24 sps:$4 sm:$0xff]  }
 0x361   :  { %v3075_v50 = vpop.f32.mrf.mxu1  ;;  %v9039_v47 = vld [vmem:[#allocation14 + $0x1ec] ss:$24 sps:$4 sm:$0xff]   ;;  %4448 = vmatprep.subr.bf16.mxu1 %v9036_v46 }
 0x362   :  { %v3083_v51 = vmax.f32 %v3074_v48, 0.0  ;;  %v3088_v55 = vpack.c.bf16 %v3082_v49, %v3082_v49  ;;  %v9034_v48 = vld [vmem:[#allocation14 + $0x1e0] ss:$24 sps:$4 sm:$0xff]   ;;  %v9042_v50 = vld [vmem:[#allocation14 + $0x1b4] ss:$24 sps:$4 sm:$0xff]  }
 0x363   :  { %v3076_v52 = vpop.f32.mrf.mxu1  ;;  %v9037_v49 = vld [vmem:[#allocation14 + $0x1e8] ss:$24 sps:$4 sm:$0xff]   ;;  %4449 = vmatpush2.bf16.msra.mxu1 %v9034_v48  ;;  %v9078_v46 = vld [vmem:[#allocation14 + $0x2e4] ss:$24 sps:$4 sm:$0xff]  }
 0x364   :  { %v3089_v53 = vpack.c.bf16 %v3083_v51, %v3083_v51  ;;  %v9045_v51 = vld [vmem:[#allocation14 + $0x1bc] ss:$24 sps:$4 sm:$0xff]   ;;  %v9040_v52 = vld [vmem:[#allocation14 + $0x1b0] ss:$24 sps:$4 sm:$0xff]   ;;  %4450 = vmatprep.subr.bf16.mxu1 %v9042_v50 }
 0x365   :  { %v9150_v48 = vld [vmem:[#allocation17 + $0x2d4] ss:$24 sps:$4 sm:$0xff]  }
 0x366   :  { %3792 = vmatprep.mubr.bf16.mxu0 %v3089_v53  ;;  %v9043_v53 = vld [vmem:[#allocation14 + $0x1b8] ss:$24 sps:$4 sm:$0xff]   ;;  %v9081_v50 = vld [vmem:[#allocation14 + $0x2b4] ss:$24 sps:$4 sm:$0xff]  }
 0x367   :  { %3793 = vmatmul.mubr.bf16.vlgmr.msra.gmra.mxu0 %v3088_v55  ;;  %v3712_v57 = vpop.f32.mrf.mxu0  ;;  %v9051_v55 = vld [vmem:[#allocation14 + $0x18c] ss:$24 sps:$4 sm:$0xff]   ;;  %4451 = vmatpush2.bf16.msra.mxu1 %v9040_v52 }
 0x368   :  { %4464 = vmatpush1.bf16.msra.mxu0 %v8959_v54  ;;  %v3713_v18 = vadd.f32 %v3712_v57, %v3191_v2  ;;  %v9048_v54 = vld [vmem:[#allocation14 + $0x184] ss:$24 sps:$4 sm:$0xff]   ;;  %v9049_v57 = vld [vmem:[#allocation14 + $0x188] ss:$24 sps:$4 sm:$0xff]   ;;  %v9057_v2 = vld [vmem:[#allocation14 + $0x134] ss:$24 sps:$4 sm:$0xff]  }
 0x369   :  { %v3714_v58 = vpop.f32.mrf.mxu0  ;;  %4465 = vmatprep.subr.bf16.mxu0 %v8967_v56  ;;  %v9046_v56 = vld [vmem:[#allocation14 + $0x180] ss:$24 sps:$4 sm:$0xff]   ;;  %4452 = vmatprep.subr.bf16.mxu1 %v9048_v54  ;;  %v9084_v54 = vld [vmem:[#allocation14 + $0x284] ss:$24 sps:$4 sm:$0xff]  }
 0x36a   :  { %v3715_v21 = vadd.f32 %v3714_v58, %v3195_v17  ;;  %v9102_v58 = vld [vmem:[#allocation17 + $0x154] ss:$24 sps:$4 sm:$0xff]   ;;  %v9100_v17 = vld [vmem:[#allocation17 + $0x150] ss:$24 sps:$4 sm:$0xff]   ;;  %v9156_v52 = vld [vmem:[#allocation17 + $0x2a4] ss:$24 sps:$4 sm:$0xff]  }
 0x36b   :  { %v3716_v60 = vpop.f32.mrf.mxu0  ;;  %4453 = vmatpush2.bf16.msra.mxu1 %v9046_v56  ;;  %v9162_v56 = vld [vmem:[#allocation17 + $0x274] ss:$24 sps:$4 sm:$0xff]  }
 0x36c   :  { %4466 = vmatpush1.bf16.msra.mxu0 %v8965_v12  ;;  %v9054_v12 = vld [vmem:[#allocation14 + $0x164] ss:$24 sps:$4 sm:$0xff]  }
 0x36d   :  { %v3717_v24 = vpop.f32.mrf.mxu0  ;;  %4467 = vmatprep.subr.bf16.mxu0 %v8973_v59  ;;  %4504 = vmatprep.subr.bf16.mxu1 %v9054_v12  ;;  %v9087_v12 = vld [vmem:[#allocation14 + $0x254] ss:$24 sps:$4 sm:$0xff]  }
 0x370   :  { %4468 = vmatpush1.bf16.msra.mxu0 %v8971_v61 }
 0x371   :  { %4469 = vmatprep.subr.bf16.mxu0 %v8979_v7 }
 0x374   :  { %4470 = vmatpush1.bf16.msra.mxu0 %v8977_v62 }
 0x375   :  { %4471 = vmatprep.subr.bf16.mxu0 %v8985_v0 }
 0x378   :  { %4472 = vmatpush1.bf16.msra.mxu0 %v8983_v41 }
 0x379   :  { %4473 = vmatprep.subr.bf16.mxu0 %v8991_v1 }
 0x37c   :  { %4474 = vmatpush1.bf16.msra.mxu0 %v8989_v11  ;;  %v3803_v11 = vld [vmem:[%s10211_s1] sm:$0xff]  ;;  %s9878_s1 = smov [#allocation23]  }
 0x37d   :  { %4475 = vmatprep.subr.bf16.mxu0 %v8997_v9 }
 0x380   :  { %4476 = vmatpush1.bf16.msra.mxu0 %v8995_v13 }
 0x381   :  { %4477 = vmatprep.subr.bf16.mxu0 %v9003_v14 }
 0x384   :  { %4478 = vmatpush1.bf16.msra.mxu0 %v9001_v15 }
 0x385   :  { %4479 = vmatprep.subr.bf16.mxu0 %v9009_v30  ;;  %v9108_v30 = vld [vmem:[#allocation17 + $0x124] ss:$24 sps:$4 sm:$0xff]  }
 0x388   :  { %4480 = vmatpush2.bf16.msra.mxu0 %v9007_v40  ;;  %v9055_v40 = vld [vmem:[#allocation14 + $0x130] ss:$24 sps:$4 sm:$0xff]  }
 0x389   :  { %4481 = vmatprep.subr.bf16.mxu0 %v9015_v25  ;;  %v9120_v25 = vld [vmem:[#allocation17 + $0xc4] ss:$24 sps:$4 sm:$0xff]  }
 0x38c   :  { %4482 = vmatpush2.bf16.msra.mxu0 %v9013_v8  ;;  %v9066_v8 = vld [vmem:[#allocation14 + $0xa4] ss:$24 sps:$4 sm:$0xff]  }
 0x38d   :  { %4483 = vmatprep.subr.bf16.mxu0 %v9021_v31  ;;  %v9124_v31 = vld [vmem:[#allocation17 + $0x90] ss:$24 sps:$4 sm:$0xff]  }
 0x390   :  { %4484 = vmatpush2.bf16.msra.mxu0 %v9019_v63  ;;  %v9067_v63 = vld [vmem:[#allocation14 + $0x70] ss:$24 sps:$4 sm:$0xff]  }
 0x391   :  { %4485 = vmatprep.subr.bf16.mxu0 %v9027_v32  ;;  %v9070_v32 = vld [vmem:[#allocation14 + $0x40] ss:$24 sps:$4 sm:$0xff]  }
 0x394   :  { %4486 = vmatpush2.bf16.msra.mxu0 %v9025_v36  ;;  %v9138_v36 = vld [vmem:[#allocation17 + $0x34] ss:$24 sps:$4 sm:$0xff]  }
 0x395   :  { %4487 = vmatprep.subr.bf16.mxu0 %v9033_v38  ;;  %v9144_v38 = vld [vmem:[#allocation17 + $0x4] ss:$24 sps:$4 sm:$0xff]  }
 0x398   :  { %4488 = vmatpush2.bf16.msra.mxu0 %v9031_v39  ;;  %v9073_v39 = vld [vmem:[#allocation14 + $0x10] ss:$24 sps:$4 sm:$0xff]  }
 0x399   :  { %4489 = vmatprep.subr.bf16.mxu0 %v9039_v47  ;;  %v9142_v47 = vld [vmem:[#allocation17] ss:$24 sps:$4 sm:$0xff]  }
 0x39c   :  { %4490 = vmatpush2.bf16.msra.mxu0 %v9037_v49  ;;  %v9076_v49 = vld [vmem:[#allocation14 + $0x2e0] ss:$24 sps:$4 sm:$0xff]  }
 0x39d   :  { %4491 = vmatprep.subr.bf16.mxu0 %v9045_v51  ;;  %v9148_v51 = vld [vmem:[#allocation17 + $0x2d0] ss:$24 sps:$4 sm:$0xff]  }
 0x3a0   :  { %4492 = vmatpush2.bf16.msra.mxu0 %v9043_v53  ;;  %v9079_v53 = vld [vmem:[#allocation14 + $0x2b0] ss:$24 sps:$4 sm:$0xff]  }
 0x3a1   :  { %4493 = vmatprep.subr.bf16.mxu0 %v9051_v55  ;;  %v9154_v55 = vld [vmem:[#allocation17 + $0x2a0] ss:$24 sps:$4 sm:$0xff]  }
 0x3a4   :  { %4494 = vmatpush2.bf16.msra.mxu0 %v9049_v57  ;;  %v9082_v57 = vld [vmem:[#allocation14 + $0x280] ss:$24 sps:$4 sm:$0xff]  }
 0x3a5   :  { %6317 = vmatprep.subr.bf16.mxu0 %v9102_v58  ;;  %v9160_v58 = vld [vmem:[#allocation17 + $0x270] ss:$24 sps:$4 sm:$0xff]  }
 0x3a9   :  { %v3753_v19 = vpop.f32.mrf.mxu1 }
 0x3aa   :  { %v10116_v22 = vadd.f32 %v3753_v19, %v3713_v18  ;;  %v9060_v18 = vld [vmem:[#allocation14 + $0x104] ss:$24 sps:$4 sm:$0xff]  }
 0x3ab   :  { %v3755_v26 = vpop.f32.mrf.mxu1  ;;  %v9106_v19 = vld [vmem:[#allocation17 + $0x120] ss:$24 sps:$4 sm:$0xff]  }
 0x3ac   :  { %v3756_v27 = vadd.f32 %v3755_v26, %v3715_v21  ;;  %v9058_v21 = vld [vmem:[#allocation14 + $0x100] ss:$24 sps:$4 sm:$0xff]   ;;  %v9061_v26 = vld [vmem:[#allocation14 + $0xd0] ss:$24 sps:$4 sm:$0xff]  }
 0x3ad   :  { %v3757_v3 = vpop.f32.mrf.mxu1 }
 0x3ae   :  { %v9126_v3 = vld [vmem:[#allocation17 + $0x94] ss:$24 sps:$4 sm:$0xff]  }
 0x3af   :  { %v3758_v33 = vpop.f32.mrf.mxu1 }
 0x3b0   :  { %v9132_v33 = vld [vmem:[#allocation17 + $0x64] ss:$24 sps:$4 sm:$0xff]  }
 0x427   :  { %v3794_v59 = vpop.f32.mrf.mxu0 }
 0x428   :  { %v3795_v60 = vadd.f32 %v3794_v59, %v10116_v22  ;;  %v9063_v22 = vld [vmem:[#allocation14 + $0xd4] ss:$24 sps:$4 sm:$0xff]  }
 0x429   :  { %v3796_v61 = vpop.f32.mrf.mxu0  ;;  %v9168_v59 = vld [vmem:[#allocation17 + $0x244] ss:$24 sps:$4 sm:$0xff]  }
 0x42a   :  { %7211 = vst [vmem:[%s10225_s15] sm:$0xff] %v3795_v60  ;;  %v3797_v24 = vadd.f32 %v3796_v61, %v3756_v27  ;;  %v9118_v27 = vld [vmem:[#allocation17 + $0xc0] ss:$24 sps:$4 sm:$0xff]  }
 0x42b   :  { %v3798_v7 = vpop.f32.mrf.mxu0  ;;  %v9090_v61 = vld [vmem:[#allocation14 + $0x224] ss:$24 sps:$4 sm:$0xff]  }
 0x42c   :  { %v3801_v62 = vmax.f32 %v3797_v24, -4.0  ;;  %v9166_v24 = vld [vmem:[#allocation17 + $0x240] ss:$24 sps:$4 sm:$0xff]   ;;  %v9174_v7 = vld [vmem:[#allocation17 + $0x214] ss:$24 sps:$4 sm:$0xff]  }
 0x42d   :  { %v3799_v0 = vpop.f32.mrf.mxu0 }
 0x42e   :  { %v3802_v41 = vmin.f32 %v3801_v62, 15.0  ;;  %v9088_v62 = vld [vmem:[#allocation14 + $0x220] ss:$24 sps:$4 sm:$0xff]   ;;  %v9093_v0 = vld [vmem:[#allocation14 + $0x1f4] ss:$24 sps:$4 sm:$0xff]  }
 0x430   :  { %v3804_v1 = vmul.f32 1.442695, %v3802_v41  ;;  %7212 = vst [vmem:[%s10225_s15 + $0x8] sm:$0xff] %v3802_v41  ;;  %v9172_v41 = vld [vmem:[#allocation17 + $0x210] ss:$24 sps:$4 sm:$0xff]   ;;  %s7219_s15 = sshll.u32 %s9878_s1, 4  ;;  %s7220_s15 = int_to_ptr.vmem [resolvable:$true] %s7219_s15 }
 0x431   :  { %s9824_s27 = scalar_lea.vmem %s7220_s15, 128  ;;  %p9829_p5 = scmp.lt.s32.totalorder %s7220_s15, %s7220_s15 }
 0x432   :  { %9580 = vpow2.f32 %v3804_v1  ;;  %v9180_v1 = vld [vmem:[#allocation17 + $0x1e4] ss:$24 sps:$4 sm:$0xff]   ;;  %p9825_p4 = scmp.ne.s32.totalorder %s7220_s15, %s9824_s27  ;;  %p9830_p6 = scmp.lt.s32.totalorder %s9824_s27, %s9824_s27 }
 0x434   :  { %p9831_p7 = por %p9830_p6, %p9829_p5 }
 0x436   :  { %p9832_p8 = pnand %p9831_p7, %p9825_p4 }
 0x43f   :  { %v9581_v9 = vpop.eup %9580 }
 0x440   :  { %v3806_v13 = vmul.f32 %v9581_v9, %v3803_v11  ;;  %v9091_v11 = vld [vmem:[#allocation14 + $0x1f0] ss:$24 sps:$4 sm:$0xff]   ;;  %v9096_v9 = vld [vmem:[#allocation14 + $0x1c4] ss:$24 sps:$4 sm:$0xff]  }
 0x442   :  { %v3807_v14 = vadd.f32 %v3806_v13, %v3795_v60  ;;  %v9085_v60 = vld [vmem:[#allocation14 + $0x250] ss:$24 sps:$4 sm:$0xff]  }
 0x443   :  { %v9178_v13 = vld [vmem:[#allocation17 + $0x1e0] ss:$24 sps:$4 sm:$0xff]  }
 0x444   :  { %v3813_v15 = vpack.c.bf16 %v3807_v14, %v3807_v14  ;;  %v9094_v14 = vld [vmem:[#allocation14 + $0x1c0] ss:$24 sps:$4 sm:$0xff]  }
 0x446   :  { %4454 = vmatprep.mubr.bf16.mxu1 %v3813_v15  ;;  %4495 = vmatprep.mubr.bf16.mxu0 %v3813_v15 }
 0x447   :  { %4455 = vmatmul.mubr.bf16.vlgmr.msra.gmra.mxu1 %v10013_v4  ;;  %4496 = vmatmul.mubr.bf16.vlgmr.msra.gmra.mxu0 %v10013_v4 }
 0x448   :  { %4505 = vmatpush1.bf16.msra.mxu1 %v9052_v16  ;;  %4536 = vmatprep.mubr.bf16.mxu1 %v3813_v15  ;;  %v9099_v15 = vld [vmem:[#allocation14 + $0x194] ss:$24 sps:$4 sm:$0xff]   ;;  %v9097_v16 = vld [vmem:[#allocation14 + $0x190] ss:$24 sps:$4 sm:$0xff]  }
 0x449   :  { %4506 = vmatprep.subr.bf16.mxu1 %v9057_v2  ;;  %6318 = vmatpush1.bf16.msra.mxu0 %v9100_v17  ;;  %v9105_v2 = vld [vmem:[#allocation17 + $0x454] ss:$24 sps:$4 sm:$0xff]   ;;  %v9103_v17 = vld [vmem:[#allocation17 + $0x450] ss:$24 sps:$4 sm:$0xff]  }
 0x44a   :  { %6319 = vmatprep.subr.bf16.mxu0 %v9108_v30  ;;  %v9111_v30 = vld [vmem:[#allocation17 + $0x424] ss:$24 sps:$4 sm:$0xff]  }
 0x44c   :  { %4507 = vmatpush1.bf16.msra.mxu1 %v9055_v40  ;;  %v9186_v40 = vld [vmem:[#allocation17 + $0x1b4] ss:$24 sps:$4 sm:$0xff]  }
 0x44d   :  { %4508 = vmatprep.subr.bf16.mxu1 %v9060_v18  ;;  %6320 = vmatpush1.bf16.msra.mxu0 %v9106_v19  ;;  %v9109_v18 = vld [vmem:[#allocation17 + $0x420] ss:$24 sps:$4 sm:$0xff]   ;;  %v9184_v19 = vld [vmem:[#allocation17 + $0x1b0] ss:$24 sps:$4 sm:$0xff]  }
 0x44e   :  { %6321 = vmatprep.subr.bf16.mxu0 %v9114_v20  ;;  %v9117_v20 = vld [vmem:[#allocation17 + $0x3f4] ss:$24 sps:$4 sm:$0xff]  }
 0x450   :  { %4509 = vmatpush1.bf16.msra.mxu1 %v9058_v21  ;;  %v9192_v21 = vld [vmem:[#allocation17 + $0x184] ss:$24 sps:$4 sm:$0xff]  }
 0x451   :  { %4510 = vmatprep.subr.bf16.mxu1 %v9063_v22  ;;  %6322 = vmatpush1.bf16.msra.mxu0 %v9112_v23  ;;  %v9115_v22 = vld [vmem:[#allocation17 + $0x3f0] ss:$24 sps:$4 sm:$0xff]   ;;  %v9190_v23 = vld [vmem:[#allocation17 + $0x180] ss:$24 sps:$4 sm:$0xff]  }
 0x452   :  { %6323 = vmatprep.subr.bf16.mxu0 %v9120_v25  ;;  %v9123_v25 = vld [vmem:[#allocation17 + $0x3c4] ss:$24 sps:$4 sm:$0xff]  }
 0x454   :  { %4511 = vmatpush1.bf16.msra.mxu1 %v9061_v26  ;;  %v9198_v26 = vld [vmem:[#allocation17 + $0x754] ss:$24 sps:$4 sm:$0xff]  }
 0x455   :  { %4512 = vmatprep.subr.bf16.mxu1 %v9066_v8  ;;  %6324 = vmatpush1.bf16.msra.mxu0 %v9118_v27  ;;  %v9121_v8 = vld [vmem:[#allocation17 + $0x3c0] ss:$24 sps:$4 sm:$0xff]   ;;  %v9127_v27 = vld [vmem:[#allocation17 + $0x390] ss:$24 sps:$4 sm:$0xff]  }
 0x456   :  { %6325 = vmatprep.subr.bf16.mxu0 %v9126_v3  ;;  %v9135_v3 = vld [vmem:[#allocation17 + $0x364] ss:$24 sps:$4 sm:$0xff]  }
 0x458   :  { %4513 = vmatpush1.bf16.msra.mxu1 %v9064_v28  ;;  %v9133_v28 = vld [vmem:[#allocation17 + $0x360] ss:$24 sps:$4 sm:$0xff]  }
 0x459   :  { %4514 = vmatprep.subr.bf16.mxu1 %v9069_v29  ;;  %6326 = vmatpush1.bf16.msra.mxu0 %v9124_v31  ;;  %v9141_v29 = vld [vmem:[#allocation17 + $0x334] ss:$24 sps:$4 sm:$0xff]   ;;  %v9139_v31 = vld [vmem:[#allocation17 + $0x330] ss:$24 sps:$4 sm:$0xff]  }
 0x45a   :  { %6327 = vmatprep.subr.bf16.mxu0 %v9132_v33  ;;  %v9147_v33 = vld [vmem:[#allocation17 + $0x304] ss:$24 sps:$4 sm:$0xff]  }
 0x45c   :  { %4515 = vmatpush1.bf16.msra.mxu1 %v9067_v63  ;;  %v9145_v63 = vld [vmem:[#allocation17 + $0x300] ss:$24 sps:$4 sm:$0xff]  }
 0x45d   :  { %4516 = vmatprep.subr.bf16.mxu1 %v9072_v34  ;;  %6328 = vmatpush1.bf16.msra.mxu0 %v9130_v35  ;;  %v9153_v34 = vld [vmem:[#allocation17 + $0x5d4] ss:$24 sps:$4 sm:$0xff]   ;;  %v9151_v35 = vld [vmem:[#allocation17 + $0x5d0] ss:$24 sps:$4 sm:$0xff]  }
 0x45e   :  { %6329 = vmatprep.subr.bf16.mxu0 %v9138_v36  ;;  %v9159_v36 = vld [vmem:[#allocation17 + $0x5a4] ss:$24 sps:$4 sm:$0xff]  }
 0x460   :  { %4517 = vmatpush1.bf16.msra.mxu1 %v9070_v32  ;;  %v9157_v32 = vld [vmem:[#allocation17 + $0x5a0] ss:$24 sps:$4 sm:$0xff]  }
 0x461   :  { %4518 = vmatprep.subr.bf16.mxu1 %v9075_v37  ;;  %6330 = vmatpush1.bf16.msra.mxu0 %v9136_v10  ;;  %v9165_v37 = vld [vmem:[#allocation17 + $0x574] ss:$24 sps:$4 sm:$0xff]   ;;  %v9163_v10 = vld [vmem:[#allocation17 + $0x570] ss:$24 sps:$4 sm:$0xff]  }
 0x462   :  { %6331 = vmatprep.subr.bf16.mxu0 %v9144_v38  ;;  %v9171_v38 = vld [vmem:[#allocation17 + $0x544] ss:$24 sps:$4 sm:$0xff]  }
 0x464   :  { %4519 = vmatpush1.bf16.msra.mxu1 %v9073_v39  ;;  %v9169_v39 = vld [vmem:[#allocation17 + $0x540] ss:$24 sps:$4 sm:$0xff]  }
 0x465   :  { %4520 = vmatprep.subr.bf16.mxu1 %v9078_v46  ;;  %6332 = vmatpush1.bf16.msra.mxu0 %v9142_v47  ;;  %v9177_v46 = vld [vmem:[#allocation17 + $0x514] ss:$24 sps:$4 sm:$0xff]   ;;  %v9175_v47 = vld [vmem:[#allocation17 + $0x510] ss:$24 sps:$4 sm:$0xff]  }
 0x466   :  { %6333 = vmatprep.subr.bf16.mxu0 %v9150_v48  ;;  %v9183_v48 = vld [vmem:[#allocation17 + $0x4e4] ss:$24 sps:$4 sm:$0xff]  }
 0x468   :  { %4521 = vmatpush2.bf16.msra.mxu1 %v9076_v49  ;;  %v9181_v49 = vld [vmem:[#allocation17 + $0x4e0] ss:$24 sps:$4 sm:$0xff]  }
 0x469   :  { %4522 = vmatprep.subr.bf16.mxu1 %v9081_v50  ;;  %6334 = vmatpush2.bf16.msra.mxu0 %v9148_v51  ;;  %v9189_v50 = vld [vmem:[#allocation17 + $0x4b4] ss:$24 sps:$4 sm:$0xff]   ;;  %v9187_v51 = vld [vmem:[#allocation17 + $0x4b0] ss:$24 sps:$4 sm:$0xff]  }
 0x46a   :  { %6335 = vmatprep.subr.bf16.mxu0 %v9156_v52  ;;  %v9195_v52 = vld [vmem:[#allocation17 + $0x484] ss:$24 sps:$4 sm:$0xff]  }
 0x46c   :  { %4523 = vmatpush2.bf16.msra.mxu1 %v9079_v53  ;;  %v9193_v53 = vld [vmem:[#allocation17 + $0x480] ss:$24 sps:$4 sm:$0xff]  }
 0x46d   :  { %4524 = vmatprep.subr.bf16.mxu1 %v9084_v54  ;;  %6336 = vmatpush2.bf16.msra.mxu0 %v9154_v55  ;;  %v9201_v54 = vld [vmem:[#allocation17 + $0x15c] ss:$24 sps:$4 sm:$0xff]  }
 0x46e   :  { %6337 = vmatprep.subr.bf16.mxu0 %v9162_v56  ;;  %v10131_v55 = vld [vmem:[#allocation15] sm:$0x3f] }
 0x46f   :  { %v3915_v56 = vrot.slane %v10131_v55, %v10023_v42 }
 0x470   :  { %4525 = vmatpush2.bf16.msra.mxu1 %v9082_v57  ;;  %v3923_v57 = vrot.slane %v10131_v55, %v10026_v43 }
 0x471   :  { %4526 = vmatprep.subr.bf16.mxu1 %v9087_v12  ;;  %6338 = vmatpush2.bf16.msra.mxu0 %v9160_v58  ;;  %v3919_v12 = vrot.slane %v10131_v55, %v10029_v44  ;;  %v3927_v58 = vrot.slane %v10131_v55, %v10032_v45 }
 0x472   :  { %6339 = vmatprep.subr.bf16.mxu0 %v9168_v59 }
 0x474   :  { %4527 = vmatpush2.bf16.msra.mxu1 %v9085_v60 }
 0x475   :  { %4528 = vmatprep.subr.bf16.mxu1 %v9090_v61  ;;  %6340 = vmatpush2.bf16.msra.mxu0 %v9166_v24 }
 0x476   :  { %6341 = vmatprep.subr.bf16.mxu0 %v9174_v7 }
 0x478   :  { %4529 = vmatpush2.bf16.msra.mxu1 %v9088_v62 }
 0x479   :  { %4530 = vmatprep.subr.bf16.mxu1 %v9093_v0  ;;  %6342 = vmatpush2.bf16.msra.mxu0 %v9172_v41 }
 0x47a   :  { %6343 = vmatprep.subr.bf16.mxu0 %v9180_v1 }
 0x47c   :  { %4531 = vmatpush2.bf16.msra.mxu1 %v9091_v11 }
 0x47d   :  { %4532 = vmatprep.subr.bf16.mxu1 %v9096_v9  ;;  %6344 = vmatpush2.bf16.msra.mxu0 %v9178_v13 }
 0x47e   :  { %6345 = vmatprep.subr.bf16.mxu0 %v9186_v40 }
 0x480   :  { %4533 = vmatpush2.bf16.msra.mxu1 %v9094_v14 }
 0x481   :  { %4534 = vmatprep.subr.bf16.mxu1 %v9099_v15  ;;  %6346 = vmatpush2.bf16.msra.mxu0 %v9184_v19  ;;  %v9199_v19 = vld [vmem:[#allocation17 + $0x158] ss:$24 sps:$4 sm:$0xff]  }
 0x482   :  { %6347 = vmatprep.subr.bf16.mxu0 %v9192_v21  ;;  %v9204_v21 = vld [vmem:[#allocation17 + $0x724] ss:$24 sps:$4 sm:$0xff]  }
 0x484   :  { %4535 = vmatpush2.bf16.msra.mxu1 %v9097_v16 }
 0x485   :  { %6358 = vmatprep.subr.bf16.mxu1 %v9105_v2  ;;  %6348 = vmatpush2.bf16.msra.mxu0 %v9190_v23  ;;  %v9202_v23 = vld [vmem:[#allocation17 + $0x720] ss:$24 sps:$4 sm:$0xff]  }
 0x486   :  { %6399 = vmatprep.subr.bf16.mxu0 %v9198_v26  ;;  %v9210_v26 = vld [vmem:[#allocation17 + $0x6f4] ss:$24 sps:$4 sm:$0xff]  }
 0x487   :  { %4537 = vmatmul.mubr.bf16.vlgmr.msra.gmra.mxu1 %v10013_v4  ;;  %v9129_v4 = vld [vmem:[#allocation17 + $0x394] ss:$24 sps:$4 sm:$0xff]  }
 0x488   :  { %6359 = vmatpush1.bf16.msra.mxu1 %v9103_v17 }
 0x489   :  { %6360 = vmatprep.subr.bf16.mxu1 %v9111_v30 }
 0x48c   :  { %6361 = vmatpush1.bf16.msra.mxu1 %v9109_v18  ;;  %v9196_v18 = vld [vmem:[#allocation17 + $0x750] ss:$24 sps:$4 sm:$0xff]  }
 0x48d   :  { %6362 = vmatprep.subr.bf16.mxu1 %v9117_v20 }
 0x490   :  { %6363 = vmatpush1.bf16.msra.mxu1 %v9115_v22  ;;  %v9207_v22 = vld [vmem:[#allocation17 + $0x12c] ss:$24 sps:$4 sm:$0xff]  }
 0x491   :  { %6364 = vmatprep.subr.bf16.mxu1 %v9123_v25  ;;  %v9205_v25 = vld [vmem:[#allocation17 + $0x128] ss:$24 sps:$4 sm:$0xff]  }
 0x494   :  { %6365 = vmatpush1.bf16.msra.mxu1 %v9121_v8  ;;  %v9213_v8 = vld [vmem:[#allocation17 + $0xfc] ss:$24 sps:$4 sm:$0xff]  }
 0x495   :  { %6366 = vmatprep.subr.bf16.mxu1 %v9129_v4  ;;  %v9208_v4 = vld [vmem:[#allocation17 + $0x6f0] ss:$24 sps:$4 sm:$0xff]  }
 0x498   :  { %6367 = vmatpush1.bf16.msra.mxu1 %v9127_v27  ;;  %v9211_v27 = vld [vmem:[#allocation17 + $0xf8] ss:$24 sps:$4 sm:$0xff]  }
 0x499   :  { %6368 = vmatprep.subr.bf16.mxu1 %v9135_v3  ;;  %v9216_v3 = vld [vmem:[#allocation17 + $0x6c4] ss:$24 sps:$4 sm:$0xff]  }
 0x49c   :  { %6369 = vmatpush1.bf16.msra.mxu1 %v9133_v28  ;;  %v9219_v28 = vld [vmem:[#allocation17 + $0xcc] ss:$24 sps:$4 sm:$0xff]  }
 0x49d   :  { %6370 = vmatprep.subr.bf16.mxu1 %v9141_v29  ;;  %v9214_v29 = vld [vmem:[#allocation17 + $0x6c0] ss:$24 sps:$4 sm:$0xff]  }
 0x4a0   :  { %6371 = vmatpush1.bf16.msra.mxu1 %v9139_v31  ;;  %v9217_v31 = vld [vmem:[#allocation17 + $0xc8] ss:$24 sps:$4 sm:$0xff]  }
 0x4a1   :  { %6372 = vmatprep.subr.bf16.mxu1 %v9147_v33  ;;  %v9222_v33 = vld [vmem:[#allocation17 + $0x694] ss:$24 sps:$4 sm:$0xff]  }
 0x4a4   :  { %6373 = vmatpush1.bf16.msra.mxu1 %v9145_v63  ;;  %v9225_v63 = vld [vmem:[#allocation17 + $0x9c] ss:$24 sps:$4 sm:$0xff]  }
 0x4a5   :  { %6374 = vmatprep.subr.bf16.mxu1 %v9153_v34  ;;  %v9220_v34 = vld [vmem:[#allocation17 + $0x690] ss:$24 sps:$4 sm:$0xff]  }
 0x4a8   :  { %6375 = vmatpush2.bf16.msra.mxu1 %v9151_v35  ;;  %v9223_v35 = vld [vmem:[#allocation17 + $0x98] ss:$24 sps:$4 sm:$0xff]  }
 0x4a9   :  { %6376 = vmatprep.subr.bf16.mxu1 %v9159_v36  ;;  %v9228_v36 = vld [vmem:[#allocation17 + $0x664] ss:$24 sps:$4 sm:$0xff]  }
 0x4ac   :  { %6377 = vmatpush2.bf16.msra.mxu1 %v9157_v32  ;;  %v9231_v32 = vld [vmem:[#allocation17 + $0x6c] ss:$24 sps:$4 sm:$0xff]  }
 0x4ad   :  { %6378 = vmatprep.subr.bf16.mxu1 %v9165_v37  ;;  %v9226_v37 = vld [vmem:[#allocation17 + $0x660] ss:$24 sps:$4 sm:$0xff]  }
 0x4b0   :  { %6379 = vmatpush2.bf16.msra.mxu1 %v9163_v10  ;;  %v9229_v10 = vld [vmem:[#allocation17 + $0x68] ss:$24 sps:$4 sm:$0xff]  }
 0x4b1   :  { %6380 = vmatprep.subr.bf16.mxu1 %v9171_v38  ;;  %v9234_v38 = vld [vmem:[#allocation17 + $0x634] ss:$24 sps:$4 sm:$0xff]  }
 0x4b4   :  { %6381 = vmatpush2.bf16.msra.mxu1 %v9169_v39  ;;  %v9237_v39 = vld [vmem:[#allocation17 + $0x3c] ss:$24 sps:$4 sm:$0xff]  }
 0x4b5   :  { %6382 = vmatprep.subr.bf16.mxu1 %v9177_v46  ;;  %v9232_v46 = vld [vmem:[#allocation17 + $0x630] ss:$24 sps:$4 sm:$0xff]  }
 0x4b8   :  { %6383 = vmatpush2.bf16.msra.mxu1 %v9175_v47  ;;  %v9235_v47 = vld [vmem:[#allocation17 + $0x38] ss:$24 sps:$4 sm:$0xff]  }
 0x4b9   :  { %6384 = vmatprep.subr.bf16.mxu1 %v9183_v48  ;;  %v9240_v48 = vld [vmem:[#allocation17 + $0x604] ss:$24 sps:$4 sm:$0xff]  }
 0x4bc   :  { %6385 = vmatpush2.bf16.msra.mxu1 %v9181_v49  ;;  %v9243_v49 = vld [vmem:[#allocation17 + $0xc] ss:$24 sps:$4 sm:$0xff]  }
 0x4bd   :  { %6386 = vmatprep.subr.bf16.mxu1 %v9189_v50  ;;  %v9238_v50 = vld [vmem:[#allocation17 + $0x600] ss:$24 sps:$4 sm:$0xff]  }
 0x4c0   :  { %6387 = vmatpush2.bf16.msra.mxu1 %v9187_v51  ;;  %v9241_v51 = vld [vmem:[#allocation17 + $0x8] ss:$24 sps:$4 sm:$0xff]  }
 0x4c1   :  { %6388 = vmatprep.subr.bf16.mxu1 %v9195_v52  ;;  %v9246_v52 = vld [vmem:[#allocation17 + $0x8d4] ss:$24 sps:$4 sm:$0xff]  }
 0x4c4   :  { %6389 = vmatpush2.bf16.msra.mxu1 %v9193_v53  ;;  %v9249_v53 = vld [vmem:[#allocation17 + $0x2dc] ss:$24 sps:$4 sm:$0xff]  }
 0x4c5   :  { %6440 = vmatprep.subr.bf16.mxu1 %v9201_v54  ;;  %v9244_v54 = vld [vmem:[#allocation17 + $0x8d0] ss:$24 sps:$4 sm:$0xff]  }
 0x507   :  { %v4456_v59 = vpop.f32.mrf.mxu1  ;;  %v4497_v60 = vpop.f32.mrf.mxu0 }
 0x508   :  { %v4457_v61 = vadd.f32 %v4456_v59, %v3915_v56  ;;  %v4498_v24 = vadd.f32 %v4497_v60, %v3923_v57  ;;  %v9247_v56 = vld [vmem:[#allocation17 + $0x2d8] ss:$24 sps:$4 sm:$0xff]   ;;  %v9252_v57 = vld [vmem:[#allocation17 + $0x8a4] ss:$24 sps:$4 sm:$0xff]   ;;  %v9253_v59 = vld [vmem:[#allocation17 + $0x2a8] ss:$24 sps:$4 sm:$0xff]  }
 0x509   :  { %v4458_v7 = vpop.f32.mrf.mxu1  ;;  %v4499_v62 = vpop.f32.mrf.mxu0  ;;  %v9258_v60 = vld [vmem:[#allocation17 + $0x874] ss:$24 sps:$4 sm:$0xff]  }
 0x50a   :  { %v4547_v0 = vmax.f32 %v4498_v24, 0.0  ;;  %v4459_v41 = vadd.f32 %v4458_v7, %v3919_v12  ;;  %v4500_v1 = vadd.f32 %v4499_v62, %v3927_v58  ;;  %v4545_v11 = vmax.f32 %v4457_v61, 0.0  ;;  %v9255_v12 = vld [vmem:[#allocation17 + $0x2ac] ss:$24 sps:$4 sm:$0xff]   ;;  %v9250_v58 = vld [vmem:[#allocation17 + $0x8a0] ss:$24 sps:$4 sm:$0xff]  }
 0x50b   :  { %v4460_v9 = vpop.f32.mrf.mxu1  ;;  %v4501_v13 = vpop.f32.mrf.mxu0  ;;  %v9261_v61 = vld [vmem:[#allocation17 + $0x27c] ss:$24 sps:$4 sm:$0xff]   ;;  %v9256_v24 = vld [vmem:[#allocation17 + $0x870] ss:$24 sps:$4 sm:$0xff]  }
 0x50c   :  { %v4546_v14 = vmax.f32 %v4459_v41, 0.0  ;;  %v4548_v15 = vmax.f32 %v4500_v1, 0.0  ;;  %v10141_v16 = vpack.c.bf16 %v4547_v0, %v4547_v0  ;;  %v10147_v20 = vpack.c.bf16 %v4545_v11, %v4545_v11  ;;  %v9259_v7 = vld [vmem:[#allocation17 + $0x278] ss:$24 sps:$4 sm:$0xff]   ;;  %v9264_v62 = vld [vmem:[#allocation17 + $0x844] ss:$24 sps:$4 sm:$0xff]  }
 0x50d   :  { %v4461_v2 = vpop.f32.mrf.mxu1  ;;  %v4502_v17 = vpop.f32.mrf.mxu0  ;;  %v9267_v0 = vld [vmem:[#allocation17 + $0x24c] ss:$24 sps:$4 sm:$0xff]   ;;  %v9262_v41 = vld [vmem:[#allocation17 + $0x840] ss:$24 sps:$4 sm:$0xff]   ;;  %v9273_v9 = vld [vmem:[#allocation17 + $0x21c] ss:$24 sps:$4 sm:$0xff]  }
 0x50e   :  { %v10143_v30 = vpack.c.bf16 %v4546_v14, %v4546_v14  ;;  %v10145_v40 = vpack.c.bf16 %v4548_v15, %v4548_v15  ;;  %v9265_v1 = vld [vmem:[#allocation17 + $0x248] ss:$24 sps:$4 sm:$0xff]   ;;  %v9270_v11 = vld [vmem:[#allocation17 + $0x814] ss:$24 sps:$4 sm:$0xff]   ;;  %v9271_v14 = vld [vmem:[#allocation17 + $0x218] ss:$24 sps:$4 sm:$0xff]  }
 0x50f   :  { %v9268_v13 = vld [vmem:[#allocation17 + $0x810] ss:$24 sps:$4 sm:$0xff]   ;;  %v9276_v15 = vld [vmem:[#allocation17 + $0x7e4] ss:$24 sps:$4 sm:$0xff]   ;;  %v9274_v17 = vld [vmem:[#allocation17 + $0x7e0] ss:$24 sps:$4 sm:$0xff]  }
 0x510   :  { %6349 = vmatprep.mubr.bf16.mxu0 %v10143_v30  ;;  %6390 = vmatprep.mubr.bf16.mxu1 %v10145_v40  ;;  %v9279_v2 = vld [vmem:[#allocation17 + $0x1ec] ss:$24 sps:$4 sm:$0xff]  }
 0x511   :  { %6350 = vmatmul.mubr.bf16.vlgmr.msra.gmra.mxu0 %v10147_v20  ;;  %6391 = vmatmul.mubr.bf16.vlgmr.msra.gmra.mxu1 %v10141_v16 }
 0x512   :  { %6400 = vmatpush1.bf16.msra.mxu0 %v9196_v18  ;;  %6441 = vmatpush1.bf16.msra.mxu1 %v9199_v19  ;;  %v9277_v18 = vld [vmem:[#allocation17 + $0x1e8] ss:$24 sps:$4 sm:$0xff]   ;;  %v9282_v19 = vld [vmem:[#allocation17 + $0x7b4] ss:$24 sps:$4 sm:$0xff]  }
 0x513   :  { %6472 = vmatprep.mubr.bf16.mxu1 %v10143_v30  ;;  %6401 = vmatprep.subr.bf16.mxu0 %v9204_v21  ;;  %v9285_v21 = vld [vmem:[#allocation17 + $0x1bc] ss:$24 sps:$4 sm:$0xff]  }
 0x514   :  { %6442 = vmatprep.subr.bf16.mxu1 %v9207_v22  ;;  %v3931_v22 = vrot.slane %v10131_v55, %v10056_v5 }
 0x516   :  { %6402 = vmatpush1.bf16.msra.mxu0 %v9202_v23  ;;  %6443 = vmatpush1.bf16.msra.mxu1 %v9205_v25  ;;  %v3935_v23 = vrot.slane %v10131_v55, %v10059_v6  ;;  %v9280_v25 = vld [vmem:[#allocation17 + $0x7b0] ss:$24 sps:$4 sm:$0xff]   ;;  %v9297_v55 = vld [vmem:[#allocation17 + $0x75c] ss:$24 sps:$4 sm:$0xff]  }
 0x517   :  { %6403 = vmatprep.subr.bf16.mxu0 %v9210_v26  ;;  %6444 = vmatprep.subr.bf16.mxu1 %v9213_v8  ;;  %v9283_v26 = vld [vmem:[#allocation17 + $0x1b8] ss:$24 sps:$4 sm:$0xff]  }
 0x51a   :  { %6404 = vmatpush1.bf16.msra.mxu0 %v9208_v4  ;;  %6445 = vmatpush1.bf16.msra.mxu1 %v9211_v27  ;;  %v9288_v4 = vld [vmem:[#allocation17 + $0x784] ss:$24 sps:$4 sm:$0xff]  }
 0x51b   :  { %6405 = vmatprep.subr.bf16.mxu0 %v9216_v3  ;;  %6446 = vmatprep.subr.bf16.mxu1 %v9219_v28  ;;  %v9291_v27 = vld [vmem:[#allocation17 + $0x18c] ss:$24 sps:$4 sm:$0xff]  }
 0x51e   :  { %6406 = vmatpush1.bf16.msra.mxu0 %v9214_v29  ;;  %6447 = vmatpush1.bf16.msra.mxu1 %v9217_v31  ;;  %v9286_v31 = vld [vmem:[#allocation17 + $0x780] ss:$24 sps:$4 sm:$0xff]  }
 0x51f   :  { %6407 = vmatprep.subr.bf16.mxu0 %v9222_v33  ;;  %6448 = vmatprep.subr.bf16.mxu1 %v9225_v63  ;;  %v9289_v33 = vld [vmem:[#allocation17 + $0x188] ss:$24 sps:$4 sm:$0xff]  }
 0x522   :  { %6408 = vmatpush1.bf16.msra.mxu0 %v9220_v34  ;;  %6449 = vmatpush1.bf16.msra.mxu1 %v9223_v35  ;;  %v9294_v35 = vld [vmem:[#allocation17 + $0x45c] ss:$24 sps:$4 sm:$0xff]  }
 0x523   :  { %6409 = vmatprep.subr.bf16.mxu0 %v9228_v36  ;;  %6450 = vmatprep.subr.bf16.mxu1 %v9231_v32 }
 0x526   :  { %6410 = vmatpush1.bf16.msra.mxu0 %v9226_v37  ;;  %6451 = vmatpush1.bf16.msra.mxu1 %v9229_v10  ;;  %v9292_v10 = vld [vmem:[#allocation17 + $0x458] ss:$24 sps:$4 sm:$0xff]  }
 0x527   :  { %6411 = vmatprep.subr.bf16.mxu0 %v9234_v38  ;;  %6452 = vmatprep.subr.bf16.mxu1 %v9237_v39  ;;  %v9295_v39 = vld [vmem:[#allocation17 + $0x758] ss:$24 sps:$4 sm:$0xff]  }
 0x52a   :  { %6412 = vmatpush1.bf16.msra.mxu0 %v9232_v46  ;;  %6453 = vmatpush1.bf16.msra.mxu1 %v9235_v47  ;;  %v9300_v46 = vld [vmem:[#allocation17 + $0x42c] ss:$24 sps:$4 sm:$0xff]  }
 0x52b   :  { %6413 = vmatprep.subr.bf16.mxu0 %v9240_v48  ;;  %6454 = vmatprep.subr.bf16.mxu1 %v9243_v49  ;;  %v9303_v47 = vld [vmem:[#allocation17 + $0x72c] ss:$24 sps:$4 sm:$0xff]   ;;  %v9298_v48 = vld [vmem:[#allocation17 + $0x428] ss:$24 sps:$4 sm:$0xff]  }
 0x52c   :  { %v9301_v49 = vld [vmem:[#allocation17 + $0x728] ss:$24 sps:$4 sm:$0xff]  }
 0x52e   :  { %6414 = vmatpush1.bf16.msra.mxu0 %v9238_v50  ;;  %6455 = vmatpush1.bf16.msra.mxu1 %v9241_v51  ;;  %v9306_v50 = vld [vmem:[#allocation17 + $0x3fc] ss:$24 sps:$4 sm:$0xff]  }
 0x52f   :  { %6415 = vmatprep.subr.bf16.mxu0 %v9246_v52  ;;  %6456 = vmatprep.subr.bf16.mxu1 %v9249_v53  ;;  %v9309_v51 = vld [vmem:[#allocation17 + $0x6fc] ss:$24 sps:$4 sm:$0xff]   ;;  %v9304_v52 = vld [vmem:[#allocation17 + $0x3f8] ss:$24 sps:$4 sm:$0xff]  }
 0x530   :  { %v9307_v53 = vld [vmem:[#allocation17 + $0x6f8] ss:$24 sps:$4 sm:$0xff]  }
 0x532   :  { %6416 = vmatpush2.bf16.msra.mxu0 %v9244_v54  ;;  %6457 = vmatpush2.bf16.msra.mxu1 %v9247_v56  ;;  %v9312_v54 = vld [vmem:[#allocation17 + $0x3cc] ss:$24 sps:$4 sm:$0xff]  }
 0x533   :  { %6417 = vmatprep.subr.bf16.mxu0 %v9252_v57  ;;  %6458 = vmatprep.subr.bf16.mxu1 %v9255_v12  ;;  %v9315_v56 = vld [vmem:[#allocation17 + $0x6cc] ss:$24 sps:$4 sm:$0xff]   ;;  %v9310_v57 = vld [vmem:[#allocation17 + $0x3c8] ss:$24 sps:$4 sm:$0xff]  }
 0x534   :  { %v9313_v12 = vld [vmem:[#allocation17 + $0x6c8] ss:$24 sps:$4 sm:$0xff]  }
 0x536   :  { %6418 = vmatpush2.bf16.msra.mxu0 %v9250_v58  ;;  %6459 = vmatpush2.bf16.msra.mxu1 %v9253_v59  ;;  %v9318_v58 = vld [vmem:[#allocation17 + $0x39c] ss:$24 sps:$4 sm:$0xff]  }
 0x537   :  { %6419 = vmatprep.subr.bf16.mxu0 %v9258_v60  ;;  %6460 = vmatprep.subr.bf16.mxu1 %v9261_v61  ;;  %v9321_v59 = vld [vmem:[#allocation17 + $0x69c] ss:$24 sps:$4 sm:$0xff]   ;;  %v9316_v60 = vld [vmem:[#allocation17 + $0x398] ss:$24 sps:$4 sm:$0xff]  }
 0x538   :  { %v9319_v61 = vld [vmem:[#allocation17 + $0x698] ss:$24 sps:$4 sm:$0xff]  }
 0x53a   :  { %6420 = vmatpush2.bf16.msra.mxu0 %v9256_v24  ;;  %6461 = vmatpush2.bf16.msra.mxu1 %v9259_v7  ;;  %v9324_v24 = vld [vmem:[#allocation17 + $0x36c] ss:$24 sps:$4 sm:$0xff]  }
 0x53b   :  { %6421 = vmatprep.subr.bf16.mxu0 %v9264_v62  ;;  %6462 = vmatprep.subr.bf16.mxu1 %v9267_v0  ;;  %v9327_v7 = vld [vmem:[#allocation17 + $0x66c] ss:$24 sps:$4 sm:$0xff]   ;;  %v9322_v62 = vld [vmem:[#allocation17 + $0x368] ss:$24 sps:$4 sm:$0xff]  }
 0x53c   :  { %v9325_v0 = vld [vmem:[#allocation17 + $0x668] ss:$24 sps:$4 sm:$0xff]  }
 0x53e   :  { %6422 = vmatpush2.bf16.msra.mxu0 %v9262_v41  ;;  %6463 = vmatpush2.bf16.msra.mxu1 %v9265_v1  ;;  %v9330_v41 = vld [vmem:[#allocation17 + $0x33c] ss:$24 sps:$4 sm:$0xff]  }
 0x53f   :  { %6423 = vmatprep.subr.bf16.mxu0 %v9270_v11  ;;  %6464 = vmatprep.subr.bf16.mxu1 %v9273_v9  ;;  %v9333_v1 = vld [vmem:[#allocation17 + $0x63c] ss:$24 sps:$4 sm:$0xff]   ;;  %v9328_v11 = vld [vmem:[#allocation17 + $0x338] ss:$24 sps:$4 sm:$0xff]  }
 0x540   :  { %v9331_v9 = vld [vmem:[#allocation17 + $0x638] ss:$24 sps:$4 sm:$0xff]  }
 0x542   :  { %6424 = vmatpush2.bf16.msra.mxu0 %v9268_v13  ;;  %6465 = vmatpush2.bf16.msra.mxu1 %v9271_v14  ;;  %v9336_v13 = vld [vmem:[#allocation17 + $0x30c] ss:$24 sps:$4 sm:$0xff]  }
 0x543   :  { %6425 = vmatprep.subr.bf16.mxu0 %v9276_v15  ;;  %6466 = vmatprep.subr.bf16.mxu1 %v9279_v2  ;;  %v9339_v14 = vld [vmem:[#allocation17 + $0x60c] ss:$24 sps:$4 sm:$0xff]   ;;  %v9334_v15 = vld [vmem:[#allocation17 + $0x308] ss:$24 sps:$4 sm:$0xff]  }
 0x544   :  { %v9337_v2 = vld [vmem:[#allocation17 + $0x608] ss:$24 sps:$4 sm:$0xff]  }
 0x546   :  { %6426 = vmatpush2.bf16.msra.mxu0 %v9274_v17  ;;  %6467 = vmatpush2.bf16.msra.mxu1 %v9277_v18  ;;  %v9342_v17 = vld [vmem:[#allocation17 + $0x5dc] ss:$24 sps:$4 sm:$0xff]  }
 0x547   :  { %v4538_v8 = vpop.f32.mrf.mxu1  ;;  %6427 = vmatprep.subr.bf16.mxu0 %v9282_v19  ;;  %6468 = vmatprep.subr.bf16.mxu1 %v9285_v21  ;;  %v9345_v18 = vld [vmem:[#allocation17 + $0x8dc] ss:$24 sps:$4 sm:$0xff]   ;;  %v9340_v19 = vld [vmem:[#allocation17 + $0x5d8] ss:$24 sps:$4 sm:$0xff]  }
 0x548   :  { %v4539_v3 = vadd.f32 %v4538_v8, %v3931_v22  ;;  %v9343_v21 = vld [vmem:[#allocation17 + $0x8d8] ss:$24 sps:$4 sm:$0xff]   ;;  %v9348_v22 = vld [vmem:[#allocation17 + $0x5ac] ss:$24 sps:$4 sm:$0xff]   ;;  %v9354_v8 = vld [vmem:[#allocation17 + $0x57c] ss:$24 sps:$4 sm:$0xff]  }
 0x549   :  { %v4540_v28 = vpop.f32.mrf.mxu1 }
 0x54a   :  { %v4541_v29 = vadd.f32 %v4540_v28, %v3935_v23  ;;  %6428 = vmatpush2.bf16.msra.mxu0 %v9280_v25  ;;  %6469 = vmatpush2.bf16.msra.mxu1 %v9283_v26  ;;  %v4549_v63 = vmax.f32 %v4539_v3, 0.0  ;;  %v9351_v23 = vld [vmem:[#allocation17 + $0x8ac] ss:$24 sps:$4 sm:$0xff]   ;;  %v9346_v25 = vld [vmem:[#allocation17 + $0x5a8] ss:$24 sps:$4 sm:$0xff]  }
 0x54b   :  { %v4542_v34 = vpop.f32.mrf.mxu1  ;;  %6429 = vmatprep.subr.bf16.mxu0 %v9288_v4  ;;  %6470 = vmatprep.subr.bf16.mxu1 %v9291_v27  ;;  %v9349_v26 = vld [vmem:[#allocation17 + $0x8a8] ss:$24 sps:$4 sm:$0xff]   ;;  %v9357_v4 = vld [vmem:[#allocation17 + $0x87c] ss:$24 sps:$4 sm:$0xff]   ;;  %v9352_v27 = vld [vmem:[#allocation17 + $0x578] ss:$24 sps:$4 sm:$0xff]  }
 0x54c   :  { %v4550_v36 = vmax.f32 %v4541_v29, 0.0  ;;  %v10160_v38 = vpack.c.bf16 %v4549_v63, %v4549_v63  ;;  %v9355_v3 = vld [vmem:[#allocation17 + $0x878] ss:$24 sps:$4 sm:$0xff]   ;;  %v9360_v28 = vld [vmem:[#allocation17 + $0x54c] ss:$24 sps:$4 sm:$0xff]  }
 0x54d   :  { %v4543_v32 = vpop.f32.mrf.mxu1  ;;  %v9363_v29 = vld [vmem:[#allocation17 + $0x84c] ss:$24 sps:$4 sm:$0xff]   ;;  %v9366_v63 = vld [vmem:[#allocation17 + $0x51c] ss:$24 sps:$4 sm:$0xff]  }
 0x54e   :  { %v10158_v37 = vpack.c.bf16 %v4550_v36, %v4550_v36  ;;  %6430 = vmatpush2.bf16.msra.mxu0 %v9286_v31  ;;  %6471 = vmatpush2.bf16.msra.mxu1 %v9289_v33  ;;  %v9358_v31 = vld [vmem:[#allocation17 + $0x548] ss:$24 sps:$4 sm:$0xff]   ;;  %v9369_v34 = vld [vmem:[#allocation17 + $0x81c] ss:$24 sps:$4 sm:$0xff]   ;;  %v9372_v36 = vld [vmem:[#allocation17 + $0x4ec] ss:$24 sps:$4 sm:$0xff]  }
 0x54f   :  { %6481 = vmatprep.subr.bf16.mxu0 %v9294_v35  ;;  %6522 = vmatprep.subr.bf16.mxu1 %v9297_v55  ;;  %v9361_v33 = vld [vmem:[#allocation17 + $0x848] ss:$24 sps:$4 sm:$0xff]   ;;  %v9364_v35 = vld [vmem:[#allocation17 + $0x518] ss:$24 sps:$4 sm:$0xff]   ;;  %v9375_v32 = vld [vmem:[#allocation17 + $0x7ec] ss:$24 sps:$4 sm:$0xff]  }
 0x550   :  { %6431 = vmatprep.mubr.bf16.mxu0 %v10158_v37  ;;  %v9367_v55 = vld [vmem:[#allocation17 + $0x818] ss:$24 sps:$4 sm:$0xff]  }
 0x551   :  { %6432 = vmatmul.mubr.bf16.vlgmr.msra.gmra.mxu0 %v10160_v38  ;;  %6473 = vmatmul.mubr.bf16.vlgmr.msra.gmra.mxu1 %v10147_v20 }
 0x552   :  { %6482 = vmatpush1.bf16.msra.mxu0 %v9292_v10  ;;  %6513 = vmatprep.mubr.bf16.mxu0 %v10145_v40  ;;  %v9370_v10 = vld [vmem:[#allocation17 + $0x4e8] ss:$24 sps:$4 sm:$0xff]  }
 0x553   :  { %6523 = vmatpush1.bf16.msra.mxu1 %v9295_v39  ;;  %6554 = vmatprep.mubr.bf16.mxu1 %v10158_v37  ;;  %v9373_v39 = vld [vmem:[#allocation17 + $0x7e8] ss:$24 sps:$4 sm:$0xff]  }
 0x554   :  { %6483 = vmatprep.subr.bf16.mxu0 %v9300_v46  ;;  %6524 = vmatprep.subr.bf16.mxu1 %v9303_v47  ;;  %v9378_v46 = vld [vmem:[#allocation17 + $0x4bc] ss:$24 sps:$4 sm:$0xff]  }
 0x555   :  { %v9381_v47 = vld [vmem:[#allocation17 + $0x7bc] ss:$24 sps:$4 sm:$0xff]  }
 0x556   :  { %6484 = vmatpush1.bf16.msra.mxu0 %v9298_v48  ;;  %v9376_v48 = vld [vmem:[#allocation17 + $0x4b8] ss:$24 sps:$4 sm:$0xff]  }
 0x557   :  { %6525 = vmatpush1.bf16.msra.mxu1 %v9301_v49  ;;  %6485 = vmatprep.subr.bf16.mxu0 %v9306_v50  ;;  %v9379_v49 = vld [vmem:[#allocation17 + $0x7b8] ss:$24 sps:$4 sm:$0xff]   ;;  %v9384_v50 = vld [vmem:[#allocation17 + $0x48c] ss:$24 sps:$4 sm:$0xff]  }
 0x558   :  { %6526 = vmatprep.subr.bf16.mxu1 %v9309_v51  ;;  %v9387_v51 = vld [vmem:[#allocation17 + $0x78c] ss:$24 sps:$4 sm:$0xff]  }
 0x55a   :  { %6486 = vmatpush1.bf16.msra.mxu0 %v9304_v52  ;;  %v9382_v52 = vld [vmem:[#allocation17 + $0x488] ss:$24 sps:$4 sm:$0xff]  }
 0x55b   :  { %6527 = vmatpush1.bf16.msra.mxu1 %v9307_v53  ;;  %6487 = vmatprep.subr.bf16.mxu0 %v9312_v54  ;;  %v9385_v53 = vld [vmem:[#allocation17 + $0x788] ss:$24 sps:$4 sm:$0xff]   ;;  %v9390_v54 = vld [vmem:[#allocation17 + $0x164] ss:$24 sps:$4 sm:$0xff]  }
 0x55c   :  { %6528 = vmatprep.subr.bf16.mxu1 %v9315_v56  ;;  %v9393_v56 = vld [vmem:[#allocation17 + $0x464] ss:$24 sps:$4 sm:$0xff]  }
 0x55e   :  { %6488 = vmatpush1.bf16.msra.mxu0 %v9310_v57  ;;  %v9388_v57 = vld [vmem:[#allocation17 + $0x160] ss:$24 sps:$4 sm:$0xff]  }
 0x55f   :  { %6529 = vmatpush1.bf16.msra.mxu1 %v9313_v12  ;;  %6489 = vmatprep.subr.bf16.mxu0 %v9318_v58  ;;  %v9391_v12 = vld [vmem:[#allocation17 + $0x460] ss:$24 sps:$4 sm:$0xff]   ;;  %v9396_v58 = vld [vmem:[#allocation17 + $0x134] ss:$24 sps:$4 sm:$0xff]  }
 0x560   :  { %6530 = vmatprep.subr.bf16.mxu1 %v9321_v59  ;;  %v9399_v59 = vld [vmem:[#allocation17 + $0x434] ss:$24 sps:$4 sm:$0xff]  }
 0x562   :  { %6490 = vmatpush1.bf16.msra.mxu0 %v9316_v60  ;;  %v9394_v60 = vld [vmem:[#allocation17 + $0x130] ss:$24 sps:$4 sm:$0xff]  }
 0x563   :  { %6531 = vmatpush1.bf16.msra.mxu1 %v9319_v61  ;;  %6491 = vmatprep.subr.bf16.mxu0 %v9324_v24  ;;  %v9397_v61 = vld [vmem:[#allocation17 + $0x430] ss:$24 sps:$4 sm:$0xff]   ;;  %v9402_v24 = vld [vmem:[#allocation17 + $0x104] ss:$24 sps:$4 sm:$0xff]  }
 0x564   :  { %6532 = vmatprep.subr.bf16.mxu1 %v9327_v7  ;;  %v9405_v7 = vld [vmem:[#allocation17 + $0x404] ss:$24 sps:$4 sm:$0xff]  }
 0x566   :  { %6492 = vmatpush1.bf16.msra.mxu0 %v9322_v62  ;;  %v9400_v62 = vld [vmem:[#allocation17 + $0x100] ss:$24 sps:$4 sm:$0xff]  }
 0x567   :  { %6533 = vmatpush1.bf16.msra.mxu1 %v9325_v0  ;;  %6493 = vmatprep.subr.bf16.mxu0 %v9330_v41  ;;  %v9403_v0 = vld [vmem:[#allocation17 + $0x400] ss:$24 sps:$4 sm:$0xff]   ;;  %v9408_v41 = vld [vmem:[#allocation17 + $0xd4] ss:$24 sps:$4 sm:$0xff]  }
 0x568   :  { %6534 = vmatprep.subr.bf16.mxu1 %v9333_v1  ;;  %v9411_v1 = vld [vmem:[#allocation17 + $0x3d4] ss:$24 sps:$4 sm:$0xff]  }
 0x56a   :  { %6494 = vmatpush1.bf16.msra.mxu0 %v9328_v11  ;;  %v9406_v11 = vld [vmem:[#allocation17 + $0xd0] ss:$24 sps:$4 sm:$0xff]  }
 0x56b   :  { %6535 = vmatpush1.bf16.msra.mxu1 %v9331_v9  ;;  %6495 = vmatprep.subr.bf16.mxu0 %v9336_v13  ;;  %v9414_v9 = vld [vmem:[#allocation17 + $0xa4] ss:$24 sps:$4 sm:$0xff]  }
 0x56c   :  { %6536 = vmatprep.subr.bf16.mxu1 %v9339_v14  ;;  %v9417_v13 = vld [vmem:[#allocation17 + $0x3a4] ss:$24 sps:$4 sm:$0xff]   ;;  %v9415_v14 = vld [vmem:[#allocation17 + $0x3a0] ss:$24 sps:$4 sm:$0xff]  }
 0x56e   :  { %6496 = vmatpush1.bf16.msra.mxu0 %v9334_v15  ;;  %v9420_v15 = vld [vmem:[#allocation17 + $0x74] ss:$24 sps:$4 sm:$0xff]  }
 0x56f   :  { %6537 = vmatpush1.bf16.msra.mxu1 %v9337_v2  ;;  %6497 = vmatprep.subr.bf16.mxu0 %v9342_v17  ;;  %v9423_v2 = vld [vmem:[#allocation17 + $0x374] ss:$24 sps:$4 sm:$0xff]   ;;  %v9418_v17 = vld [vmem:[#allocation17 + $0x70] ss:$24 sps:$4 sm:$0xff]  }
 0x570   :  { %6538 = vmatprep.subr.bf16.mxu1 %v9345_v18  ;;  %v9421_v18 = vld [vmem:[#allocation17 + $0x370] ss:$24 sps:$4 sm:$0xff]  }
 0x572   :  { %6498 = vmatpush2.bf16.msra.mxu0 %v9340_v19  ;;  %v9426_v19 = vld [vmem:[#allocation17 + $0x44] ss:$24 sps:$4 sm:$0xff]  }
 0x573   :  { %6539 = vmatpush2.bf16.msra.mxu1 %v9343_v21  ;;  %6499 = vmatprep.subr.bf16.mxu0 %v9348_v22  ;;  %v9429_v21 = vld [vmem:[#allocation17 + $0x344] ss:$24 sps:$4 sm:$0xff]   ;;  %v9424_v22 = vld [vmem:[#allocation17 + $0x40] ss:$24 sps:$4 sm:$0xff]  }
 0x574   :  { %6540 = vmatprep.subr.bf16.mxu1 %v9351_v23  ;;  %v9427_v23 = vld [vmem:[#allocation17 + $0x340] ss:$24 sps:$4 sm:$0xff]  }
 0x576   :  { %6500 = vmatpush2.bf16.msra.mxu0 %v9346_v25  ;;  %v9432_v25 = vld [vmem:[#allocation17 + $0x14] ss:$24 sps:$4 sm:$0xff]  }
 0x577   :  { %6541 = vmatpush2.bf16.msra.mxu1 %v9349_v26  ;;  %6501 = vmatprep.subr.bf16.mxu0 %v9354_v8  ;;  %v9435_v26 = vld [vmem:[#allocation17 + $0x314] ss:$24 sps:$4 sm:$0xff]   ;;  %v9430_v8 = vld [vmem:[#allocation17 + $0x10] ss:$24 sps:$4 sm:$0xff]  }
 0x578   :  { %6542 = vmatprep.subr.bf16.mxu1 %v9357_v4  ;;  %v9433_v4 = vld [vmem:[#allocation17 + $0x310] ss:$24 sps:$4 sm:$0xff]  }
 0x57a   :  { %6502 = vmatpush2.bf16.msra.mxu0 %v9352_v27  ;;  %v9438_v27 = vld [vmem:[#allocation17 + $0x2e4] ss:$24 sps:$4 sm:$0xff]  }
 0x57b   :  { %6543 = vmatpush2.bf16.msra.mxu1 %v9355_v3  ;;  %6503 = vmatprep.subr.bf16.mxu0 %v9360_v28  ;;  %v9441_v3 = vld [vmem:[#allocation17 + $0x5e4] ss:$24 sps:$4 sm:$0xff]   ;;  %v9436_v28 = vld [vmem:[#allocation17 + $0x2e0] ss:$24 sps:$4 sm:$0xff]  }
 0x57c   :  { %6544 = vmatprep.subr.bf16.mxu1 %v9363_v29  ;;  %v9439_v29 = vld [vmem:[#allocation17 + $0x5e0] ss:$24 sps:$4 sm:$0xff]  }
 0x57e   :  { %6504 = vmatpush2.bf16.msra.mxu0 %v9358_v31  ;;  %v9444_v31 = vld [vmem:[#allocation17 + $0x2b4] ss:$24 sps:$4 sm:$0xff]  }
 0x57f   :  { %6545 = vmatpush2.bf16.msra.mxu1 %v9361_v33  ;;  %6505 = vmatprep.subr.bf16.mxu0 %v9366_v63  ;;  %v9447_v33 = vld [vmem:[#allocation17 + $0x5b4] ss:$24 sps:$4 sm:$0xff]   ;;  %v9442_v63 = vld [vmem:[#allocation17 + $0x2b0] ss:$24 sps:$4 sm:$0xff]  }
 0x580   :  { %6546 = vmatprep.subr.bf16.mxu1 %v9369_v34  ;;  %v9445_v34 = vld [vmem:[#allocation17 + $0x5b0] ss:$24 sps:$4 sm:$0xff]  }
 0x582   :  { %6506 = vmatpush2.bf16.msra.mxu0 %v9364_v35  ;;  %v9450_v35 = vld [vmem:[#allocation17 + $0x284] ss:$24 sps:$4 sm:$0xff]  }
 0x583   :  { %6547 = vmatpush2.bf16.msra.mxu1 %v9367_v55  ;;  %6507 = vmatprep.subr.bf16.mxu0 %v9372_v36  ;;  %v9453_v55 = vld [vmem:[#allocation17 + $0x584] ss:$24 sps:$4 sm:$0xff]   ;;  %v9448_v36 = vld [vmem:[#allocation17 + $0x280] ss:$24 sps:$4 sm:$0xff]  }
 0x584   :  { %6548 = vmatprep.subr.bf16.mxu1 %v9375_v32  ;;  %v9451_v32 = vld [vmem:[#allocation17 + $0x580] ss:$24 sps:$4 sm:$0xff]  }
 0x586   :  { %6508 = vmatpush2.bf16.msra.mxu0 %v9370_v10  ;;  %v9456_v10 = vld [vmem:[#allocation17 + $0x254] ss:$24 sps:$4 sm:$0xff]  }
 0x587   :  { %6549 = vmatpush2.bf16.msra.mxu1 %v9373_v39  ;;  %6509 = vmatprep.subr.bf16.mxu0 %v9378_v46  ;;  %v9459_v39 = vld [vmem:[#allocation17 + $0x554] ss:$24 sps:$4 sm:$0xff]   ;;  %v9454_v46 = vld [vmem:[#allocation17 + $0x250] ss:$24 sps:$4 sm:$0xff]  }
 0x588   :  { %6550 = vmatprep.subr.bf16.mxu1 %v9381_v47  ;;  %v9457_v47 = vld [vmem:[#allocation17 + $0x550] ss:$24 sps:$4 sm:$0xff]  }
 0x58a   :  { %6510 = vmatpush2.bf16.msra.mxu0 %v9376_v48  ;;  %v9462_v48 = vld [vmem:[#allocation17 + $0x224] ss:$24 sps:$4 sm:$0xff]  }
 0x58b   :  { %6551 = vmatpush2.bf16.msra.mxu1 %v9379_v49  ;;  %6511 = vmatprep.subr.bf16.mxu0 %v9384_v50  ;;  %v9465_v49 = vld [vmem:[#allocation17 + $0x524] ss:$24 sps:$4 sm:$0xff]   ;;  %v9460_v50 = vld [vmem:[#allocation17 + $0x220] ss:$24 sps:$4 sm:$0xff]  }
 0x58c   :  { %6552 = vmatprep.subr.bf16.mxu1 %v9387_v51  ;;  %v9463_v51 = vld [vmem:[#allocation17 + $0x520] ss:$24 sps:$4 sm:$0xff]  }
 0x58e   :  { %6512 = vmatpush2.bf16.msra.mxu0 %v9382_v52  ;;  %v9468_v52 = vld [vmem:[#allocation17 + $0x1f4] ss:$24 sps:$4 sm:$0xff]  }
 0x58f   :  { %6553 = vmatpush2.bf16.msra.mxu1 %v9385_v53  ;;  %6563 = vmatprep.subr.bf16.mxu0 %v9390_v54  ;;  %v9471_v53 = vld [vmem:[#allocation17 + $0x4f4] ss:$24 sps:$4 sm:$0xff]   ;;  %v9466_v54 = vld [vmem:[#allocation17 + $0x1f0] ss:$24 sps:$4 sm:$0xff]  }
 0x590   :  { %6604 = vmatprep.subr.bf16.mxu1 %v9393_v56  ;;  %v9469_v56 = vld [vmem:[#allocation17 + $0x4f0] ss:$24 sps:$4 sm:$0xff]  }
 0x591   :  { %6514 = vmatmul.mubr.bf16.vlgmr.msra.gmra.mxu0 %v10141_v16 }
 0x592   :  { %6555 = vmatmul.mubr.bf16.vlgmr.msra.gmra.mxu1 %v10160_v38  ;;  %6564 = vmatpush1.bf16.msra.mxu0 %v9388_v57  ;;  %v9474_v57 = vld [vmem:[#allocation17 + $0x1c4] ss:$24 sps:$4 sm:$0xff]  }
 0x593   :  { %6595 = vmatprep.mubr.bf16.mxu0 %v10143_v30  ;;  %6605 = vmatpush1.bf16.msra.mxu1 %v9391_v12  ;;  %v9409_v30 = vld [vmem:[#allocation17 + $0x3d0] ss:$24 sps:$4 sm:$0xff]   ;;  %v9477_v12 = vld [vmem:[#allocation17 + $0x4c4] ss:$24 sps:$4 sm:$0xff]  }
 0x594   :  { %6636 = vmatprep.mubr.bf16.mxu1 %v10145_v40  ;;  %6565 = vmatprep.subr.bf16.mxu0 %v9396_v58  ;;  %v9412_v40 = vld [vmem:[#allocation17 + $0xa0] ss:$24 sps:$4 sm:$0xff]  }
 0x595   :  { %6606 = vmatprep.subr.bf16.mxu1 %v9399_v59  ;;  %v9472_v58 = vld [vmem:[#allocation17 + $0x1c0] ss:$24 sps:$4 sm:$0xff]  }
 0x596   :  { %6566 = vmatpush1.bf16.msra.mxu0 %v9394_v60  ;;  %v9475_v59 = vld [vmem:[#allocation17 + $0x4c0] ss:$24 sps:$4 sm:$0xff]   ;;  %v9480_v60 = vld [vmem:[#allocation17 + $0x194] ss:$24 sps:$4 sm:$0xff]  }
 0x597   :  { %6607 = vmatpush1.bf16.msra.mxu1 %v9397_v61  ;;  %6567 = vmatprep.subr.bf16.mxu0 %v9402_v24  ;;  %v9483_v61 = vld [vmem:[#allocation17 + $0x494] ss:$24 sps:$4 sm:$0xff]   ;;  %v9478_v24 = vld [vmem:[#allocation17 + $0x190] ss:$24 sps:$4 sm:$0xff]  }
 0x598   :  { %6608 = vmatprep.subr.bf16.mxu1 %v9405_v7  ;;  %v9481_v7 = vld [vmem:[#allocation17 + $0x490] ss:$24 sps:$4 sm:$0xff]  }
 0x59a   :  { %6568 = vmatpush1.bf16.msra.mxu0 %v9400_v62  ;;  %v9486_v62 = vld [vmem:[#allocation17 + $0x764] ss:$24 sps:$4 sm:$0xff]  }
 0x59b   :  { %6609 = vmatpush1.bf16.msra.mxu1 %v9403_v0  ;;  %6569 = vmatprep.subr.bf16.mxu0 %v9408_v41  ;;  %v9517_v0 = vld [vmem:[#allocation20 + $0x78] sm:$0xff]  }
 0x59c   :  { %6610 = vmatprep.subr.bf16.mxu1 %v9411_v1  ;;  %v9484_v41 = vld [vmem:[#allocation17 + $0x760] ss:$24 sps:$4 sm:$0xff]   ;;  %v9489_v1 = vld [vmem:[#allocation17 + $0x734] ss:$24 sps:$4 sm:$0xff]  }
 0x59e   :  { %6570 = vmatpush1.bf16.msra.mxu0 %v9406_v11  ;;  %v9518_v11 = vld [vmem:[#allocation20 + $0x38] sm:$0xff]  }
 0x59f   :  { %6611 = vmatpush1.bf16.msra.mxu1 %v9409_v30  ;;  %6571 = vmatprep.subr.bf16.mxu0 %v9414_v9 }
 0x5a0   :  { %6612 = vmatprep.subr.bf16.mxu1 %v9417_v13  ;;  %v9522_v13 = vld [vmem:[#allocation20 + $0x70] sm:$0xff]  }
 0x5a2   :  { %6572 = vmatpush1.bf16.msra.mxu0 %v9412_v40  ;;  %v9487_v40 = vld [vmem:[#allocation17 + $0x730] ss:$24 sps:$4 sm:$0xff]  }
 0x5a3   :  { %6613 = vmatpush1.bf16.msra.mxu1 %v9415_v14  ;;  %6573 = vmatprep.subr.bf16.mxu0 %v9420_v15 }
 0x5a4   :  { %6614 = vmatprep.subr.bf16.mxu1 %v9423_v2  ;;  %v9492_v2 = vld [vmem:[#allocation17 + $0x704] ss:$24 sps:$4 sm:$0xff]  }
 0x5a6   :  { %6574 = vmatpush1.bf16.msra.mxu0 %v9418_v17  ;;  %v9523_v17 = vld [vmem:[#allocation20 + $0x30] sm:$0xff]  }
 0x5a7   :  { %6615 = vmatpush1.bf16.msra.mxu1 %v9421_v18  ;;  %6575 = vmatprep.subr.bf16.mxu0 %v9426_v19  ;;  %v9527_v18 = vld [vmem:[#allocation20 + $0x68] sm:$0xff]  }
 0x5a8   :  { %6616 = vmatprep.subr.bf16.mxu1 %v9429_v21  ;;  %v9490_v21 = vld [vmem:[#allocation17 + $0x700] ss:$24 sps:$4 sm:$0xff]  }
 0x5aa   :  { %6576 = vmatpush1.bf16.msra.mxu0 %v9424_v22 }
 0x5ab   :  { %6617 = vmatpush1.bf16.msra.mxu1 %v9427_v23  ;;  %6577 = vmatprep.subr.bf16.mxu0 %v9432_v25  ;;  %v9532_v25 = vld [vmem:[#allocation20 + $0x60] sm:$0xff]  }
 0x5ac   :  { %6618 = vmatprep.subr.bf16.mxu1 %v9435_v26  ;;  %v9493_v26 = vld [vmem:[#allocation17 + $0x6d0] ss:$24 sps:$4 sm:$0xff]  }
 0x5ae   :  { %6578 = vmatpush1.bf16.msra.mxu0 %v9430_v8  ;;  %v9498_v8 = vld [vmem:[#allocation17 + $0x6a4] ss:$24 sps:$4 sm:$0xff]  }
 0x5af   :  { %6619 = vmatpush1.bf16.msra.mxu1 %v9433_v4  ;;  %6579 = vmatprep.subr.bf16.mxu0 %v9438_v27  ;;  %v9533_v4 = vld [vmem:[#allocation20 + $0x20] sm:$0xff]   ;;  %v9537_v27 = vld [vmem:[#allocation20 + $0x58] sm:$0xff]  }
 0x5b0   :  { %6620 = vmatprep.subr.bf16.mxu1 %v9441_v3  ;;  %v9496_v3 = vld [vmem:[#allocation17 + $0x6a0] ss:$24 sps:$4 sm:$0xff]  }
 0x5b2   :  { %6580 = vmatpush2.bf16.msra.mxu0 %v9436_v28  ;;  %v9501_v28 = vld [vmem:[#allocation17 + $0x674] ss:$24 sps:$4 sm:$0xff]  }
 0x5b3   :  { %6621 = vmatpush2.bf16.msra.mxu1 %v9439_v29  ;;  %6581 = vmatprep.subr.bf16.mxu0 %v9444_v31  ;;  %v9538_v29 = vld [vmem:[#allocation20 + $0x18] sm:$0xff]   ;;  %v9542_v31 = vld [vmem:[#allocation20 + $0x50] sm:$0xff]  }
 0x5b4   :  { %6622 = vmatprep.subr.bf16.mxu1 %v9447_v33  ;;  %v9499_v33 = vld [vmem:[#allocation17 + $0x670] ss:$24 sps:$4 sm:$0xff]  }
 0x5b6   :  { %6582 = vmatpush2.bf16.msra.mxu0 %v9442_v63  ;;  %v9504_v63 = vld [vmem:[#allocation17 + $0x644] ss:$24 sps:$4 sm:$0xff]  }
 0x5b7   :  { %6623 = vmatpush2.bf16.msra.mxu1 %v9445_v34  ;;  %6583 = vmatprep.subr.bf16.mxu0 %v9450_v35  ;;  %v9543_v34 = vld [vmem:[#allocation20 + $0x10] sm:$0xff]   ;;  %v9544_v35 = vld [vmem:[#allocation20 + $0x48] sm:$0xff]  }
 0x5b8   :  { %6624 = vmatprep.subr.bf16.mxu1 %v9453_v55  ;;  %v9502_v55 = vld [vmem:[#allocation17 + $0x640] ss:$24 sps:$4 sm:$0xff]  }
 0x5ba   :  { %6584 = vmatpush2.bf16.msra.mxu0 %v9448_v36  ;;  %v9507_v36 = vld [vmem:[#allocation17 + $0x614] ss:$24 sps:$4 sm:$0xff]  }
 0x5bb   :  { %6625 = vmatpush2.bf16.msra.mxu1 %v9451_v32  ;;  %6585 = vmatprep.subr.bf16.mxu0 %v9456_v10  ;;  %v9545_v32 = vld [vmem:[#allocation20 + $0x8] sm:$0xff]   ;;  %v9546_v10 = vld [vmem:[#allocation20 + $0x40] sm:$0xff]  }
 0x5bc   :  { %6626 = vmatprep.subr.bf16.mxu1 %v9459_v39  ;;  %v9505_v39 = vld [vmem:[#allocation17 + $0x610] ss:$24 sps:$4 sm:$0xff]  }
 0x5be   :  { %6586 = vmatpush2.bf16.msra.mxu0 %v9454_v46  ;;  %v9510_v46 = vld [vmem:[#allocation17 + $0x8e4] ss:$24 sps:$4 sm:$0xff]  }
 0x5bf   :  { %6627 = vmatpush2.bf16.msra.mxu1 %v9457_v47  ;;  %6587 = vmatprep.subr.bf16.mxu0 %v9462_v48  ;;  %v9547_v47 = vld [vmem:[#allocation20] sm:$0xff]   ;;  %v9548_v48 = vld [vmem:[#allocation20 + $0xf8] sm:$0xff]  }
 0x5c0   :  { %6628 = vmatprep.subr.bf16.mxu1 %v9465_v49  ;;  %v9508_v49 = vld [vmem:[#allocation17 + $0x8e0] ss:$24 sps:$4 sm:$0xff]  }
 0x5c2   :  { %6588 = vmatpush2.bf16.msra.mxu0 %v9460_v50  ;;  %v9513_v50 = vld [vmem:[#allocation17 + $0x8b4] ss:$24 sps:$4 sm:$0xff]  }
 0x5c3   :  { %6629 = vmatpush2.bf16.msra.mxu1 %v9463_v51  ;;  %6589 = vmatprep.subr.bf16.mxu0 %v9468_v52  ;;  %v9511_v51 = vld [vmem:[#allocation17 + $0x8b0] ss:$24 sps:$4 sm:$0xff]   ;;  %v9516_v52 = vld [vmem:[#allocation17 + $0x884] ss:$24 sps:$4 sm:$0xff]  }
 0x5c4   :  { %6630 = vmatprep.subr.bf16.mxu1 %v9471_v53  ;;  %v9514_v53 = vld [vmem:[#allocation17 + $0x880] ss:$24 sps:$4 sm:$0xff]  }
 0x5c6   :  { %6590 = vmatpush2.bf16.msra.mxu0 %v9466_v54  ;;  %v9521_v54 = vld [vmem:[#allocation17 + $0x854] ss:$24 sps:$4 sm:$0xff]  }
 0x5c7   :  { %6631 = vmatpush2.bf16.msra.mxu1 %v9469_v56  ;;  %6591 = vmatprep.subr.bf16.mxu0 %v9474_v57  ;;  %v9519_v56 = vld [vmem:[#allocation17 + $0x850] ss:$24 sps:$4 sm:$0xff]   ;;  %v9526_v57 = vld [vmem:[#allocation17 + $0x824] ss:$24 sps:$4 sm:$0xff]  }
 0x5c8   :  { %6632 = vmatprep.subr.bf16.mxu1 %v9477_v12  ;;  %v9524_v12 = vld [vmem:[#allocation17 + $0x820] ss:$24 sps:$4 sm:$0xff]  }
 0x5ca   :  { %6592 = vmatpush2.bf16.msra.mxu0 %v9472_v58  ;;  %v9531_v58 = vld [vmem:[#allocation17 + $0x7f4] ss:$24 sps:$4 sm:$0xff]  }
 0x5cb   :  { %6633 = vmatpush2.bf16.msra.mxu1 %v9475_v59  ;;  %6593 = vmatprep.subr.bf16.mxu0 %v9480_v60  ;;  %v9529_v59 = vld [vmem:[#allocation17 + $0x7f0] ss:$24 sps:$4 sm:$0xff]   ;;  %v9536_v60 = vld [vmem:[#allocation17 + $0x7c4] ss:$24 sps:$4 sm:$0xff]  }
 0x5cc   :  { %6634 = vmatprep.subr.bf16.mxu1 %v9483_v61  ;;  %v10182_v61 = vld [vmem:[#allocation18] sm:$0x3f] }
 0x5ce   :  { %6594 = vmatpush2.bf16.msra.mxu0 %v9478_v24  ;;  %v9534_v24 = vld [vmem:[#allocation17 + $0x7c0] ss:$24 sps:$4 sm:$0xff]  }
 0x5cf   :  { %6635 = vmatpush2.bf16.msra.mxu1 %v9481_v7  ;;  %6645 = vmatprep.subr.bf16.mxu0 %v9486_v62  ;;  %v9541_v7 = vld [vmem:[#allocation17 + $0x794] ss:$24 sps:$4 sm:$0xff]   ;;  %v4850_v62 = vrot.slane %v10182_v61, %v10023_v42 }
 0x5d0   :  { %8151 = vmatprep.subr.bf16.mxu1 %v9517_v0  ;;  %v4854_v0 = vrot.slane %v10182_v61, %v10029_v44 }
 0x5d1   :  { %6596 = vmatmul.mubr.bf16.vlgmr.msra.gmra.mxu0 %v10147_v20  ;;  %v10172_v30 = vpop.f32.mrf.mxu0  ;;  %v10174_v9 = vpop.f32.mrf.mxu1 }
 0x5d2   :  { %6637 = vmatmul.mubr.bf16.vlgmr.msra.gmra.mxu1 %v10141_v16  ;;  %6646 = vmatpush1.bf16.msra.mxu0 %v9484_v41  ;;  %v9495_v16 = vld [vmem:[#allocation17 + $0x6d4] ss:$24 sps:$4 sm:$0xff]   ;;  %v9539_v41 = vld [vmem:[#allocation17 + $0x790] ss:$24 sps:$4 sm:$0xff]  }
 0x5d3   :  { %6677 = vmatprep.mubr.bf16.mxu0 %v10158_v37  ;;  %v10178_v14 = vpop.f32.mrf.mxu0  ;;  %6647 = vmatprep.subr.bf16.mxu0 %v9489_v1  ;;  %v10180_v15 = vpop.f32.mrf.mxu1  ;;  %v9528_v37 = vld [vmem:[#allocation20 + $0x28] sm:$0xff]   ;;  %v6352_v1 = vadd.f32 %v10172_v30, %v4850_v62 }
 0x5d4   :  { %8152 = vmatpush3.bf16.msra.mxu1 %v9518_v11  ;;  %v6354_v11 = vadd.f32 %v10178_v14, %v4854_v0  ;;  %v9577_v0 = vld [vmem:[#allocation20 + $0x108] sm:$0xff]  }
 0x5d5   :  { %v6355_v20 = vpop.f32.mrf.mxu0  ;;  %8153 = vmatprep.subr.bf16.mxu1 %v9522_v13  ;;  %v6396_v19 = vpop.f32.mrf.mxu1  ;;  %v6393_v13 = vadd.f32 %v10174_v9, %v6352_v1 }
 0x5d6   :  { %6648 = vmatpush1.bf16.msra.mxu0 %v9487_v40  ;;  %v6395_v42 = vadd.f32 %v10180_v15, %v6354_v11  ;;  %v9567_v15 = vld [vmem:[#allocation20 + $0x130] sm:$0xff]  }
 0x5d7   :  { %v6356_v22 = vpop.f32.mrf.mxu0  ;;  %6649 = vmatprep.subr.bf16.mxu0 %v9492_v2  ;;  %v6397_v23 = vpop.f32.mrf.mxu1 }
 0x5d8   :  { %8154 = vmatpush3.bf16.msra.mxu1 %v9523_v17  ;;  %v9549_v23 = vld [vmem:[#allocation20 + $0xb8] sm:$0xff]  }
 0x5d9   :  { %8155 = vmatprep.subr.bf16.mxu1 %v9527_v18 }
 0x5da   :  { %6650 = vmatpush1.bf16.msra.mxu0 %v9490_v21 }
 0x5db   :  { %6651 = vmatprep.subr.bf16.mxu0 %v9495_v16 }
 0x5dc   :  { %8156 = vmatpush3.bf16.msra.mxu1 %v9528_v37  ;;  %v9564_v37 = vld [vmem:[#allocation20 + $0x178] sm:$0xff]  }
 0x5dd   :  { %8157 = vmatprep.subr.bf16.mxu1 %v9532_v25  ;;  %v9565_v25 = vld [vmem:[#allocation20 + $0x138] sm:$0xff]  }
 0x5de   :  { %6652 = vmatpush1.bf16.msra.mxu0 %v9493_v26  ;;  %v9566_v26 = vld [vmem:[#allocation20 + $0x170] sm:$0xff]  }
 0x5df   :  { %6653 = vmatprep.subr.bf16.mxu0 %v9498_v8 }
 0x5e0   :  { %8158 = vmatpush3.bf16.msra.mxu1 %v9533_v4  ;;  %v9551_v4 = vld [vmem:[#allocation20 + $0xb0] sm:$0xff]  }
 0x5e1   :  { %8159 = vmatprep.subr.bf16.mxu1 %v9537_v27  ;;  %v9568_v27 = vld [vmem:[#allocation20 + $0x168] sm:$0xff]  }
 0x5e2   :  { %6654 = vmatpush1.bf16.msra.mxu0 %v9496_v3  ;;  %v9552_v3 = vld [vmem:[#allocation20 + $0xe8] sm:$0xff]  }
 0x5e3   :  { %6655 = vmatprep.subr.bf16.mxu0 %v9501_v28  ;;  %v9569_v28 = vld [vmem:[#allocation20 + $0x128] sm:$0xff]  }
 0x5e4   :  { %8160 = vmatpush3.bf16.msra.mxu1 %v9538_v29  ;;  %v9553_v29 = vld [vmem:[#allocation20 + $0xa8] sm:$0xff]  }
 0x5e5   :  { %8161 = vmatprep.subr.bf16.mxu1 %v9542_v31  ;;  %v9570_v31 = vld [vmem:[#allocation20 + $0x160] sm:$0xff]  }
 0x5e6   :  { %6656 = vmatpush1.bf16.msra.mxu0 %v9499_v33  ;;  %v9554_v33 = vld [vmem:[#allocation20 + $0xe0] sm:$0xff]  }
 0x5e7   :  { %6657 = vmatprep.subr.bf16.mxu0 %v9504_v63  ;;  %v9571_v63 = vld [vmem:[#allocation20 + $0x120] sm:$0xff]  }
 0x5e8   :  { %8162 = vmatpush3.bf16.msra.mxu1 %v9543_v34  ;;  %v9555_v34 = vld [vmem:[#allocation20 + $0xa0] sm:$0xff]  }
 0x5e9   :  { %8163 = vmatprep.subr.bf16.mxu1 %v9544_v35  ;;  %v9572_v35 = vld [vmem:[#allocation20 + $0x158] sm:$0xff]  }
 0x5ea   :  { %6658 = vmatpush1.bf16.msra.mxu0 %v9502_v55  ;;  %v9556_v55 = vld [vmem:[#allocation20 + $0xd8] sm:$0xff]  }
 0x5eb   :  { %6659 = vmatprep.subr.bf16.mxu0 %v9507_v36  ;;  %v9573_v36 = vld [vmem:[#allocation20 + $0x118] sm:$0xff]  }
 0x5ec   :  { %8164 = vmatpush3.bf16.msra.mxu1 %v9545_v32  ;;  %v9557_v32 = vld [vmem:[#allocation20 + $0x98] sm:$0xff]  }
 0x5ed   :  { %8165 = vmatprep.subr.bf16.mxu1 %v9546_v10  ;;  %v9574_v10 = vld [vmem:[#allocation20 + $0x150] sm:$0xff]  }
 0x5ee   :  { %6660 = vmatpush1.bf16.msra.mxu0 %v9505_v39  ;;  %v9558_v39 = vld [vmem:[#allocation20 + $0xd0] sm:$0xff]  }
 0x5ef   :  { %6661 = vmatprep.subr.bf16.mxu0 %v9510_v46  ;;  %v9575_v46 = vld [vmem:[#allocation20 + $0x110] sm:$0xff]  }
 0x5f0   :  { %8166 = vmatpush3.bf16.msra.mxu1 %v9547_v47  ;;  %v9559_v47 = vld [vmem:[#allocation20 + $0x90] sm:$0xff]  }
 0x5f1   :  { %8173 = vmatprep.subr.bf16.mxu1 %v9548_v48  ;;  %v9560_v48 = vld [vmem:[#allocation20 + $0xc8] sm:$0xff]  }
 0x5f2   :  { %6662 = vmatpush2.bf16.msra.mxu0 %v9508_v49  ;;  %v9561_v49 = vld [vmem:[#allocation20 + $0x88] sm:$0xff]  }
 0x5f3   :  { %6663 = vmatprep.subr.bf16.mxu0 %v9513_v50  ;;  %v9562_v50 = vld [vmem:[#allocation20 + $0xc0] sm:$0xff]  }
 0x5f6   :  { %6664 = vmatpush2.bf16.msra.mxu0 %v9511_v51  ;;  %v9563_v51 = vld [vmem:[#allocation20 + $0x80] sm:$0xff]  }
 0x5f7   :  { %6665 = vmatprep.subr.bf16.mxu0 %v9516_v52  ;;  %v4858_v52 = vrot.slane %v10182_v61, %v10026_v43 }
 0x5fa   :  { %6666 = vmatpush2.bf16.msra.mxu0 %v9514_v53  ;;  %v4862_v53 = vrot.slane %v10182_v61, %v10032_v45 }
 0x5fb   :  { %6667 = vmatprep.subr.bf16.mxu0 %v9521_v54 }
 0x5fe   :  { %6668 = vmatpush2.bf16.msra.mxu0 %v9519_v56 }
 0x5ff   :  { %6669 = vmatprep.subr.bf16.mxu0 %v9526_v57 }
 0x602   :  { %6670 = vmatpush2.bf16.msra.mxu0 %v9524_v12 }
 0x603   :  { %6671 = vmatprep.subr.bf16.mxu0 %v9531_v58 }
 0x606   :  { %6672 = vmatpush2.bf16.msra.mxu0 %v9529_v59 }
 0x607   :  { %6673 = vmatprep.subr.bf16.mxu0 %v9536_v60  ;;  %v9576_v60 = vld [vmem:[#allocation20 + $0x148] sm:$0xff]  }
 0x60a   :  { %6674 = vmatpush2.bf16.msra.mxu0 %v9534_v24 }
 0x60b   :  { %6675 = vmatprep.subr.bf16.mxu0 %v9541_v7 }
 0x60e   :  { %6676 = vmatpush2.bf16.msra.mxu0 %v9539_v41 }
 0x60f   :  { %8195 = vmatprep.subr.bf16.mxu0 %v9564_v37 }
 0x611   :  { %v6433_v40 = vpop.f32.mrf.mxu0  ;;  %v10191_v2 = vpop.f32.mrf.mxu1  ;;  %6678 = vmatmul.mubr.bf16.vlgmr.msra.gmra.mxu0 %v10160_v38  ;;  %v9550_v38 = vld [vmem:[#allocation20 + $0xf0] sm:$0xff]  }
 0x612   :  { %v6434_v17 = vadd.f32 %v6433_v40, %v6393_v13  ;;  %8196 = vmatpush3.bf16.msra.mxu0 %v9565_v25  ;;  %v6475_v54 = vadd.f32 %v10191_v2, %v4858_v52  ;;  %v9578_v13 = vld [vmem:[#allocation20 + $0x140] sm:$0xff]  }
 0x613   :  { %v6435_v20 = vpop.f32.mrf.mxu0  ;;  %v10195_v44 = vpop.f32.mrf.mxu1  ;;  %8197 = vmatprep.subr.bf16.mxu0 %v9566_v26 }
 0x614   :  { %v6436_v18 = vadd.f32 %v6435_v20, %v6395_v42  ;;  %v6686_v19 = vmax.f32 %v6434_v17, 0.0  ;;  %v6477_v57 = vadd.f32 %v10195_v44, %v4862_v53  ;;  %v9579_v42 = vld [vmem:[#allocation20 + $0x100] sm:$0xff]  }
 0x615   :  { %v6437_v21 = vpop.f32.mrf.mxu0  ;;  %v6478_v30 = vpop.f32.mrf.mxu1 }
 0x616   :  { %v6687_v22 = vmax.f32 %v6436_v18, 0.0  ;;  %v6692_v8 = vpack.c.bf16 %v6686_v19, %v6686_v19  ;;  %8198 = vmatpush3.bf16.msra.mxu0 %v9567_v15 }
 0x617   :  { %v6438_v14 = vpop.f32.mrf.mxu0  ;;  %v6479_v16 = vpop.f32.mrf.mxu1  ;;  %8199 = vmatprep.subr.bf16.mxu0 %v9568_v27 }
 0x618   :  { %v6693_v9 = vpack.c.bf16 %v6687_v22, %v6687_v22 }
 0x61a   :  { %7121 = vmatprep.mubr.bf16.mxu1 %v6693_v9  ;;  %8200 = vmatpush3.bf16.msra.mxu0 %v9569_v28  ;;  %v4870_v9 = vrot.slane %v10182_v61, %v10059_v6 }
 0x61b   :  { %7122 = vmatmul.mubr.bf16.vlgmr.msra.gmra.mxu1 %v6692_v8  ;;  %8201 = vmatprep.subr.bf16.mxu0 %v9570_v31 }
 0x61c   :  { %8174 = vmatpush3.bf16.msra.mxu1 %v9549_v23  ;;  %v4866_v23 = vrot.slane %v10182_v61, %v10056_v5 }
 0x61d   :  { %8175 = vmatprep.subr.bf16.mxu1 %v9550_v38 }
 0x61e   :  { %8202 = vmatpush3.bf16.msra.mxu0 %v9571_v63 }
 0x61f   :  { %8203 = vmatprep.subr.bf16.mxu0 %v9572_v35 }
 0x620   :  { %8176 = vmatpush3.bf16.msra.mxu1 %v9551_v4 }
 0x621   :  { %8177 = vmatprep.subr.bf16.mxu1 %v9552_v3 }
 0x622   :  { %8204 = vmatpush3.bf16.msra.mxu0 %v9573_v36 }
 0x623   :  { %8205 = vmatprep.subr.bf16.mxu0 %v9574_v10 }
 0x624   :  { %8178 = vmatpush3.bf16.msra.mxu1 %v9553_v29 }
 0x625   :  { %8179 = vmatprep.subr.bf16.mxu1 %v9554_v33 }
 0x626   :  { %8206 = vmatpush3.bf16.msra.mxu0 %v9575_v46 }
 0x627   :  { %8207 = vmatprep.subr.bf16.mxu0 %v9576_v60 }
 0x628   :  { %8180 = vmatpush3.bf16.msra.mxu1 %v9555_v34 }
 0x629   :  { %8181 = vmatprep.subr.bf16.mxu1 %v9556_v55  ;;  %v8102_v55 = vld [vmem:[#allocation21] ss:$0 sm:$0xff] }
 0x62a   :  { %8208 = vmatpush3.bf16.msra.mxu0 %v9577_v0 }
 0x62b   :  { %8209 = vmatprep.subr.bf16.mxu0 %v9578_v13 }
 0x62c   :  { %8182 = vmatpush3.bf16.msra.mxu1 %v9557_v32 }
 0x62d   :  { %8183 = vmatprep.subr.bf16.mxu1 %v9558_v39 }
 0x62e   :  { %8210 = vmatpush3.bf16.msra.mxu0 %v9579_v42 }
 0x630   :  { %8184 = vmatpush3.bf16.msra.mxu1 %v9559_v47 }
 0x631   :  { %8185 = vmatprep.subr.bf16.mxu1 %v9560_v48 }
 0x634   :  { %8186 = vmatpush3.bf16.msra.mxu1 %v9561_v49 }
 0x635   :  { %8187 = vmatprep.subr.bf16.mxu1 %v9562_v50 }
 0x638   :  { %8188 = vmatpush3.bf16.msra.mxu1 %v9563_v51 }
 0x651   :  { %v6515_v56 = vpop.f32.mrf.mxu0 }
 0x652   :  { %v6516_v12 = vadd.f32 %v6515_v56, %v6475_v54  ;;  %v6556_v58 = vpop.f32.mrf.mxu1 }
 0x653   :  { %v6517_v59 = vpop.f32.mrf.mxu0 }
 0x654   :  { %v6557_v24 = vadd.f32 %v6556_v58, %v6516_v12  ;;  %v6518_v7 = vadd.f32 %v6517_v59, %v6477_v57  ;;  %v6558_v62 = vpop.f32.mrf.mxu1 }
 0x655   :  { %v6519_v41 = vpop.f32.mrf.mxu0 }
 0x656   :  { %v6559_v1 = vadd.f32 %v6558_v62, %v6518_v7  ;;  %v6560_v43 = vpop.f32.mrf.mxu1  ;;  %v6688_v11 = vmax.f32 %v6557_v24, 0.0 }
 0x657   :  { %v6520_v45 = vpop.f32.mrf.mxu0 }
 0x658   :  { %v6689_v40 = vmax.f32 %v6559_v1, 0.0  ;;  %v6561_v2 = vpop.f32.mrf.mxu1  ;;  %v6694_v20 = vpack.c.bf16 %v6688_v11, %v6688_v11 }
 0x65a   :  { %v6695_v17 = vpack.c.bf16 %v6689_v40, %v6689_v40 }
 0x65c   :  { %7161 = vmatprep.mubr.bf16.mxu1 %v6695_v17 }
 0x65d   :  { %7162 = vmatmul.mubr.bf16.vlgmr.msra.gmra.mxu1 %v6694_v20 }
 0x691   :  { %v6597_v44 = vpop.f32.mrf.mxu0 }
 0x692   :  { %v6638_v18 = vpop.f32.mrf.mxu1  ;;  %v6598_v37 = vadd.f32 %v6597_v44, %v4866_v23 }
 0x693   :  { %v6599_v19 = vpop.f32.mrf.mxu0 }
 0x694   :  { %v6640_v21 = vpop.f32.mrf.mxu1  ;;  %v6600_v25 = vadd.f32 %v6599_v19, %v4870_v9  ;;  %v6639_v26 = vadd.f32 %v6638_v18, %v6598_v37 }
 0x695   :  { %v6601_v30 = vpop.f32.mrf.mxu0 }
 0x696   :  { %v6642_v22 = vpop.f32.mrf.mxu1  ;;  %v6641_v38 = vadd.f32 %v6640_v21, %v6600_v25 }
 0x697   :  { %v6602_v14 = vpop.f32.mrf.mxu0 }
 0x698   :  { %v6643_v16 = vpop.f32.mrf.mxu1 }
 0x6d1   :  { %v6679_v8 = vpop.f32.mrf.mxu0 }
 0x6d2   :  { %v6680_v15 = vadd.f32 %v6679_v8, %v6639_v26 }
 0x6d3   :  { %v6681_v4 = vpop.f32.mrf.mxu0 }
 0x6d4   :  { %v6682_v27 = vadd.f32 %v6681_v4, %v6641_v38  ;;  %v6690_v3 = vmax.f32 %v6680_v15, 0.0 }
 0x6d5   :  { %v6683_v28 = vpop.f32.mrf.mxu0 }
 0x6d6   :  { %v6691_v29 = vmax.f32 %v6682_v27, 0.0  ;;  %v6696_v63 = vpack.c.bf16 %v6690_v3, %v6690_v3 }
 0x6d7   :  { %v6684_v31 = vpop.f32.mrf.mxu0 }
 0x6d8   :  { %v6697_v33 = vpack.c.bf16 %v6691_v29, %v6691_v29 }
 0x6da   :  { %7201 = vmatprep.mubr.bf16.mxu0 %v6697_v33 }
 0x6db   :  { %v8167_v34 = vpop.f32.mrf.mxu1  ;;  %7202 = vmatmul.mubr.bf16.vlgmr.msra.gmra.mxu0 %v6696_v63 }
 0x6dd   :  { %v8168_v5 = vpop.f32.mrf.mxu1 }
 0x6de   :  { %v8169_v35 = vadd.f32 %v8168_v5, %v8167_v34 }
 0x6df   :  { %v8170_v6 = vpop.f32.mrf.mxu1 }
 0x6e0   :  { %v7124_v10 = vadd.f32 %v8169_v35, %v8102_v55 }
 0x6e1   :  { %v8171_v61 = vpop.f32.mrf.mxu1 }
 0x71d   :  { %v8189_v36 = vpop.f32.mrf.mxu1 }
 0x71f   :  { %v8190_v32 = vpop.f32.mrf.mxu1 }
 0x720   :  { %v8191_v39 = vadd.f32 %v8190_v32, %v8189_v36 }
 0x721   :  { %v8192_v46 = vpop.f32.mrf.mxu1 }
 0x722   :  { %v7164_v47 = vadd.f32 %v8191_v39, %v7124_v10 }
 0x723   :  { %v8193_v48 = vpop.f32.mrf.mxu1 }
 0x79b   :  { %v8211_v49 = vpop.f32.mrf.mxu0 }
 0x79d   :  { %v8212_v50 = vpop.f32.mrf.mxu0 }
 0x79e   :  { %v8213_v51 = vadd.f32 %v8212_v50, %v8211_v49 }
 0x79f   :  { %v8214_v52 = vpop.f32.mrf.mxu0 }
 0x7a0   :  { %v7204_v53 = vadd.f32 %v8213_v51, %v7164_v47 }
 0x7a1   :  { %v8215_v54 = vpop.f32.mrf.mxu0 }
 0x7a2   :  { %9582 = vtanh.f32 %v7204_v53 }
 0x7af   :  { %v9583_v56 = vpop.eup %9582 }
 0x7b0   :  { %7210 = vst [vmem:[#allocation23] sm:$0xff] %v9583_v56 }
 0x7b1   :  { %9835 = shalt.err (!%p9832_p8)
}
 0x7b2   :  { %7222 = dma.vmem_to_hbm [thread:$0]  %s7220_s15, 128, %s10224_s14, [#allocation5]  }
 0x7b3   :  { %9858 = dma.done.wait [#allocation5], 128  }
 0x7b4   :  { %9859 = vsyncadd [#allocation5], 4294967168 }
 0x7b5   :  { %7230 = vsyncpa [#allocation4], 1 }
 0x7b6   :  { %7231 = vsyncpa [#allocation7], 1 }
 0x7b7   :  { %7232 = vsyncpa [#allocation10], 1 }
 0x7b8   :  { %7233 = vsyncpa [#allocation13], 1 }
 0x7b9   :  { %7234 = vsyncpa [#allocation16], 1 }
 0x7ba   :  { %7235 = vsyncpa [#allocation19], 1 }
 0x7bb   :  { %7236 = vsyncpa [#allocation22], 1 }
 0x7bc   :  { %7237 = vsyncpa [#allocation5], 1 }

</bundles_post_ra>
